<compile_context>
chip_gen: v6e
topology: v6e:2x2x1
jax: 0.10.0
libtpu: 0.0.40
codegen_flags: <defaults>
</compile_context>

<pallas_src>
import math
from functools import partial

import jax
import jax.numpy as jnp
from jax import lax
from jax.experimental import pallas as pl
from jax.experimental.pallas import tpu as pltpu


def _round_up(x, m):
    return (x + m - 1) // m * m


def _conv3x3(xpad, w_ref, rows, W, cin_pad, kh_split):
    """3x3 'valid' conv of xpad (rows+2, W+2, cin_pad) via im2col MXU matmul(s).

    w_ref rows are ordered (kh, kw, cin) flattened.  Returns (rows*W, Cout_pad) f32.
    """
    if kh_split:
        # 3 accumulated matmuls, K = 3*cin_pad each -> patch slab 3x smaller.
        acc = None
        for kh in range(3):
            cols = [xpad[kh:kh + rows, kw:kw + W, :] for kw in range(3)]
            patches = jnp.concatenate(cols, axis=-1).reshape(rows * W, 3 * cin_pad)
            part = jnp.dot(patches,
                           w_ref[kh * 3 * cin_pad:(kh + 1) * 3 * cin_pad, :],
                           preferred_element_type=jnp.float32)
            acc = part if acc is None else acc + part
        return acc
    # Single (rows*W, 9*C) x (9*C, Cout) contraction.
    cols = [xpad[kh:kh + rows, kw:kw + W, :]
            for kh in range(3) for kw in range(3)]
    patches = jnp.concatenate(cols, axis=-1).reshape(rows * W, 9 * cin_pad)
    return jnp.dot(patches, w_ref[...], preferred_element_type=jnp.float32)


def _g_block_kernel(x_hbm, w1_ref, w2_ref, b1_ref, b2_ref, o_ref,
                    src_buf, a1p_ref, *, W, out_ch, row_tile, kh_split):
    """Fused G_Block band for one batch element / one `row_tile`-row output band.

    x_hbm  : (N, H_in+2, W+2, Cin_pad)  width-upsampled, pre-padded input (HBM)
    w1_ref : (9*Cin_pad, Cout_pad)      im2col-flattened, equalized-LR-scaled weights
    w2_ref : (9*Cout_pad, Cout_pad)
    b1_ref, b2_ref : (1, Cout_pad)      f32 biases (zero in padding lanes)
    o_ref  : (1, row_tile*W, Cout_pad)  flat (rows, channels) lane-dense output band
    src_buf: (TR//2+2, W+2, Cin_pad)    VMEM scratch for the source row band
    a1p_ref: (TR+2, W+2, Cout_pad)      VMEM scratch: conv2's spatially padded input
    """
    n = pl.program_id(0)
    t = pl.program_id(1)
    Cin_pad = src_buf.shape[-1]
    Cout_pad = o_ref.shape[-1]
    TR = row_tile
    n1 = TR + 2                      # conv1 rows computed (1-row halo each side)
    nsrc = TR // 2 + 2               # source rows this band consumes

    # ---- band DMA: only the nsrc source rows this band needs ---------------------
    src_start = t * (TR // 2)
    pltpu.sync_copy(x_hbm.at[n, pl.ds(src_start, nsrc), :, :], src_buf)

    # ---- fused nearest-neighbour 2x row upsample (kept in MXU dtype) -------------
    src = src_buf[...]                                             # (nsrc, W+2, Cin_pad)
    p2 = jnp.broadcast_to(src[:, None, :, :], (nsrc, 2, W + 2, Cin_pad))
    p2 = p2.reshape(2 * nsrc, W + 2, Cin_pad)                      # (TR+4, W+2, Cin_pad)

    inv_c = 1.0 / out_ch

    def lrelu_pixelnorm(y, b_ref):
        y = y + b_ref[...]                                         # (1,C) broadcast
        y = jnp.maximum(y, 0.2 * y)                                # LeakyReLU(0.2)
        # PixelNorm over the true out_ch channels (padding lanes are exactly zero).
        msq = jnp.sum(y * y, axis=-1, keepdims=True) * inv_c
        return y * lax.rsqrt(msq + 1e-8)

    # ---- conv1 + LeakyReLU + PixelNorm on TR+2 rows (halo recompute for conv2) ---
    a1 = lrelu_pixelnorm(_conv3x3(p2, w1_ref, n1, W, Cin_pad, kh_split), b1_ref)

    # ---- stage conv2's padded input in the persistent VMEM scratch ---------------
    zcol = jnp.zeros((n1, 1, Cout_pad), a1p_ref.dtype)
    a1p_ref[:, 0:1, :] = zcol                                      # left  zero column
    a1p_ref[:, W + 1:W + 2, :] = zcol                              # right zero column
    a1p_ref[:, 1:W + 1, :] = a1.reshape(n1, W, Cout_pad).astype(a1p_ref.dtype)

    # conv2's spatial zero-pad rows (global padded rows 0 and H+1) live at local
    # rows 0 (first band) and TR+1 (last band): overwrite them with zeros.
    @pl.when(t == 0)
    def _():
        a1p_ref[0:1, :, :] = jnp.zeros((1, W + 2, Cout_pad), a1p_ref.dtype)

    @pl.when(t == pl.num_programs(1) - 1)
    def _():
        a1p_ref[TR + 1:TR + 2, :, :] = jnp.zeros((1, W + 2, Cout_pad), a1p_ref.dtype)

    # ---- conv2 + LeakyReLU + PixelNorm on this band's TR output rows -------------
    y2 = lrelu_pixelnorm(
        _conv3x3(a1p_ref[...], w2_ref, TR, W, Cout_pad, kh_split), b2_ref)
    o_ref[0, :, :] = y2.astype(o_ref.dtype)


def g_block_forward(params, x_nchw, *, compute_dtype=jnp.bfloat16,
                    out_dtype=jnp.float32, row_tile=16, kh_split=True,
                    vmem_limit_bytes=48 * 1024 * 1024):
    """Non-initial G_Block forward.  x_nchw: (N, in_ch, H, W) -> (N, out_ch, 2H, 2W)."""
    in_ch, out_ch = params["in_ch"], params["out_ch"]
    N, _, H_in, W_in = x_nchw.shape
    H, W = 2 * H_in, 2 * W_in
    assert W % 8 == 0, "upsampled width must be a multiple of 8 (W_in % 4 == 0)"

    # Row-band size: even, divides H, and (when possible) >=2 bands per image so the
    # row-tile grid axis can feed both v7x TensorCores even at batch 1.
    TR = min(row_tile, H)
    if TR >= H and H >= 4:
        TR = H // 2
    while H % TR != 0 or TR % 2 != 0:
        TR -= 1

    Cin_pad = _round_up(in_ch, 128)
    Cout_pad = _round_up(out_ch, 128)

    # Layout glue, all in compute dtype: NCHW -> NHWC, width-only nearest upsample,
    # single combined 1px-spatial + channel pad.  Row upsample happens in-kernel so
    # the 4x-upsampled image never exists in HBM.
    x = jnp.transpose(x_nchw, (0, 2, 3, 1)).astype(compute_dtype)
    xw = jnp.repeat(x, 2, axis=2)                                  # (N, H_in, W, Cin)
    xw = jnp.pad(xw, ((0, 0), (1, 1), (1, 1), (0, Cin_pad - in_ch)))

    # Equalized-LR scaling: weight * sqrt(2 / fan_in), fan_in = in_ch * kH * kW.
    scale1 = math.sqrt(2.0 / (in_ch * 9))
    scale2 = math.sqrt(2.0 / (out_ch * 9))

    def prep_w(w_hwio, scale, cin, cin_pad):
        w = w_hwio.astype(jnp.float32) * scale
        w = jnp.pad(w, ((0, 0), (0, 0), (0, cin_pad - cin), (0, Cout_pad - out_ch)))
        return w.reshape(9 * cin_pad, Cout_pad).astype(compute_dtype)

    w1 = prep_w(params["w1"], scale1, in_ch, Cin_pad)
    w2 = prep_w(params["w2"], scale2, out_ch, Cout_pad)
    b1 = jnp.pad(params["b1"], (0, Cout_pad - out_ch)).reshape(1, Cout_pad).astype(jnp.float32)
    b2 = jnp.pad(params["b2"], (0, Cout_pad - out_ch)).reshape(1, Cout_pad).astype(jnp.float32)

    kernel = partial(_g_block_kernel, W=W, out_ch=out_ch, row_tile=TR,
                     kh_split=kh_split)
    nsrc = TR // 2 + 2

    out_flat = pl.pallas_call(
        kernel,
        out_shape=jax.ShapeDtypeStruct((N, H * W, Cout_pad), out_dtype),
        grid=(N, H // TR),
        in_specs=[
            # Input stays in HBM; the kernel DMAs only the nsrc-row band it needs.
            pl.BlockSpec(memory_space=pl.ANY),
            pl.BlockSpec((9 * Cin_pad, Cout_pad), lambda n, t: (0, 0)),
            pl.BlockSpec((9 * Cout_pad, Cout_pad), lambda n, t: (0, 0)),
            pl.BlockSpec((1, Cout_pad), lambda n, t: (0, 0)),
            pl.BlockSpec((1, Cout_pad), lambda n, t: (0, 0)),
        ],
        out_specs=pl.BlockSpec((1, TR * W, Cout_pad), lambda n, t: (n, t, 0)),
        scratch_shapes=[
            pltpu.VMEM((nsrc, W + 2, Cin_pad), compute_dtype),      # source row band
            pltpu.VMEM((TR + 2, W + 2, Cout_pad), compute_dtype),   # conv2 padded input
        ],
        compiler_params=pltpu.CompilerParams(
            dimension_semantics=("parallel", "parallel"),
            vmem_limit_bytes=vmem_limit_bytes),
    )(xw, w1, w2, b1, b2)

    # Layout glue: drop channel padding, back to NCHW.
    out = out_flat.reshape(N, H, W, Cout_pad)[:, :, :, :out_ch]
    return jnp.transpose(out, (0, 3, 1, 2))


def init_g_block_params(key, in_ch, out_ch):
    """Deterministic init matching the module: weights ~ N(0,1), biases = 0."""
    k1, k2 = jax.random.split(key)
    w1_oihw = jax.random.normal(k1, (out_ch, in_ch, 3, 3), jnp.float32)
    w2_oihw = jax.random.normal(k2, (out_ch, out_ch, 3, 3), jnp.float32)
    return {"w1": jnp.transpose(w1_oihw, (2, 3, 1, 0)),   # HWIO
            "w2": jnp.transpose(w2_oihw, (2, 3, 1, 0)),
            "b1": jnp.zeros((out_ch,), jnp.float32),
            "b2": jnp.zeros((out_ch,), jnp.float32),
            "in_ch": in_ch, "out_ch": out_ch}


def _reference_forward(params, x_nchw):
    """Plain-JAX f32 reference (NCHW)."""
    in_ch, out_ch = params["in_ch"], params["out_ch"]
    x = x_nchw.astype(jnp.float32)
    x = jnp.repeat(jnp.repeat(x, 2, axis=2), 2, axis=3)

    def conv_lrelu_pn(x, w_hwio, b, scale):
        w_oihw = jnp.transpose(w_hwio, (3, 2, 0, 1)) * scale
        y = lax.conv_general_dilated(
            x, w_oihw, window_strides=(1, 1), padding=((1, 1), (1, 1)),
            dimension_numbers=("NCHW", "OIHW", "NCHW"),
            precision=lax.Precision.HIGHEST)
        y = y + b[None, :, None, None]
        y = jnp.where(y > 0, y, 0.2 * y)
        return y * lax.rsqrt(jnp.mean(y * y, axis=1, keepdims=True) + 1e-8)

    x = conv_lrelu_pn(x, params["w1"], params["b1"], math.sqrt(2.0 / (in_ch * 9)))
    x = conv_lrelu_pn(x, params["w2"], params["b2"], math.sqrt(2.0 / (out_ch * 9)))
    return x


if __name__ == "__main__":
    key = jax.random.PRNGKey(0)
    k_param, k_input = jax.random.split(key)

    batch, in_ch, out_ch, spatial = 2, 4, 8, 8   # upsampled to 16x16 inside
    params = init_g_block_params(k_param, in_ch, out_ch)
    x = jax.random.normal(k_input, (batch, in_ch, spatial, spatial), jnp.float32)

    ref = jax.block_until_ready(_reference_forward(params, x))

    # f32 MXU path, kh-split conv: tight numerical check against the f32 reference.
    out_f32 = jax.block_until_ready(
        g_block_forward(params, x, compute_dtype=jnp.float32))
    assert out_f32.shape == (batch, out_ch, 2 * spatial, 2 * spatial), out_f32.shape
    assert jnp.allclose(out_f32, ref, atol=1e-3, rtol=1e-3), (
        float(jnp.max(jnp.abs(out_f32 - ref))))

    # f32 MXU path, single 9*C-wide K matmul (v6e-preferred variant).
    out_f32_k = jax.block_until_ready(
        g_block_forward(params, x, compute_dtype=jnp.float32, kh_split=False))
    assert jnp.allclose(out_f32_k, ref, atol=1e-3, rtol=1e-3), (
        float(jnp.max(jnp.abs(out_f32_k - ref))))

    # Default bf16 MXU-input path (f32 accumulate/epilogue): looser tolerance.
    out_bf16 = jax.block_until_ready(g_block_forward(params, x))
    assert out_bf16.shape == (batch, out_ch, 2 * spatial, 2 * spatial), out_bf16.shape
    assert jnp.allclose(out_bf16, ref, atol=5e-2, rtol=5e-2), (
        float(jnp.max(jnp.abs(out_bf16 - ref))))

    print("KERNEL_OK")
</pallas_src>

<mosaic_0001>
module attributes {stable_mosaic.version = 11 : i64} {
  func.func @_g_block_kernel(%arg0: i32, %arg1: i32, %arg2: memref<2x10x18x128xf32, #tpu.memory_space<any>>, %arg3: memref<1152x128xf32, #tpu.memory_space<vmem>>, %arg4: memref<1152x128xf32, #tpu.memory_space<vmem>>, %arg5: memref<1x128xf32, #tpu.memory_space<vmem>>, %arg6: memref<1x128xf32, #tpu.memory_space<vmem>>, %arg7: memref<1x128x128xf32, #tpu.memory_space<vmem>>, %arg8: memref<6x18x128xf32, #tpu.memory_space<vmem>>, %arg9: memref<10x18x128xf32, #tpu.memory_space<vmem>>) attributes {dimension_semantics = [#tpu.dimension_semantics<parallel>, #tpu.dimension_semantics<parallel>], iteration_bounds = array<i64: 2, 2>, scalar_prefetch = 0 : i64, scratch_operands = 2 : i64, tpu.core_type = #tpu.core_type<tc>, window_params = [{}, {pipeline_mode = #tpu.pipeline_mode<synchronous>, transform_indices = @transform_1, window_bounds = array<i64: 1152, 128>}, {pipeline_mode = #tpu.pipeline_mode<synchronous>, transform_indices = @transform_2, window_bounds = array<i64: 1152, 128>}, {pipeline_mode = #tpu.pipeline_mode<synchronous>, transform_indices = @transform_3, window_bounds = array<i64: 1, 128>}, {pipeline_mode = #tpu.pipeline_mode<synchronous>, transform_indices = @transform_4, window_bounds = array<i64: 1, 128>}, {transform_indices = @transform_5, window_bounds = array<i64: 1, 128, 128>}]} {
    %c4_i32 = arith.constant 4 : i32
    %0 = arith.muli %arg1, %c4_i32 : i32
    "tpu.region"() ({
      %99 = tpu.sem_alloc : memref<!tpu.dma_semaphore, #tpu.memory_space<semaphore_mem>>
      %c0_i32_45 = arith.constant 0 : i32
      %c0_i32_46 = arith.constant 0 : i32
      %100 = tpu.memref_slice %arg2[%arg0, %0, %c0_i32_45, %c0_i32_46] : memref<2x10x18x128xf32, #tpu.memory_space<any>> -> memref<1x6x18x128xf32, #tpu.memory_space<any>>
      %101 = tpu.memref_squeeze %100 : memref<1x6x18x128xf32, #tpu.memory_space<any>> -> memref<6x18x128xf32, #tpu.memory_space<any>>
      tpu.enqueue_dma source(%101 : memref<6x18x128xf32, #tpu.memory_space<any>>) target(%arg8 : memref<6x18x128xf32, #tpu.memory_space<vmem>>) target_semaphore(%99 : memref<!tpu.dma_semaphore, #tpu.memory_space<semaphore_mem>>)
      %c0_i32_47 = arith.constant 0 : i32
      %c0_i32_48 = arith.constant 0 : i32
      %102 = tpu.memref_slice %arg2[%arg0, %0, %c0_i32_47, %c0_i32_48] : memref<2x10x18x128xf32, #tpu.memory_space<any>> -> memref<1x6x18x128xf32, #tpu.memory_space<any>>
      %103 = tpu.memref_squeeze %102 : memref<1x6x18x128xf32, #tpu.memory_space<any>> -> memref<6x18x128xf32, #tpu.memory_space<any>>
      tpu.wait_dma2 semaphore(%99 : memref<!tpu.dma_semaphore, #tpu.memory_space<semaphore_mem>>) src(%103 : memref<6x18x128xf32, #tpu.memory_space<any>>) dst(%arg8 : memref<6x18x128xf32, #tpu.memory_space<vmem>>)
      tpu.yield
    }) : () -> ()
    %c0 = arith.constant 0 : index
    %c0_0 = arith.constant 0 : index
    %c0_1 = arith.constant 0 : index
    %1 = vector.load %arg8[%c0, %c0_0, %c0_1] : memref<6x18x128xf32, #tpu.memory_space<vmem>>, vector<6x18x128xf32>
    %2 = vector.shape_cast %1 : vector<6x18x128xf32> to vector<6x1x18x128xf32>
    %3 = vector.shape_cast %2 : vector<6x1x18x128xf32> to vector<6x1x18x128xf32>
    %4 = vector.broadcast %3 : vector<6x1x18x128xf32> to vector<6x2x18x128xf32>
    %5 = vector.shape_cast %4 : vector<6x2x18x128xf32> to vector<12x18x128xf32>
    %6 = vector.extract_strided_slice %5 {offsets = [0, 0, 0], sizes = [10, 16, 128], strides = [1, 1, 1]} : vector<12x18x128xf32> to vector<10x16x128xf32>
    %7 = vector.extract_strided_slice %5 {offsets = [0, 1, 0], sizes = [10, 16, 128], strides = [1, 1, 1]} : vector<12x18x128xf32> to vector<10x16x128xf32>
    %8 = vector.extract_strided_slice %5 {offsets = [0, 2, 0], sizes = [10, 16, 128], strides = [1, 1, 1]} : vector<12x18x128xf32> to vector<10x16x128xf32>
    %9 = tpu.concatenate %6, %7, %8 in 2 : vector<10x16x128xf32>, vector<10x16x128xf32>, vector<10x16x128xf32> -> vector<10x16x384xf32>
    %10 = vector.shape_cast %9 : vector<10x16x384xf32> to vector<160x384xf32>
    %c0_2 = arith.constant 0 : index
    %c0_3 = arith.constant 0 : index
    %11 = vector.load %arg3[%c0_2, %c0_3] : memref<1152x128xf32, #tpu.memory_space<vmem>>, vector<384x128xf32>
    %cst = arith.constant dense<0.000000e+00> : vector<160x128xf32>
    %12 = tpu.matmul %10, %11, %cst {dimension_numbers = #tpu.dot_dimension_numbers<[1], [0], [0], [1], [0, 0, 1, 1], [], []>} : vector<160x384xf32>, vector<384x128xf32>, vector<160x128xf32> -> vector<160x128xf32>
    %13 = vector.extract_strided_slice %5 {offsets = [1, 0, 0], sizes = [10, 16, 128], strides = [1, 1, 1]} : vector<12x18x128xf32> to vector<10x16x128xf32>
    %14 = vector.extract_strided_slice %5 {offsets = [1, 1, 0], sizes = [10, 16, 128], strides = [1, 1, 1]} : vector<12x18x128xf32> to vector<10x16x128xf32>
    %15 = vector.extract_strided_slice %5 {offsets = [1, 2, 0], sizes = [10, 16, 128], strides = [1, 1, 1]} : vector<12x18x128xf32> to vector<10x16x128xf32>
    %16 = tpu.concatenate %13, %14, %15 in 2 : vector<10x16x128xf32>, vector<10x16x128xf32>, vector<10x16x128xf32> -> vector<10x16x384xf32>
    %17 = vector.shape_cast %16 : vector<10x16x384xf32> to vector<160x384xf32>
    %c384 = arith.constant 384 : index
    %c0_4 = arith.constant 0 : index
    %18 = vector.load %arg3[%c384, %c0_4] : memref<1152x128xf32, #tpu.memory_space<vmem>>, vector<384x128xf32>
    %cst_5 = arith.constant dense<0.000000e+00> : vector<160x128xf32>
    %19 = tpu.matmul %17, %18, %cst_5 {dimension_numbers = #tpu.dot_dimension_numbers<[1], [0], [0], [1], [0, 0, 1, 1], [], []>} : vector<160x384xf32>, vector<384x128xf32>, vector<160x128xf32> -> vector<160x128xf32>
    %20 = arith.addf %12, %19 : vector<160x128xf32>
    %21 = vector.extract_strided_slice %5 {offsets = [2, 0, 0], sizes = [10, 16, 128], strides = [1, 1, 1]} : vector<12x18x128xf32> to vector<10x16x128xf32>
    %22 = vector.extract_strided_slice %5 {offsets = [2, 1, 0], sizes = [10, 16, 128], strides = [1, 1, 1]} : vector<12x18x128xf32> to vector<10x16x128xf32>
    %23 = vector.extract_strided_slice %5 {offsets = [2, 2, 0], sizes = [10, 16, 128], strides = [1, 1, 1]} : vector<12x18x128xf32> to vector<10x16x128xf32>
    %24 = tpu.concatenate %21, %22, %23 in 2 : vector<10x16x128xf32>, vector<10x16x128xf32>, vector<10x16x128xf32> -> vector<10x16x384xf32>
    %25 = vector.shape_cast %24 : vector<10x16x384xf32> to vector<160x384xf32>
    %c768 = arith.constant 768 : index
    %c0_6 = arith.constant 0 : index
    %26 = vector.load %arg3[%c768, %c0_6] : memref<1152x128xf32, #tpu.memory_space<vmem>>, vector<384x128xf32>
    %cst_7 = arith.constant dense<0.000000e+00> : vector<160x128xf32>
    %27 = tpu.matmul %25, %26, %cst_7 {dimension_numbers = #tpu.dot_dimension_numbers<[1], [0], [0], [1], [0, 0, 1, 1], [], []>} : vector<160x384xf32>, vector<384x128xf32>, vector<160x128xf32> -> vector<160x128xf32>
    %28 = arith.addf %20, %27 : vector<160x128xf32>
    %c0_8 = arith.constant 0 : index
    %c0_9 = arith.constant 0 : index
    %29 = vector.load %arg5[%c0_8, %c0_9] : memref<1x128xf32, #tpu.memory_space<vmem>>, vector<1x128xf32>
    %30 = vector.broadcast %29 : vector<1x128xf32> to vector<160x128xf32>
    %31 = arith.addf %28, %30 : vector<160x128xf32>
    %cst_10 = arith.constant 2.000000e-01 : f32
    %32 = vector.broadcast %cst_10 : f32 to vector<160x128xf32>
    %33 = arith.mulf %32, %31 : vector<160x128xf32>
    %34 = arith.maximumf %31, %33 : vector<160x128xf32>
    %35 = arith.mulf %34, %34 : vector<160x128xf32>
    %cst_11 = arith.constant dense<0.000000e+00> : vector<160xf32>
    %36 = vector.multi_reduction <add>, %35, %cst_11 [1] : vector<160x128xf32> to vector<160xf32>
    %37 = vector.shape_cast %36 : vector<160xf32> to vector<160x1xf32>
    %cst_12 = arith.constant 1.250000e-01 : f32
    %38 = vector.broadcast %cst_12 : f32 to vector<160x1xf32>
    %39 = arith.mulf %37, %38 : vector<160x1xf32>
    %cst_13 = arith.constant 9.99999993E-9 : f32
    %40 = vector.broadcast %cst_13 : f32 to vector<160x1xf32>
    %41 = arith.addf %39, %40 : vector<160x1xf32>
    %42 = math.rsqrt %41 : vector<160x1xf32>
    %43 = vector.broadcast %42 : vector<160x1xf32> to vector<160x128xf32>
    %44 = arith.mulf %34, %43 : vector<160x128xf32>
    %cst_14 = arith.constant 0.000000e+00 : f32
    %45 = vector.broadcast %cst_14 : f32 to vector<10x1x128xf32>
    %c0_15 = arith.constant 0 : index
    %c0_16 = arith.constant 0 : index
    %c0_17 = arith.constant 0 : index
    %46 = vector.load %arg9[%c0_15, %c0_16, %c0_17] : memref<10x18x128xf32, #tpu.memory_space<vmem>>, vector<10x1x128xf32>
    tpu.vector_store %arg9[%c0_15, %c0_16, %c0_17], %45 {strides = array<i32>} : memref<10x18x128xf32, #tpu.memory_space<vmem>>, vector<10x1x128xf32>,
    %c0_18 = arith.constant 0 : index
    %c17 = arith.constant 17 : index
    %c0_19 = arith.constant 0 : index
    %47 = vector.load %arg9[%c0_18, %c17, %c0_19] : memref<10x18x128xf32, #tpu.memory_space<vmem>>, vector<10x1x128xf32>
    tpu.vector_store %arg9[%c0_18, %c17, %c0_19], %45 {strides = array<i32>} : memref<10x18x128xf32, #tpu.memory_space<vmem>>, vector<10x1x128xf32>,
    %48 = vector.shape_cast %44 : vector<160x128xf32> to vector<10x16x128xf32>
    %c0_20 = arith.constant 0 : index
    %c1 = arith.constant 1 : index
    %c0_21 = arith.constant 0 : index
    %49 = vector.load %arg9[%c0_20, %c1, %c0_21] : memref<10x18x128xf32, #tpu.memory_space<vmem>>, vector<10x16x128xf32>
    tpu.vector_store %arg9[%c0_20, %c1, %c0_21], %48 {strides = array<i32>} : memref<10x18x128xf32, #tpu.memory_space<vmem>>, vector<10x16x128xf32>,
    %c0_i32 = arith.constant 0 : i32
    %50 = arith.cmpi eq, %arg1, %c0_i32 : i32
    %51 = arith.extui %50 : i1 to i32
    %c0_i32_22 = arith.constant 0 : i32
    %52 = arith.cmpi ne, %51, %c0_i32_22 : i32
    scf.if %52 {
      %cst_45 = arith.constant 0.000000e+00 : f32
      %99 = vector.broadcast %cst_45 : f32 to vector<1x18x128xf32>
      %c0_46 = arith.constant 0 : index
      %c0_47 = arith.constant 0 : index
      %c0_48 = arith.constant 0 : index
      %100 = vector.load %arg9[%c0_46, %c0_47, %c0_48] : memref<10x18x128xf32, #tpu.memory_space<vmem>>, vector<1x18x128xf32>
      tpu.vector_store %arg9[%c0_46, %c0_47, %c0_48], %99 {strides = array<i32>} : memref<10x18x128xf32, #tpu.memory_space<vmem>>, vector<1x18x128xf32>,
    } else {
    }
    %c1_i32 = arith.constant 1 : i32
    %53 = arith.cmpi eq, %arg1, %c1_i32 : i32
    %54 = arith.extui %53 : i1 to i32
    %c0_i32_23 = arith.constant 0 : i32
    %55 = arith.cmpi ne, %54, %c0_i32_23 : i32
    scf.if %55 {
      %cst_45 = arith.constant 0.000000e+00 : f32
      %99 = vector.broadcast %cst_45 : f32 to vector<1x18x128xf32>
      %c9 = arith.constant 9 : index
      %c0_46 = arith.constant 0 : index
      %c0_47 = arith.constant 0 : index
      %100 = vector.load %arg9[%c9, %c0_46, %c0_47] : memref<10x18x128xf32, #tpu.memory_space<vmem>>, vector<1x18x128xf32>
      tpu.vector_store %arg9[%c9, %c0_46, %c0_47], %99 {strides = array<i32>} : memref<10x18x128xf32, #tpu.memory_space<vmem>>, vector<1x18x128xf32>,
    } else {
    }
    %c0_24 = arith.constant 0 : index
    %c0_25 = arith.constant 0 : index
    %c0_26 = arith.constant 0 : index
    %56 = vector.load %arg9[%c0_24, %c0_25, %c0_26] : memref<10x18x128xf32, #tpu.memory_space<vmem>>, vector<10x18x128xf32>
    %57 = vector.extract_strided_slice %56 {offsets = [0, 0, 0], sizes = [8, 16, 128], strides = [1, 1, 1]} : vector<10x18x128xf32> to vector<8x16x128xf32>
    %58 = vector.extract_strided_slice %56 {offsets = [0, 1, 0], sizes = [8, 16, 128], strides = [1, 1, 1]} : vector<10x18x128xf32> to vector<8x16x128xf32>
    %59 = vector.extract_strided_slice %56 {offsets = [0, 2, 0], sizes = [8, 16, 128], strides = [1, 1, 1]} : vector<10x18x128xf32> to vector<8x16x128xf32>
    %60 = tpu.concatenate %57, %58, %59 in 2 : vector<8x16x128xf32>, vector<8x16x128xf32>, vector<8x16x128xf32> -> vector<8x16x384xf32>
    %61 = vector.shape_cast %60 : vector<8x16x384xf32> to vector<128x384xf32>
    %c0_27 = arith.constant 0 : index
    %c0_28 = arith.constant 0 : index
    %62 = vector.load %arg4[%c0_27, %c0_28] : memref<1152x128xf32, #tpu.memory_space<vmem>>, vector<384x128xf32>
    %cst_29 = arith.constant dense<0.000000e+00> : vector<128x128xf32>
    %63 = tpu.matmul %61, %62, %cst_29 {dimension_numbers = #tpu.dot_dimension_numbers<[1], [0], [0], [1], [0, 0, 1, 1], [], []>} : vector<128x384xf32>, vector<384x128xf32>, vector<128x128xf32> -> vector<128x128xf32>
    %64 = vector.extract_strided_slice %56 {offsets = [1, 0, 0], sizes = [8, 16, 128], strides = [1, 1, 1]} : vector<10x18x128xf32> to vector<8x16x128xf32>
    %65 = vector.extract_strided_slice %56 {offsets = [1, 1, 0], sizes = [8, 16, 128], strides = [1, 1, 1]} : vector<10x18x128xf32> to vector<8x16x128xf32>
    %66 = vector.extract_strided_slice %56 {offsets = [1, 2, 0], sizes = [8, 16, 128], strides = [1, 1, 1]} : vector<10x18x128xf32> to vector<8x16x128xf32>
    %67 = tpu.concatenate %64, %65, %66 in 2 : vector<8x16x128xf32>, vector<8x16x128xf32>, vector<8x16x128xf32> -> vector<8x16x384xf32>
    %68 = vector.shape_cast %67 : vector<8x16x384xf32> to vector<128x384xf32>
    %c384_30 = arith.constant 384 : index
    %c0_31 = arith.constant 0 : index
    %69 = vector.load %arg4[%c384_30, %c0_31] : memref<1152x128xf32, #tpu.memory_space<vmem>>, vector<384x128xf32>
    %cst_32 = arith.constant dense<0.000000e+00> : vector<128x128xf32>
    %70 = tpu.matmul %68, %69, %cst_32 {dimension_numbers = #tpu.dot_dimension_numbers<[1], [0], [0], [1], [0, 0, 1, 1], [], []>} : vector<128x384xf32>, vector<384x128xf32>, vector<128x128xf32> -> vector<128x128xf32>
    %71 = arith.addf %63, %70 : vector<128x128xf32>
    %72 = vector.extract_strided_slice %56 {offsets = [2, 0, 0], sizes = [8, 16, 128], strides = [1, 1, 1]} : vector<10x18x128xf32> to vector<8x16x128xf32>
    %73 = vector.extract_strided_slice %56 {offsets = [2, 1, 0], sizes = [8, 16, 128], strides = [1, 1, 1]} : vector<10x18x128xf32> to vector<8x16x128xf32>
    %74 = vector.extract_strided_slice %56 {offsets = [2, 2, 0], sizes = [8, 16, 128], strides = [1, 1, 1]} : vector<10x18x128xf32> to vector<8x16x128xf32>
    %75 = tpu.concatenate %72, %73, %74 in 2 : vector<8x16x128xf32>, vector<8x16x128xf32>, vector<8x16x128xf32> -> vector<8x16x384xf32>
    %76 = vector.shape_cast %75 : vector<8x16x384xf32> to vector<128x384xf32>
    %c768_33 = arith.constant 768 : index
    %c0_34 = arith.constant 0 : index
    %77 = vector.load %arg4[%c768_33, %c0_34] : memref<1152x128xf32, #tpu.memory_space<vmem>>, vector<384x128xf32>
    %cst_35 = arith.constant dense<0.000000e+00> : vector<128x128xf32>
    %78 = tpu.matmul %76, %77, %cst_35 {dimension_numbers = #tpu.dot_dimension_numbers<[1], [0], [0], [1], [0, 0, 1, 1], [], []>} : vector<128x384xf32>, vector<384x128xf32>, vector<128x128xf32> -> vector<128x128xf32>
    %79 = arith.addf %71, %78 : vector<128x128xf32>
    %c0_36 = arith.constant 0 : index
    %c0_37 = arith.constant 0 : index
    %80 = vector.load %arg6[%c0_36, %c0_37] : memref<1x128xf32, #tpu.memory_space<vmem>>, vector<1x128xf32>
    %81 = vector.broadcast %80 : vector<1x128xf32> to vector<128x128xf32>
    %82 = arith.addf %79, %81 : vector<128x128xf32>
    %cst_38 = arith.constant 2.000000e-01 : f32
    %83 = vector.broadcast %cst_38 : f32 to vector<128x128xf32>
    %84 = arith.mulf %83, %82 : vector<128x128xf32>
    %85 = arith.maximumf %82, %84 : vector<128x128xf32>
    %86 = arith.mulf %85, %85 : vector<128x128xf32>
    %cst_39 = arith.constant dense<0.000000e+00> : vector<128xf32>
    %87 = vector.multi_reduction <add>, %86, %cst_39 [1] : vector<128x128xf32> to vector<128xf32>
    %88 = vector.shape_cast %87 : vector<128xf32> to vector<128x1xf32>
    %cst_40 = arith.constant 1.250000e-01 : f32
    %89 = vector.broadcast %cst_40 : f32 to vector<128x1xf32>
    %90 = arith.mulf %88, %89 : vector<128x1xf32>
    %cst_41 = arith.constant 9.99999993E-9 : f32
    %91 = vector.broadcast %cst_41 : f32 to vector<128x1xf32>
    %92 = arith.addf %90, %91 : vector<128x1xf32>
    %93 = math.rsqrt %92 : vector<128x1xf32>
    %94 = vector.broadcast %93 : vector<128x1xf32> to vector<128x128xf32>
    %95 = arith.mulf %85, %94 : vector<128x128xf32>
    %c0_42 = arith.constant 0 : index
    %c0_43 = arith.constant 0 : index
    %c0_44 = arith.constant 0 : index
    %96 = vector.load %arg7[%c0_42, %c0_43, %c0_44] : memref<1x128x128xf32, #tpu.memory_space<vmem>>, vector<1x128x128xf32>
    %97 = vector.shape_cast %96 : vector<1x128x128xf32> to vector<128x128xf32>
    %98 = vector.shape_cast %95 : vector<128x128xf32> to vector<1x128x128xf32>
    tpu.vector_store %arg7[%c0_42, %c0_43, %c0_44], %98 {strides = array<i32>} : memref<1x128x128xf32, #tpu.memory_space<vmem>>, vector<1x128x128xf32>,
    return
  }
  func.func @transform_1(%arg0: i32, %arg1: i32) -> (i32, i32) {
    %c0_i32 = arith.constant 0 : i32
    %c0_i32_0 = arith.constant 0 : i32
    %c0_i32_1 = arith.constant 0 : i32
    return %c0_i32, %c0_i32_0 : i32, i32
  }
  func.func @transform_2(%arg0: i32, %arg1: i32) -> (i32, i32) {
    %c0_i32 = arith.constant 0 : i32
    %c0_i32_0 = arith.constant 0 : i32
    %c0_i32_1 = arith.constant 0 : i32
    return %c0_i32, %c0_i32_0 : i32, i32
  }
  func.func @transform_3(%arg0: i32, %arg1: i32) -> (i32, i32) {
    %c0_i32 = arith.constant 0 : i32
    %c0_i32_0 = arith.constant 0 : i32
    %c0_i32_1 = arith.constant 0 : i32
    return %c0_i32, %c0_i32_0 : i32, i32
  }
  func.func @transform_4(%arg0: i32, %arg1: i32) -> (i32, i32) {
    %c0_i32 = arith.constant 0 : i32
    %c0_i32_0 = arith.constant 0 : i32
    %c0_i32_1 = arith.constant 0 : i32
    return %c0_i32, %c0_i32_0 : i32, i32
  }
  func.func @transform_5(%arg0: i32, %arg1: i32) -> (i32, i32, i32) {
    %c0_i32 = arith.constant 0 : i32
    %c0_i32_0 = arith.constant 0 : i32
    return %arg0, %arg1, %c0_i32 : i32, i32, i32
  }
}

</mosaic_0001>

<bundles_post_ra>
// kernel: tpu_custom_call.1
= control target key start
LH: loop header
LB: loop body
LE: loop exit
PB: predicated region body
PF: predicated region fallthrough
CT: control target
= control target key end

     0   :  { %10 = vsyncpa [#allocation5], 0  ;;  %s6033_s0 = inlined_call_operand.vmem [shape: f32[2,10,18,128], index: 0, kind: input, shape index: {}]   ;;  %s6034_s1 = inlined_call_operand.hbm [shape: f32[1152,128], index: 1, kind: input, shape index: {}]   ;;  %s6035_s2 = inlined_call_operand.hbm [shape: f32[1152,128], index: 2, kind: input, shape index: {}]   ;;  %s6036_s3 = inlined_call_operand.vmem [shape: f32[1,128], index: 3, kind: input, shape index: {}]   ;;  %s6037_s4 = inlined_call_operand.vmem [shape: f32[1,128], index: 4, kind: input, shape index: {}]   ;;  %s6038_s5 = inlined_call_operand.hbm [shape: f32[2,256,128], index: 5, kind: output, shape index: {}]  }
   0x1   :  { %11 = vsyncpa [#allocation8], 0 }
   0x2   :  { %12 = vsyncpa [#allocation6], 0 }
   0x3   :  { %14 = vsyncpa [#allocation6 + $0x1], 0  ;;  %s4592_s18 = smov 0   ;;  %s4594_s19 = smov 0  }
   0x4   :  { %s4596_s20 = smov 0   ;;  %s4598_s21 = smov 0  }
   0x5   :  { %s4600_s22 = smov 0   ;;  %s4602_s23 = smov 0  }
   0x6   :  { %s4604_s24 = smov 0   ;;  %s4606_s25 = smov 0  }
   0x7 LB: > { %s3400_s26 = sadd.s32 4294967295, %s4550_s25   ;;  %s3401_s27 = sadd.s32 4294967294, %s4550_s25   ;;  %s4550_s25 = sphi %s4606_s25, %s20_s25   ;;  %s4546_s24 = sphi %s4604_s24, %s6056_s24   ;;  %s4542_s23 = sphi %s4602_s23, %s6055_s23   ;;  %s4538_s22 = sphi %s4600_s22, %s6054_s22   ;;  %s4534_s21 = sphi %s4598_s21, %s6053_s21   ;;  %s4530_s20 = sphi %s4596_s20, %s6052_s20   ;;  %s4526_s19 = sphi %s4594_s19, %s6051_s19   ;;  %s4522_s18 = sphi %s4592_s18, %s6050_s18  }
   0x8   : > { %s29_s28 = sadd.s32 1, %s4542_s23  ;;  %s32_s29 = sadd.s32 1, %s4546_s24 }
   0x9   : > { %p30_p0 = scmp.ge.s32.totalorder %s29_s28, 2  ;;  %s125_s30 = sadd.s32 1, %s4530_s20 }
   0xa   : > { %p135_p1 = scmp.ne.s32.totalorder %s4530_s20, %s4526_s19  ;;  %p136_p2 = scmp.eq.s32.totalorder %s3400_s26, 3 }
   0xb   : > { %s6058_s28 = smov (%p30_p0, %s29_s28), 0  ;;  %s6060_s29 = smov (!%p30_p0, %s32_s29), %s4546_s24 }
   0xc   : > { %s121_s6 = ssub.s32 %s4542_s23, %s6058_s28  ;;  %p4644_p3 = por %p136_p2, %p135_p1 }
   0xd   : > { %p34_p4 = scmp.ge.s32.totalorder %s6060_s29, 2  ;;  %p141_p5 = scmp.ne.s32.totalorder %s4526_s19, %s4522_s18 }
   0xe   : > { %p142_p6 = scmp.eq.s32.totalorder %s3401_s27, 3  ;;  %p3402_p7 = scmp.ge.s32.totalorder %s4550_s25, 1 }
   0xf   : > { %s6062_s29 = smov (%p34_p4, %s6060_s29), 0  ;;  %p149_p9 = scmp.lt.s32.totalorder %s4550_s25, 5 }
  0x10   : > { %6042 = sst [smem:[#allocation16_spill]] %s6062_s29  ;;  %p4653_p8 = por %p142_p6, %p141_p5 }
  0x11   : > { %s120_s9 = ssub.s32 %s4546_s24, %s6062_s29  ;;  %p4660_p10 = pnand %p3402_p7, %p149_p9 }
  0x12   : > { %s122_s10 = sor.u32 %s121_s6, %s120_s9  ;;  %p4664_p12 = scmp.eq.s32.totalorder %s3400_s26, 0 }
  0x13   : > { %p123_p11 = scmp.eq.s32.totalorder %s122_s10, 0  ;;  %p4235_p13 = pneg %p4660_p10 }
  0x14   : > { %s4552_s14 = smov [#allocation4]  }
  0x15   : > { %s4671_s13 = scalar_select %p123_p11, %s4530_s20, %s125_s30  }
  0x16   : > { %s161_s15 = sshll.u32 %s4552_s14, 4  ;;  %p4675_p0 = pnand %p4664_p12, %p4235_p13  ;;  %s162_s15 = int_to_ptr.vmem [resolvable:$true] %s161_s15 }
  0x17   : > { %s4407_s17 = scalar_lea.vmem %s162_s15, 18432  ;;  %p4415_p6 = scmp.lt.s32.totalorder %s162_s15, %s162_s15 }
  0x18   : > { %p4398_p1 = pneg %p4675_p0  ;;  %p4408_p2 = scmp.ne.s32.totalorder %s162_s15, %s4407_s17 }
  0x19   : > { %p4416_p7 = scmp.lt.s32.totalorder %s4407_s17, %s4407_s17 }
  0x1a   : > { %p4410_p4 = pnand %p4408_p2, %p4398_p1 }
  0x1b   : > { %p4417_p9 = por %p4416_p7, %p4415_p6 }
  0x1c   : > { %p4411_p5 = pneg %p4410_p4 }
  0x1e   : > { %p4418_p11 = pnand %p4417_p9, %p4411_p5 }
  0x20   : > { %4421 = shalt.err (!%p4418_p11)
}
  0x21   : > { %s4553_s26 = smov 128   ;;  %s4554_s27 = smov 8  }
  0x22   : > { %4238 = dma.hbm_to_vmem [thread:$0]  (!%p4675_p0), %s6034_s1, 18432, %s162_s15, [#allocation5], %s4553_s26, %s4553_s26, %s4554_s27  }
  0x23   : > { %s4555_s9 = smov [#allocation7]  }
  0x24   : > { %s174_s10 = sshll.u32 %s4555_s9, 4  ;;  %s175_s10 = int_to_ptr.vmem [resolvable:$true] %s174_s10 }
  0x25   : > { %s4433_s14 = scalar_lea.vmem %s175_s10, 18432  ;;  %p4441_p5 = scmp.lt.s32.totalorder %s175_s10, %s175_s10 }
  0x26   : > { %p4434_p13 = scmp.ne.s32.totalorder %s175_s10, %s4433_s14  ;;  %p4442_p6 = scmp.lt.s32.totalorder %s4433_s14, %s4433_s14 }
  0x28   : > { %p4436_p2 = pnand %p4434_p13, %p4398_p1  ;;  %p4443_p7 = por %p4442_p6, %p4441_p5 }
  0x2a   : > { %p4437_p4 = pneg %p4436_p2 }
  0x2c   : > { %p4444_p9 = pnand %p4443_p7, %p4437_p4 }
  0x2e   : > { %4447 = shalt.err (!%p4444_p9)
}
  0x2f   : > { %4241 = dma.hbm_to_vmem [thread:$0]  (!%p4675_p0), %s6035_s2, 18432, %s175_s10, [#allocation8], %s4553_s26, %s4553_s26, %s4554_s27  }
  0x30   : > { %196 = sbr.rel (%p4660_p10) target bundleno = 1306 (0x51a), region = 36 }
  0x35   : > { %4507 = dma.done.wait (%p4664_p12), [#allocation5], 18432  }
  0x36   : > { %4509 = vsyncadd (%p4664_p12), [#allocation5], 4294948864 }
  0x37   : > { %4511 = dma.done.wait (%p4664_p12), [#allocation8], 18432  }
  0x38   : > { %4513 = vsyncadd (%p4664_p12), [#allocation8], 4294948864  ;;  %s218_s15 = sand.u32 1, %s4526_s19  }
  0x39   : > { %s3408_s29 = sshll.u32 %s218_s15, 7 }
  0x3a   : > { %s4710_s16 = scalar_lea.vmem [#allocation9], %s3408_s29 }
  0x3b   : > { %s3410_s11 = smul.u32 96, %s4534_s21 }
  0x3c   : > { %s224_s26 = smul.u32 240, %s4538_s22 }
  0x3e   : > { %s225_s27 = sadd.s32 %s3410_s11, %s224_s26 }
  0x3f   : > { %s4717_s9 = scalar_lea.vmem %s6033_s0, %s225_s27 }
  0x40   : > { %v275_v0 = vld [vmem:[%s4717_s9] sm:$0xff]  ;;  %v277_v1 = vld [vmem:[%s4717_s9 + $0x8] sm:$0xff]  ;;  %v279_v2 = vld [vmem:[%s4717_s9 + $0x18] sm:$0xff] }
  0x41   : > { %276 = vst [vmem:[#allocation2] sm:$0xff] %v275_v0  ;;  %278 = vst [vmem:[#allocation2 + $0x50] sm:$0xff] %v277_v1  ;;  %v281_v3 = vld [vmem:[%s4717_s9 + $0x20] sm:$0xff]  ;;  %v283_v4 = vld [vmem:[%s4717_s9 + $0x30] sm:$0xff] }
  0x42   : > { %280 = vst [vmem:[#allocation2 + $0x58] sm:$0xff] %v279_v2  ;;  %v285_v5 = vld [vmem:[%s4717_s9 + $0x38] sm:$0xff]  ;;  %282 = vst [vmem:[#allocation2 + $0x80] sm:$0xff] %v281_v3  ;;  %v287_v6 = vld [vmem:[%s4717_s9 + $0x48] sm:$0xff] }
  0x43   : > { %284 = vst [vmem:[#allocation2 + $0x30] sm:$0xff] %v283_v4  ;;  %286 = vst [vmem:[#allocation2 + $0x8] sm:$0xff] %v285_v5  ;;  %v289_v7 = vld [vmem:[%s4717_s9 + $0x50] sm:$0xff]  ;;  %v291_v8 = vld [vmem:[%s4717_s9 + $0x60] sm:$0xff] }
  0x44   : > { %288 = vst [vmem:[#allocation2 + $0x40] sm:$0xff] %v287_v6  ;;  %290 = vst [vmem:[#allocation2 + $0x70] sm:$0xff] %v289_v7  ;;  %v293_v9 = vld [vmem:[%s4717_s9 + $0x68] sm:$0xff]  ;;  %v295_v10 = vld [vmem:[%s4717_s9 + $0x78] sm:$0xff] }
  0x45   : > { %292 = vst [vmem:[#allocation2 + $0x88] sm:$0xff] %v291_v8  ;;  %v297_v11 = vld [vmem:[%s4717_s9 + $0x80] sm:$0xff]  ;;  %294 = vst [vmem:[#allocation2 + $0x60] sm:$0xff] %v293_v9  ;;  %v3411_v12 = vld [vmem:[%s4717_s9 + $0x10] sm:$0x3] }
  0x46   : > { %296 = vst [vmem:[#allocation2 + $0x78] sm:$0xff] %v295_v10  ;;  %298 = vst [vmem:[#allocation2 + $0x38] sm:$0xff] %v297_v11  ;;  %v3412_v13 = vld [vmem:[%s4717_s9 + $0x28] sm:$0x3]  ;;  %v3413_v14 = vld [vmem:[%s4717_s9 + $0x40] sm:$0x3] }
  0x47   : > { %310 = vst [vmem:[#allocation2 + $0x18] sm:$0x3] %v3411_v12  ;;  %312 = vst [vmem:[#allocation2 + $0x68] sm:$0x3] %v3412_v13  ;;  %v3414_v15 = vld [vmem:[%s4717_s9 + $0x58] sm:$0x3] }
  0x48   : > { %314 = vst [vmem:[#allocation2 + $0x48] sm:$0x3] %v3413_v14  ;;  %v3415_v16 = vld [vmem:[%s4717_s9 + $0x70] sm:$0x3]  ;;  %v3416_v17 = vld [vmem:[%s4717_s9 + $0x88] sm:$0x3] }
  0x49   : > { %316 = vst [vmem:[#allocation2 + $0x20] sm:$0x3] %v3414_v15  ;;  %318 = vst [vmem:[#allocation2 + $0x28] sm:$0x3] %v3415_v16 }
  0x4a   : > { %320 = vst [vmem:[#allocation2 + $0x10] sm:$0x3] %v3416_v17 }
  0x4b   : > { %324 = vsyncadd [#allocation10], 1728 }
  0x4c   : > { %4514 = dma.done.wait [#allocation10], 1728 }
  0x4d   : > { %4515 = vsyncadd [#allocation10], 4294965568  ;;  %v546_v18 = vld [vmem:[#allocation4 + $0x2f8] sm:$0xff]  ;;  %v545_v20 = vld [vmem:[#allocation4 + $0x2f0] sm:$0xff]  ;;  %v4556_v21 = vmov 0.0   ;;  %vm398_vm0 = vcmask 1045504  }
  0x4e   : > { %v514_v19 = vld [vmem:[#allocation4 + $0x1f8] sm:$0xff]  ;;  %547 = vmatprep.subr.mxu0 %v4556_v21  ;;  %1812 = vst [vmem:[#allocation3] sm:$0x1] %v4556_v21  ;;  %1813 = vst [vmem:[#allocation3 + $0x18] sm:$0x1] %v4556_v21  ;;  %3871 = vmatprep.subr.mxu1 %v546_v18  ;;  %v513_v22 = vld [vmem:[#allocation4 + $0x1f0] sm:$0xff] }
  0x4f   : > { %1814 = vst [vmem:[#allocation3 + $0x30] sm:$0x1] %v4556_v21  ;;  %1815 = vst [vmem:[#allocation3 + $0x48] sm:$0x1] %v4556_v21  ;;  %548 = vmatpush1.msra.mxu0 %v514_v19  ;;  %3872 = vmatpush3.msra.mxu1 %v546_v18  ;;  %v544_v23 = vld [vmem:[#allocation4 + $0x2e8] sm:$0xff]  ;;  %v543_v25 = vld [vmem:[#allocation4 + $0x2e0] sm:$0xff] }
  0x50   : > { %1816 = vst [vmem:[#allocation3 + $0x60] sm:$0x1] %v4556_v21  ;;  %1817 = vst [vmem:[#allocation3 + $0x78] sm:$0x1] %v4556_v21  ;;  %549 = vmatprep.subr.mxu0 %v4556_v21  ;;  %3873 = vmatprep.subr.mxu1 %v545_v20  ;;  %v512_v24 = vld [vmem:[#allocation4 + $0x1e8] sm:$0xff]  ;;  %v511_v26 = vld [vmem:[#allocation4 + $0x1e0] sm:$0xff] }
  0x51   : > { %1818 = vst [vmem:[#allocation3 + $0x90] sm:$0x1] %v4556_v21  ;;  %1819 = vst [vmem:[#allocation3 + $0xa8] sm:$0x1] %v4556_v21  ;;  %550 = vmatpush1.msra.mxu0 %v513_v22  ;;  %3874 = vmatpush3.msra.mxu1 %v545_v20  ;;  %v542_v27 = vld [vmem:[#allocation4 + $0x2d8] sm:$0xff]  ;;  %v541_v29 = vld [vmem:[#allocation4 + $0x2d0] sm:$0xff] }
  0x52   : > { %1820 = vst [vmem:[#allocation3 + $0xc0] sm:$0x1] %v4556_v21  ;;  %1821 = vst [vmem:[#allocation3 + $0xd8] sm:$0x1] %v4556_v21  ;;  %551 = vmatprep.subr.mxu0 %v4556_v21  ;;  %3875 = vmatprep.subr.mxu1 %v544_v23  ;;  %v510_v28 = vld [vmem:[#allocation4 + $0x1d8] sm:$0xff]  ;;  %v509_v30 = vld [vmem:[#allocation4 + $0x1d0] sm:$0xff] }
  0x53   : > { %1822 = vst [vmem:[#allocation3 + $0x11] sm:$0x1] %v4556_v21  ;;  %1823 = vst [vmem:[#allocation3 + $0x29] sm:$0x1] %v4556_v21  ;;  %552 = vmatpush1.msra.mxu0 %v512_v24  ;;  %3876 = vmatpush3.msra.mxu1 %v544_v23  ;;  %v540_v31 = vld [vmem:[#allocation4 + $0x2c8] sm:$0xff]  ;;  %v539_v33 = vld [vmem:[#allocation4 + $0x2c0] sm:$0xff] }
  0x54   : > { %1824 = vst [vmem:[#allocation3 + $0x41] sm:$0x1] %v4556_v21  ;;  %1825 = vst [vmem:[#allocation3 + $0x59] sm:$0x1] %v4556_v21  ;;  %553 = vmatprep.subr.mxu0 %v4556_v21  ;;  %3877 = vmatprep.subr.mxu1 %v543_v25  ;;  %v508_v32 = vld [vmem:[#allocation4 + $0x1c8] sm:$0xff]  ;;  %v507_v34 = vld [vmem:[#allocation4 + $0x1c0] sm:$0xff] }
  0x55   : > { %1826 = vst [vmem:[#allocation3 + $0x71] sm:$0x1] %v4556_v21  ;;  %1827 = vst [vmem:[#allocation3 + $0x89] sm:$0x1] %v4556_v21  ;;  %554 = vmatpush1.msra.mxu0 %v511_v26  ;;  %3878 = vmatpush3.msra.mxu1 %v543_v25  ;;  %v538_v35 = vld [vmem:[#allocation4 + $0x2b8] sm:$0xff]  ;;  %v537_v37 = vld [vmem:[#allocation4 + $0x2b0] sm:$0xff] }
  0x56   : > { %1828 = vst [vmem:[#allocation3 + $0xa1] sm:$0x1] %v4556_v21  ;;  %1829 = vst [vmem:[#allocation3 + $0xb9] sm:$0x1] %v4556_v21  ;;  %555 = vmatprep.subr.mxu0 %v4556_v21  ;;  %3879 = vmatprep.subr.mxu1 %v542_v27  ;;  %v506_v36 = vld [vmem:[#allocation4 + $0x1b8] sm:$0xff]  ;;  %v505_v38 = vld [vmem:[#allocation4 + $0x1b0] sm:$0xff] }
  0x57   : > { %1830 = vst [vmem:[#allocation3 + $0xd1] sm:$0x1] %v4556_v21  ;;  %1831 = vst [vmem:[#allocation3 + $0xe9] sm:$0x1] %v4556_v21  ;;  %556 = vmatpush1.msra.mxu0 %v510_v28  ;;  %3880 = vmatpush3.msra.mxu1 %v542_v27  ;;  %v536_v39 = vld [vmem:[#allocation4 + $0x2a8] sm:$0xff]  ;;  %v535_v41 = vld [vmem:[#allocation4 + $0x2a0] sm:$0xff] }
  0x58   : > { %557 = vmatprep.subr.mxu0 %v4556_v21  ;;  %3881 = vmatprep.subr.mxu1 %v541_v29  ;;  %v504_v40 = vld [vmem:[#allocation4 + $0x1a8] sm:$0xff]  ;;  %v503_v42 = vld [vmem:[#allocation4 + $0x1a0] sm:$0xff]  ;;  %v534_v43 = vld [vmem:[#allocation4 + $0x298] sm:$0xff]  ;;  %vm362_vm1 = vcmask 1046528   ;;  %p3418_p10 = scmp.ne.s32.totalorder %s4534_s21, 0 }
  0x59   : > { %558 = vmatpush1.msra.mxu0 %v509_v30  ;;  %3882 = vmatpush3.msra.mxu1 %v541_v29  ;;  %v502_v44 = vld [vmem:[#allocation4 + $0x198] sm:$0xff]  ;;  %v4769_v45 = vld [vmem:[#allocation2] sm:$0xff]  ;;  %v4771_v46 = vld [vmem:[#allocation2 + $0x50] sm:$0xff] }
  0x5a   : > { %559 = vmatprep.subr.mxu0 %v4556_v21  ;;  %3883 = vmatprep.subr.mxu1 %v540_v31  ;;  %v533_v47 = vld [vmem:[#allocation4 + $0x290] sm:$0xff]  ;;  %v4773_v48 = vld [vmem:[#allocation2 + $0x18] sm:$0x3]  ;;  %v532_v50 = vld [vmem:[#allocation4 + $0x288] sm:$0xff]  ;;  %v399_v51 = vrot.slane %v4769_v45, 2  ;;  %v400_v52 = vrot.slane %v4771_v46, 2 }
  0x5b   : > { %560 = vmatpush1.msra.mxu0 %v508_v32  ;;  %3884 = vmatpush3.msra.mxu1 %v540_v31  ;;  %v501_v49 = vld [vmem:[#allocation4 + $0x190] sm:$0xff]  ;;  %v500_v53 = vld [vmem:[#allocation4 + $0x188] sm:$0xff]  ;;  %v402_v54 = vrot.slane %v4773_v48, 2  ;;  %v531_v55 = vld [vmem:[#allocation4 + $0x280] sm:$0xff] }
  0x5c   : > { %561 = vmatprep.subr.mxu0 %v4556_v21  ;;  %3885 = vmatprep.subr.mxu1 %v539_v33  ;;  %v499_v56 = vld [vmem:[#allocation4 + $0x180] sm:$0xff]  ;;  %v4782_v57 = vsel %vm398_vm0, %v399_v51, %v400_v52  ;;  %v530_v59 = vld [vmem:[#allocation4 + $0x278] sm:$0xff]  ;;  %v529_v61 = vld [vmem:[#allocation4 + $0x270] sm:$0xff] }
  0x5d   : > { %562 = vmatpush1.msra.mxu0 %v507_v34  ;;  %3886 = vmatpush3.msra.mxu1 %v539_v33  ;;  %v4786_v58 = vsel %vm398_vm0, %v400_v52, %v402_v54  ;;  %v449_v60 = vld [vmem:[#allocation4 + $0x78] sm:$0xff]  ;;  %v448_v62 = vld [vmem:[#allocation4 + $0x70] sm:$0xff]  ;;  %v528_v63 = vld [vmem:[#allocation4 + $0x268] sm:$0xff] }
  0x5e   : > { %563 = vmatprep.subr.mxu0 %v4556_v21  ;;  %3887 = vmatprep.subr.mxu1 %v538_v35  ;;  %v447_v0 = vld [vmem:[#allocation4 + $0x68] sm:$0xff]  ;;  %v527_v1 = vld [vmem:[#allocation4 + $0x260] sm:$0xff]  ;;  %v526_v3 = vld [vmem:[#allocation4 + $0x258] sm:$0xff] }
  0x5f   : > { %564 = vmatpush1.msra.mxu0 %v506_v36  ;;  %3888 = vmatpush3.msra.mxu1 %v538_v35  ;;  %v446_v2 = vld [vmem:[#allocation4 + $0x60] sm:$0xff]  ;;  %v445_v4 = vld [vmem:[#allocation4 + $0x58] sm:$0xff]  ;;  %v525_v5 = vld [vmem:[#allocation4 + $0x250] sm:$0xff]  ;;  %v363_v35 = vrot.slane %v4769_v45, 1  ;;  %v364_v36 = vrot.slane %v4771_v46, 1 }
  0x60   : > { %565 = vmatprep.subr.mxu0 %v4556_v21  ;;  %3889 = vmatprep.subr.mxu1 %v537_v37  ;;  %v444_v6 = vld [vmem:[#allocation4 + $0x50] sm:$0xff]  ;;  %v524_v7 = vld [vmem:[#allocation4 + $0x248] sm:$0xff]  ;;  %v523_v9 = vld [vmem:[#allocation4 + $0x240] sm:$0xff] }
  0x61   : > { %566 = vmatpush1.msra.mxu0 %v505_v38  ;;  %3890 = vmatpush3.msra.mxu1 %v537_v37  ;;  %v443_v8 = vld [vmem:[#allocation4 + $0x48] sm:$0xff]  ;;  %v442_v10 = vld [vmem:[#allocation4 + $0x40] sm:$0xff]  ;;  %v522_v11 = vld [vmem:[#allocation4 + $0x238] sm:$0xff] }
  0x62   : > { %567 = vmatprep.subr.mxu0 %v4556_v21  ;;  %3891 = vmatprep.subr.mxu1 %v536_v39  ;;  %v441_v12 = vld [vmem:[#allocation4 + $0x38] sm:$0xff]  ;;  %v521_v13 = vld [vmem:[#allocation4 + $0x230] sm:$0xff]  ;;  %v4810_v16 = vld [vmem:[#allocation2 + $0x80] sm:$0xff] }
  0x63   : > { %568 = vmatpush1.msra.mxu0 %v504_v40  ;;  %3892 = vmatpush3.msra.mxu1 %v536_v39  ;;  %v440_v14 = vld [vmem:[#allocation4 + $0x30] sm:$0xff]  ;;  %v4808_v15 = vld [vmem:[#allocation2 + $0x58] sm:$0xff]  ;;  %v520_v17 = vld [vmem:[#allocation4 + $0x228] sm:$0xff]  ;;  %v405_v22 = vrot.slane %v4810_v16, 2  ;;  %v369_v52 = vrot.slane %v4810_v16, 1 }
  0x64   : > { %569 = vmatprep.subr.mxu0 %v4556_v21  ;;  %3893 = vmatprep.subr.mxu1 %v535_v41  ;;  %v439_v18 = vld [vmem:[#allocation4 + $0x28] sm:$0xff]  ;;  %v404_v20 = vrot.slane %v4808_v15, 2  ;;  %v519_v23 = vld [vmem:[#allocation4 + $0x220] sm:$0xff]  ;;  %v518_v26 = vld [vmem:[#allocation4 + $0x218] sm:$0xff]  ;;  %v368_v51 = vrot.slane %v4808_v15, 1 }
  0x65   : > { %570 = vmatpush1.msra.mxu0 %v503_v42  ;;  %3894 = vmatpush3.msra.mxu1 %v535_v41  ;;  %v4814_v19 = vld [vmem:[#allocation2 + $0x68] sm:$0x3]  ;;  %v438_v24 = vld [vmem:[#allocation4 + $0x20] sm:$0xff]  ;;  %v437_v27 = vld [vmem:[#allocation4 + $0x18] sm:$0xff]  ;;  %v366_v42 = vrot.slane %v4773_v48, 1 }
  0x66   : > { %571 = vmatprep.subr.mxu0 %v4556_v21  ;;  %3895 = vmatprep.subr.mxu1 %v534_v43  ;;  %v407_v25 = vrot.slane %v4814_v19, 2  ;;  %v4824_v28 = vsel %vm398_vm0, %v404_v20, %v405_v22  ;;  %v517_v29 = vld [vmem:[#allocation4 + $0x210] sm:$0xff]  ;;  %v4833_v32 = vld [vmem:[#allocation2 + $0x8] sm:$0xff]  ;;  %v515_v41 = vld [vmem:[#allocation4 + $0x200] sm:$0xff] }
  0x67   : > { %572 = vmatpush1.msra.mxu0 %v502_v44  ;;  %3896 = vmatpush3.msra.mxu1 %v534_v43  ;;  %v4831_v31 = vld [vmem:[#allocation2 + $0x30] sm:$0xff]  ;;  %v516_v34 = vld [vmem:[#allocation4 + $0x208] sm:$0xff]  ;;  %v410_v40 = vrot.slane %v4833_v32, 2  ;;  %v4850_v43 = vsel %vm362_vm1, %v363_v35, %v364_v36  ;;  %v465_v48 = vld [vmem:[#allocation4 + $0xf8] sm:$0xff] }
  0x68   : > { %573 = vmatprep.subr.mxu0 %v4556_v21  ;;  %3897 = vmatprep.subr.mxu1 %v533_v47  ;;  %v4829_v30 = vsel %vm398_vm0, %v405_v22, %v407_v25  ;;  %v436_v33 = vld [vmem:[#allocation4 + $0x10] sm:$0xff]  ;;  %v4840_v37 = vld [vmem:[#allocation2 + $0x48] sm:$0x3]  ;;  %v409_v39 = vrot.slane %v4831_v31, 2  ;;  %v373_v20 = vrot.slane %v4831_v31, 1  ;;  %v374_v22 = vrot.slane %v4833_v32, 1 }
  0x69   : > { %574 = vmatpush1.msra.mxu0 %v501_v49  ;;  %3898 = vmatpush3.msra.mxu1 %v533_v47  ;;  %v435_v38 = vld [vmem:[#allocation4 + $0x8] sm:$0xff]  ;;  %v412_v44 = vrot.slane %v4840_v37, 2  ;;  %v434_v47 = vld [vmem:[#allocation4] sm:$0xff]  ;;  %v4867_v54 = vld [vmem:[#allocation2 + $0x70] sm:$0xff] }
  0x6a   : > { %575 = vmatprep.subr.mxu0 %v4556_v21  ;;  %3899 = vmatprep.subr.mxu1 %v532_v50  ;;  %v4856_v49 = vsel %vm398_vm0, %v409_v39, %v410_v40  ;;  %v4946_v35 = vsel %vm362_vm1, %v373_v20, %v374_v22  ;;  %v454_v39 = vld [vmem:[#allocation4 + $0xa0] sm:$0xff] }
  0x6b   : > { %576 = vmatpush1.msra.mxu0 %v500_v53  ;;  %3900 = vmatpush3.msra.mxu1 %v532_v50  ;;  %v4861_v50 = vsel %vm362_vm1, %v364_v36, %v366_v42  ;;  %v4865_v53 = vld [vmem:[#allocation2 + $0x40] sm:$0xff]  ;;  %v376_v36 = vrot.slane %v4840_v37, 1  ;;  %v453_v37 = vld [vmem:[#allocation4 + $0x98] sm:$0xff] }
  0x6c   : > { %577 = vmatprep.subr.mxu0 %v4556_v21  ;;  %3901 = vmatprep.subr.mxu1 %v531_v55 }
  0x6d   : > { %578 = vmatpush1.msra.mxu0 %v499_v56  ;;  %3902 = vmatpush3.msra.mxu1 %v531_v55  ;;  %v4871_v55 = vsel %vm398_vm0, %v410_v40, %v412_v44  ;;  %v464_v56 = vld [vmem:[#allocation4 + $0xf0] sm:$0xff] }
  0x6e   : > { %3903 = vmatprep.mubr.f32.mxu1 %v4782_v57  ;;  %579 = vmatprep.subr.mxu0 %v4556_v21  ;;  %v452_v44 = vld [vmem:[#allocation4 + $0x90] sm:$0xff] }
  0x6f   : > { %3904 = vmatmul.mubr.f32.vlgmr.msra.gmra.mxu1 %v4786_v58  ;;  %877 = vmatprep.subr.mxu1 %v4556_v21 }
  0x70   : > { %580 = vmatpush2.msra.mxu0 %v530_v59  ;;  %878 = vmatpush1.msra.mxu1 %v449_v60  ;;  %v4875_v59 = vld [vmem:[#allocation2 + $0x20] sm:$0x3]  ;;  %v414_v60 = vrot.slane %v4865_v53, 2 }
  0x71   : > { %581 = vmatprep.subr.mxu0 %v4556_v21  ;;  %879 = vmatprep.subr.mxu1 %v4556_v21 }
  0x72   : > { %582 = vmatpush2.msra.mxu0 %v529_v61  ;;  %880 = vmatpush1.msra.mxu1 %v448_v62  ;;  %v415_v61 = vrot.slane %v4867_v54, 2  ;;  %v463_v62 = vld [vmem:[#allocation4 + $0xe8] sm:$0xff] }
  0x73   : > { %583 = vmatprep.subr.mxu0 %v4556_v21  ;;  %881 = vmatprep.subr.mxu1 %v4556_v21 }
  0x74   : > { %584 = vmatpush2.msra.mxu0 %v528_v63  ;;  %882 = vmatpush1.msra.mxu1 %v447_v0  ;;  %v4883_v63 = vsel %vm362_vm1, %v368_v51, %v369_v52  ;;  %v371_v0 = vrot.slane %v4814_v19, 1  ;;  %v457_v19 = vld [vmem:[#allocation4 + $0xb8] sm:$0xff]  ;;  %v450_v51 = vld [vmem:[#allocation4 + $0x80] sm:$0xff] }
  0x75   : > { %585 = vmatprep.subr.mxu0 %v4556_v21  ;;  %883 = vmatprep.subr.mxu1 %v4556_v21 }
  0x76   : > { %586 = vmatpush2.msra.mxu0 %v527_v1  ;;  %884 = vmatpush1.msra.mxu1 %v446_v2  ;;  %v417_v1 = vrot.slane %v4875_v59, 2  ;;  %v462_v2 = vld [vmem:[#allocation4 + $0xe0] sm:$0xff] }
  0x77   : > { %587 = vmatprep.subr.mxu0 %v4556_v21  ;;  %885 = vmatprep.subr.mxu1 %v4556_v21 }
  0x78   : > { %588 = vmatpush2.msra.mxu0 %v526_v3  ;;  %886 = vmatpush1.msra.mxu1 %v445_v4  ;;  %v4892_v3 = vsel %vm398_vm0, %v414_v60, %v415_v61  ;;  %v461_v4 = vld [vmem:[#allocation4 + $0xd8] sm:$0xff]  ;;  %v378_v60 = vrot.slane %v4865_v53, 1 }
  0x79   : > { %589 = vmatprep.subr.mxu0 %v4556_v21  ;;  %887 = vmatprep.subr.mxu1 %v4556_v21 }
  0x7a   : > { %590 = vmatpush2.msra.mxu0 %v525_v5  ;;  %888 = vmatpush1.msra.mxu1 %v444_v6  ;;  %v4897_v5 = vsel %vm362_vm1, %v369_v52, %v371_v0  ;;  %v4899_v6 = vld [vmem:[#allocation2 + $0x88] sm:$0xff]  ;;  %v480_v52 = vld [vmem:[#allocation4 + $0x170] sm:$0xff] }
  0x7b   : > { %591 = vmatprep.subr.mxu0 %v4556_v21  ;;  %889 = vmatprep.subr.mxu1 %v4556_v21  ;;  %v1221_v0 = vld [vmem:[#allocation4 + $0x370] sm:$0xff] }
  0x7c   : > { %592 = vmatpush2.msra.mxu0 %v524_v7  ;;  %890 = vmatpush1.msra.mxu1 %v443_v8  ;;  %v4901_v7 = vld [vmem:[#allocation2 + $0x60] sm:$0xff]  ;;  %v4905_v8 = vsel %vm398_vm0, %v415_v61, %v417_v1  ;;  %v379_v61 = vrot.slane %v4867_v54, 1 }
  0x7d   : > { %593 = vmatprep.subr.mxu0 %v4556_v21  ;;  %891 = vmatprep.subr.mxu1 %v4556_v21 }
  0x7e   : > { %594 = vmatpush2.msra.mxu0 %v523_v9  ;;  %892 = vmatpush1.msra.mxu1 %v442_v10  ;;  %v460_v9 = vld [vmem:[#allocation4 + $0xd0] sm:$0xff]  ;;  %v4909_v10 = vld [vmem:[#allocation2 + $0x28] sm:$0x3]  ;;  %v4984_v1 = vsel %vm362_vm1, %v378_v60, %v379_v61 }
  0x7f   : > { %595 = vmatprep.subr.mxu0 %v4556_v21  ;;  %893 = vmatprep.subr.mxu1 %v4556_v21  ;;  %v386_v20 = vrot.slane %v4909_v10, 1 }
  0x80   : > { %596 = vmatpush2.msra.mxu0 %v522_v11  ;;  %894 = vmatpush1.msra.mxu1 %v441_v12  ;;  %v419_v11 = vrot.slane %v4899_v6, 2  ;;  %v420_v12 = vrot.slane %v4901_v7, 2 }
  0x81   : > { %597 = vmatprep.subr.mxu0 %v4556_v21  ;;  %895 = vmatprep.subr.mxu1 %v4556_v21 }
  0x82   : > { %598 = vmatpush2.msra.mxu0 %v521_v13  ;;  %896 = vmatpush1.msra.mxu1 %v440_v14  ;;  %v459_v13 = vld [vmem:[#allocation4 + $0xc8] sm:$0xff]  ;;  %v422_v14 = vrot.slane %v4909_v10, 2 }
  0x83   : > { %599 = vmatprep.subr.mxu0 %v4556_v21  ;;  %897 = vmatprep.subr.mxu1 %v4556_v21 }
  0x84   : > { %600 = vmatpush2.msra.mxu0 %v520_v17  ;;  %898 = vmatpush1.msra.mxu1 %v439_v18  ;;  %v458_v17 = vld [vmem:[#allocation4 + $0xc0] sm:$0xff]  ;;  %v4922_v18 = vsel %vm398_vm0, %v419_v11, %v420_v12  ;;  %v4934_v25 = vsel %vm398_vm0, %v420_v12, %v422_v14  ;;  %v1218_v12 = vld [vmem:[#allocation4 + $0x358] sm:$0xff]  ;;  %v384_v14 = vrot.slane %v4901_v7, 1 }
  0x85   : > { %601 = vmatprep.subr.mxu0 %v4556_v21  ;;  %899 = vmatprep.subr.mxu1 %v4556_v21  ;;  %v478_v11 = vld [vmem:[#allocation4 + $0x160] sm:$0xff] }
  0x86   : > { %602 = vmatpush2.msra.mxu0 %v519_v23  ;;  %900 = vmatpush1.msra.mxu1 %v438_v24  ;;  %v4928_v23 = vld [vmem:[#allocation2 + $0x78] sm:$0xff]  ;;  %v5025_v10 = vsel %vm362_vm1, %v384_v14, %v386_v20  ;;  %v1251_v20 = vld [vmem:[#allocation4 + $0x460] sm:$0xff] }
  0x87   : > { %603 = vmatprep.subr.mxu0 %v4556_v21  ;;  %901 = vmatprep.subr.mxu1 %v4556_v21  ;;  %v4930_v24 = vld [vmem:[#allocation2 + $0x38] sm:$0xff] }
  0x88   : > { %604 = vmatpush2.msra.mxu0 %v518_v26  ;;  %902 = vmatpush1.msra.mxu1 %v437_v27  ;;  %v456_v26 = vld [vmem:[#allocation4 + $0xb0] sm:$0xff] }
  0x89   : > { %605 = vmatprep.subr.mxu0 %v4556_v21  ;;  %3906 = vmatprep.mubr.f32.mxu1 %v4824_v28  ;;  %v4938_v27 = vld [vmem:[#allocation2 + $0x10] sm:$0x3] }
  0x8a   : > { %903 = vmatprep.subr.mxu1 %v4556_v21  ;;  %606 = vmatpush2.msra.mxu0 %v517_v29  ;;  %v492_v29 = vrot.slane %v4928_v23, 2 }
  0x8b   : > { %3907 = vmatmul.mubr.f32.gmra.mxu1 %v4829_v30  ;;  %607 = vmatprep.subr.mxu0 %v4556_v21 }
  0x8c   : > { %904 = vmatpush1.msra.mxu1 %v436_v33  ;;  %608 = vmatpush2.msra.mxu0 %v516_v34  ;;  %v493_v33 = vrot.slane %v4930_v24, 2  ;;  %v455_v34 = vld [vmem:[#allocation4 + $0xa8] sm:$0xff] }
  0x8d   : > { %905 = vmatprep.subr.mxu1 %v4556_v21  ;;  %609 = vmatprep.subr.mxu0 %v4556_v21 }
  0x8e   : > { %906 = vmatpush1.msra.mxu1 %v435_v38  ;;  %3909 = vmatprep.mubr.f32.mxu1 %v4824_v28  ;;  %v495_v38 = vrot.slane %v4938_v27, 2  ;;  %v4955_v40 = vsel %vm398_vm0, %v492_v29, %v493_v33  ;;  %v1213_v29 = vld [vmem:[#allocation4 + $0x330] sm:$0xff] }
  0x8f   : > { %907 = vmatprep.subr.mxu1 %v4556_v21  ;;  %610 = vmatpush2.msra.mxu0 %v515_v41  ;;  %v4960_v41 = vsel %vm362_vm1, %v374_v22, %v376_v36  ;;  %v1211_v36 = vld [vmem:[#allocation4 + $0x320] sm:$0xff] }
  0x90   : > { %611 = vmatprep.mubr.f32.mxu0 %v4850_v43  ;;  %3910 = vmatmul.mubr.f32.gmra.mxu1 %v4829_v30  ;;  %v4964_v42 = vsel %vm398_vm0, %v493_v33, %v495_v38  ;;  %v1212_v33 = vld [vmem:[#allocation4 + $0x328] sm:$0xff]  ;;  %v1210_v38 = vld [vmem:[#allocation4 + $0x318] sm:$0xff] }
  0x91   : > { %908 = vmatpush1.msra.mxu1 %v434_v47  ;;  %612 = vmatmul.mubr.f32.vlgmr.msra.gmra.mxu0 %v4769_v45  ;;  %v481_v47 = vld [vmem:[#allocation4 + $0x178] sm:$0xff] }
  0x92   : > { %909 = vmatprep.subr.mxu1 %v4556_v21  ;;  %3912 = vmatprep.mubr.f32.mxu1 %v4856_v49 }
  0x93   : > { %910 = vmatpush2.msra.mxu1 %v465_v48  ;;  %616 = vmatprep.mubr.f32.mxu0 %v4861_v50  ;;  %v451_v48 = vld [vmem:[#allocation4 + $0x88] sm:$0xff] }
  0x94   : > { %911 = vmatprep.subr.mxu1 %v4556_v21  ;;  %3913 = vmatmul.mubr.f32.gmra.mxu1 %v4871_v55 }
  0x95   : > { %912 = vmatpush2.msra.mxu1 %v464_v56  ;;  %617 = vmatmul.mubr.f32.gmra.mxu0 %v4771_v46  ;;  %v1222_v56 = vld [vmem:[#allocation4 + $0x378] sm:$0xff] }
  0x96   : > { %913 = vmatprep.subr.mxu1 %v4556_v21  ;;  %3915 = vmatprep.mubr.f32.mxu1 %v4856_v49 }
  0x97   : > { %914 = vmatpush2.msra.mxu1 %v463_v62  ;;  %621 = vmatprep.mubr.f32.mxu0 %v4883_v63  ;;  %v479_v62 = vld [vmem:[#allocation4 + $0x168] sm:$0xff] }
  0x98   : > { %915 = vmatprep.subr.mxu1 %v4556_v21  ;;  %3916 = vmatmul.mubr.f32.gmra.mxu1 %v4871_v55 }
  0x99   : > { %916 = vmatpush2.msra.mxu1 %v462_v2  ;;  %622 = vmatmul.mubr.f32.gmra.mxu0 %v4808_v15  ;;  %v381_v2 = vrot.slane %v4875_v59, 1  ;;  %v1219_v59 = vld [vmem:[#allocation4 + $0x360] sm:$0xff] }
  0x9a   : > { %917 = vmatprep.subr.mxu1 %v4556_v21  ;;  %3918 = vmatprep.mubr.f32.mxu1 %v4892_v3 }
  0x9b   : > { %918 = vmatpush2.msra.mxu1 %v461_v4  ;;  %626 = vmatprep.mubr.f32.mxu0 %v4897_v5  ;;  %v1220_v4 = vld [vmem:[#allocation4 + $0x368] sm:$0xff] }
  0x9c   : > { %919 = vmatprep.subr.mxu1 %v4556_v21  ;;  %3919 = vmatmul.mubr.f32.gmra.mxu1 %v4905_v8 }
  0x9d   : > { %920 = vmatpush2.msra.mxu1 %v460_v9  ;;  %627 = vmatmul.mubr.f32.gmra.mxu0 %v4810_v16  ;;  %v4994_v9 = vsel %vm362_vm1, %v379_v61, %v381_v2  ;;  %v1207_v61 = vld [vmem:[#allocation4 + $0x300] sm:$0xff]  ;;  %v1238_v2 = vld [vmem:[#allocation4 + $0x3f8] sm:$0xff] }
  0x9e   : > { %921 = vmatprep.subr.mxu1 %v4556_v21  ;;  %3921 = vmatprep.mubr.f32.mxu1 %v4892_v3 }
  0x9f   : > { %922 = vmatpush2.msra.mxu1 %v459_v13  ;;  %631 = vmatprep.mubr.f32.mxu0 %v4883_v63  ;;  %v1216_v13 = vld [vmem:[#allocation4 + $0x348] sm:$0xff] }
  0xa0   : > { %923 = vmatprep.subr.mxu1 %v4556_v21  ;;  %3922 = vmatmul.mubr.f32.gmra.mxu1 %v4905_v8 }
  0xa1   : > { %924 = vmatpush2.msra.mxu1 %v458_v17  ;;  %632 = vmatmul.mubr.f32.gmra.mxu0 %v4808_v15  ;;  %v476_v17 = vld [vmem:[#allocation4 + $0x150] sm:$0xff] }
  0xa2   : > { %925 = vmatprep.subr.mxu1 %v4556_v21  ;;  %3924 = vmatprep.mubr.f32.mxu1 %v4922_v18 }
  0xa3   : > { %926 = vmatpush2.msra.mxu1 %v457_v19  ;;  %636 = vmatprep.mubr.f32.mxu0 %v4897_v5  ;;  %v1214_v19 = vld [vmem:[#allocation4 + $0x338] sm:$0xff] }
  0xa4   : > { %927 = vmatprep.subr.mxu1 %v4556_v21  ;;  %3925 = vmatmul.mubr.f32.gmra.mxu1 %v4934_v25 }
  0xa5   : > { %928 = vmatpush2.msra.mxu1 %v456_v26  ;;  %637 = vmatmul.mubr.f32.gmra.mxu0 %v4810_v16  ;;  %v475_v26 = vld [vmem:[#allocation4 + $0x148] sm:$0xff] }
  0xa6   : > { %929 = vmatprep.subr.mxu1 %v4556_v21  ;;  %3927 = vmatprep.mubr.f32.mxu1 %v4922_v18 }
  0xa7   : > { %930 = vmatpush2.msra.mxu1 %v455_v34  ;;  %641 = vmatprep.mubr.f32.mxu0 %v4946_v35  ;;  %v474_v34 = vld [vmem:[#allocation4 + $0x140] sm:$0xff] }
  0xa8   : > { %931 = vmatprep.subr.mxu1 %v4556_v21  ;;  %3928 = vmatmul.mubr.f32.gmra.mxu1 %v4934_v25 }
  0xa9   : > { %932 = vmatpush2.msra.mxu1 %v454_v39  ;;  %642 = vmatmul.mubr.f32.gmra.mxu0 %v4831_v31  ;;  %v473_v39 = vld [vmem:[#allocation4 + $0x138] sm:$0xff] }
  0xaa   : > { %933 = vmatprep.subr.mxu1 %v4556_v21  ;;  %3930 = vmatprep.mubr.f32.mxu1 %v4955_v40 }
  0xab   : > { %934 = vmatpush2.msra.mxu1 %v453_v37  ;;  %646 = vmatprep.mubr.f32.mxu0 %v4960_v41  ;;  %v1209_v37 = vld [vmem:[#allocation4 + $0x310] sm:$0xff] }
  0xac   : > { %935 = vmatprep.subr.mxu1 %v4556_v21  ;;  %3931 = vmatmul.mubr.f32.gmra.mxu1 %v4964_v42 }
  0xad   : > { %936 = vmatpush2.msra.mxu1 %v452_v44  ;;  %647 = vmatmul.mubr.f32.gmra.mxu0 %v4833_v32  ;;  %v472_v44 = vld [vmem:[#allocation4 + $0x130] sm:$0xff] }
  0xae   : > { %937 = vmatprep.subr.mxu1 %v4556_v21  ;;  %3933 = vmatprep.subr.mxu0 %v481_v47 }
  0xaf   : > { %938 = vmatpush2.msra.mxu1 %v451_v48  ;;  %3934 = vmatpush3.msra.mxu0 %v481_v47  ;;  %v485_v47 = vrot.slane %v4928_v23, 1  ;;  %v486_v48 = vrot.slane %v4930_v24, 1 }
  0xb0   : > { %939 = vmatprep.subr.mxu1 %v4556_v21  ;;  %651 = vmatprep.mubr.f32.mxu0 %v4946_v35 }
  0xb1   : > { %940 = vmatpush2.msra.mxu1 %v450_v51  ;;  %941 = vmatprep.mubr.f32.mxu1 %v4850_v43  ;;  %v471_v51 = vld [vmem:[#allocation4 + $0x128] sm:$0xff]  ;;  %v5050_v60 = vsel %vm362_vm1, %v485_v47, %v486_v48  ;;  %v1225_v47 = vld [vmem:[#allocation4 + $0x390] sm:$0xff] }
  0xb2   : > { %652 = vmatmul.mubr.f32.gmra.mxu0 %v4831_v31  ;;  %942 = vmatmul.mubr.f32.vlgmr.msra.gmra.mxu1 %v4769_v45 }
  0xb3   : > { %1255 = vmatprep.subr.mxu1 %v4556_v21  ;;  %3935 = vmatprep.subr.mxu0 %v480_v52 }
  0xb4   : > { %1256 = vmatpush1.msra.mxu1 %v1222_v56  ;;  %3936 = vmatpush3.msra.mxu0 %v480_v52  ;;  %v1208_v52 = vld [vmem:[#allocation4 + $0x308] sm:$0xff]  ;;  %v470_v56 = vld [vmem:[#allocation4 + $0x120] sm:$0xff] }
  0xb5   : > { %656 = vmatprep.mubr.f32.mxu0 %v4960_v41  ;;  %946 = vmatprep.mubr.f32.mxu1 %v4861_v50 }
  0xb6   : > { %1257 = vmatprep.subr.mxu1 %v4556_v21  ;;  %657 = vmatmul.mubr.f32.gmra.mxu0 %v4833_v32 }
  0xb7   : > { %947 = vmatmul.mubr.f32.gmra.mxu1 %v4771_v46  ;;  %3937 = vmatprep.subr.mxu0 %v479_v62 }
  0xb8   : > { %1258 = vmatpush1.msra.mxu1 %v1221_v0  ;;  %661 = vmatprep.mubr.f32.mxu0 %v4984_v1  ;;  %v469_v0 = vld [vmem:[#allocation4 + $0x118] sm:$0xff] }
  0xb9   : > { %1259 = vmatprep.subr.mxu1 %v4556_v21  ;;  %951 = vmatprep.mubr.f32.mxu1 %v4850_v43  ;;  %v1217_v43 = vld [vmem:[#allocation4 + $0x350] sm:$0xff] }
  0xba   : > { %1260 = vmatpush1.msra.mxu1 %v1220_v4  ;;  %3938 = vmatpush3.msra.mxu0 %v479_v62  ;;  %v488_v62 = vrot.slane %v4938_v27, 1  ;;  %v468_v4 = vld [vmem:[#allocation4 + $0x110] sm:$0xff]  ;;  %v467_v27 = vld [vmem:[#allocation4 + $0x108] sm:$0xff] }
  0xbb   : > { %662 = vmatmul.mubr.f32.gmra.mxu0 %v4865_v53  ;;  %952 = vmatmul.mubr.f32.gmra.mxu1 %v4769_v45  ;;  %v477_v45 = vld [vmem:[#allocation4 + $0x158] sm:$0xff] }
  0xbc   : > { %1261 = vmatprep.subr.mxu1 %v4556_v21  ;;  %666 = vmatprep.mubr.f32.mxu0 %v4994_v9 }
  0xbd   : > { %1262 = vmatpush1.msra.mxu1 %v1219_v59  ;;  %956 = vmatprep.mubr.f32.mxu1 %v4861_v50  ;;  %v1215_v50 = vld [vmem:[#allocation4 + $0x340] sm:$0xff]  ;;  %v5059_v59 = vsel %vm362_vm1, %v486_v48, %v488_v62  ;;  %v1245_v48 = vld [vmem:[#allocation4 + $0x430] sm:$0xff]  ;;  %v1242_v62 = vld [vmem:[#allocation4 + $0x418] sm:$0xff] }
  0xbe   : > { %1263 = vmatprep.subr.mxu1 %v4556_v21  ;;  %3939 = vmatprep.subr.mxu0 %v478_v11 }
  0xbf   : > { %1264 = vmatpush1.msra.mxu1 %v1218_v12  ;;  %667 = vmatmul.mubr.f32.gmra.mxu0 %v4867_v54  ;;  %v466_v12 = vld [vmem:[#allocation4 + $0x100] sm:$0xff] }
  0xc0   : > { %957 = vmatmul.mubr.f32.gmra.mxu1 %v4771_v46  ;;  %3940 = vmatpush3.msra.mxu0 %v478_v11  ;;  %v383_v46 = vrot.slane %v4899_v6, 1  ;;  %v1237_v11 = vld [vmem:[#allocation4 + $0x3f0] sm:$0xff] }
  0xc1   : > { %1265 = vmatprep.subr.mxu1 %v4556_v21  ;;  %671 = vmatprep.mubr.f32.mxu0 %v4984_v1 }
  0xc2   : > { %1266 = vmatpush1.msra.mxu1 %v1217_v43  ;;  %961 = vmatprep.mubr.f32.mxu1 %v4883_v63  ;;  %v5019_v22 = vsel %vm362_vm1, %v383_v46, %v384_v14  ;;  %v1236_v43 = vld [vmem:[#allocation4 + $0x3e8] sm:$0xff]  ;;  %v1233_v46 = vld [vmem:[#allocation4 + $0x3d0] sm:$0xff] }
  0xc3   : > { %1267 = vmatprep.subr.mxu1 %v4556_v21  ;;  %672 = vmatmul.mubr.f32.gmra.mxu0 %v4865_v53  ;;  %v1232_v14 = vld [vmem:[#allocation4 + $0x3c8] sm:$0xff] }
  0xc4   : > { %962 = vmatmul.mubr.f32.gmra.mxu1 %v4808_v15  ;;  %3941 = vmatprep.subr.mxu0 %v477_v45 }
  0xc5   : > { %1268 = vmatpush1.msra.mxu1 %v1216_v13  ;;  %3942 = vmatpush3.msra.mxu0 %v477_v45  ;;  %v1235_v45 = vld [vmem:[#allocation4 + $0x3e0] sm:$0xff]  ;;  %v1254_v13 = vld [vmem:[#allocation4 + $0x478] sm:$0xff] }
  0xc6   : > { %1269 = vmatprep.subr.mxu1 %v4556_v21  ;;  %676 = vmatprep.mubr.f32.mxu0 %v4994_v9 }
  0xc7   : > { %966 = vmatprep.mubr.f32.mxu1 %v4897_v5  ;;  %1270 = vmatpush1.msra.mxu1 %v1215_v50  ;;  %v1234_v50 = vld [vmem:[#allocation4 + $0x3d8] sm:$0xff] }
  0xc8   : > { %677 = vmatmul.mubr.f32.gmra.mxu0 %v4867_v54  ;;  %967 = vmatmul.mubr.f32.gmra.mxu1 %v4810_v16 }
  0xc9   : > { %1271 = vmatprep.subr.mxu1 %v4556_v21  ;;  %3943 = vmatprep.subr.mxu0 %v476_v17 }
  0xca   : > { %1272 = vmatpush1.msra.mxu1 %v1214_v19  ;;  %3944 = vmatpush3.msra.mxu0 %v476_v17  ;;  %v1252_v17 = vld [vmem:[#allocation4 + $0x468] sm:$0xff]  ;;  %v1230_v19 = vld [vmem:[#allocation4 + $0x3b8] sm:$0xff] }
  0xcb   : > { %681 = vmatprep.mubr.f32.mxu0 %v5019_v22  ;;  %971 = vmatprep.mubr.f32.mxu1 %v4883_v63 }
  0xcc   : > { %1273 = vmatprep.subr.mxu1 %v4556_v21  ;;  %682 = vmatmul.mubr.f32.gmra.mxu0 %v4899_v6 }
  0xcd   : > { %972 = vmatmul.mubr.f32.gmra.mxu1 %v4808_v15  ;;  %3945 = vmatprep.subr.mxu0 %v475_v26 }
  0xce   : > { %1274 = vmatpush1.msra.mxu1 %v1213_v29  ;;  %686 = vmatprep.mubr.f32.mxu0 %v5025_v10  ;;  %v1250_v29 = vld [vmem:[#allocation4 + $0x458] sm:$0xff] }
  0xcf   : > { %1275 = vmatprep.subr.mxu1 %v4556_v21  ;;  %976 = vmatprep.mubr.f32.mxu1 %v4897_v5 }
  0xd0   : > { %1276 = vmatpush1.msra.mxu1 %v1212_v33  ;;  %3946 = vmatpush3.msra.mxu0 %v475_v26  ;;  %v1229_v26 = vld [vmem:[#allocation4 + $0x3b0] sm:$0xff]  ;;  %v1228_v33 = vld [vmem:[#allocation4 + $0x3a8] sm:$0xff] }
  0xd1   : > { %687 = vmatmul.mubr.f32.gmra.mxu0 %v4901_v7  ;;  %977 = vmatmul.mubr.f32.gmra.mxu1 %v4810_v16 }
  0xd2   : > { %1277 = vmatprep.subr.mxu1 %v4556_v21  ;;  %3947 = vmatprep.subr.mxu0 %v474_v34 }
  0xd3   : > { %1278 = vmatpush1.msra.mxu1 %v1211_v36  ;;  %691 = vmatprep.mubr.f32.mxu0 %v5019_v22  ;;  %v1248_v36 = vld [vmem:[#allocation4 + $0x448] sm:$0xff] }
  0xd4   : > { %1279 = vmatprep.subr.mxu1 %v4556_v21  ;;  %981 = vmatprep.mubr.f32.mxu1 %v4946_v35 }
  0xd5   : > { %3948 = vmatpush3.msra.mxu0 %v474_v34  ;;  %1280 = vmatpush1.msra.mxu1 %v1210_v38  ;;  %v1249_v34 = vld [vmem:[#allocation4 + $0x450] sm:$0xff]  ;;  %v1227_v38 = vld [vmem:[#allocation4 + $0x3a0] sm:$0xff] }
  0xd6   : > { %692 = vmatmul.mubr.f32.gmra.mxu0 %v4899_v6  ;;  %982 = vmatmul.mubr.f32.gmra.mxu1 %v4831_v31 }
  0xd7   : > { %3949 = vmatprep.subr.mxu0 %v473_v39  ;;  %1281 = vmatprep.subr.mxu1 %v4556_v21 }
  0xd8   : > { %3950 = vmatpush3.msra.mxu0 %v473_v39  ;;  %1282 = vmatpush1.msra.mxu1 %v1209_v37  ;;  %v1247_v39 = vld [vmem:[#allocation4 + $0x440] sm:$0xff]  ;;  %v1226_v37 = vld [vmem:[#allocation4 + $0x398] sm:$0xff] }
  0xd9   : > { %3951 = vmatprep.subr.mxu0 %v472_v44  ;;  %696 = vmatprep.mubr.f32.mxu0 %v5025_v10 }
  0xda   : > { %986 = vmatprep.mubr.f32.mxu1 %v4960_v41  ;;  %3952 = vmatpush3.msra.mxu0 %v472_v44  ;;  %v1246_v44 = vld [vmem:[#allocation4 + $0x438] sm:$0xff] }
  0xdb   : > { %1283 = vmatprep.subr.mxu1 %v4556_v21  ;;  %697 = vmatmul.mubr.f32.gmra.mxu0 %v4901_v7 }
  0xdc   : > { %987 = vmatmul.mubr.f32.gmra.mxu1 %v4833_v32  ;;  %3953 = vmatprep.subr.mxu0 %v471_v51 }
  0xdd   : > { %1284 = vmatpush1.msra.mxu1 %v1208_v52  ;;  %3954 = vmatpush3.msra.mxu0 %v471_v51  ;;  %v1224_v51 = vld [vmem:[#allocation4 + $0x388] sm:$0xff] }
  0xde   : > { %3955 = vmatprep.subr.mxu0 %v470_v56  ;;  %1285 = vmatprep.subr.mxu1 %v4556_v21  ;;  %v1244_v52 = vld [vmem:[#allocation4 + $0x428] sm:$0xff] }
  0xdf   : > { %701 = vmatprep.mubr.f32.mxu0 %v5050_v60  ;;  %991 = vmatprep.mubr.f32.mxu1 %v4946_v35 }
  0xe0   : > { %3956 = vmatpush3.msra.mxu0 %v470_v56  ;;  %1286 = vmatpush1.msra.mxu1 %v1207_v61  ;;  %v1243_v56 = vld [vmem:[#allocation4 + $0x420] sm:$0xff] }
  0xe1   : > { %702 = vmatmul.mubr.f32.gmra.mxu0 %v4928_v23  ;;  %992 = vmatmul.mubr.f32.gmra.mxu1 %v4831_v31  ;;  %v1223_v61 = vld [vmem:[#allocation4 + $0x380] sm:$0xff] }
  0xe2   : > { %3957 = vmatprep.subr.mxu0 %v469_v0  ;;  %1287 = vmatprep.subr.mxu1 %v4556_v21 }
  0xe3   : > { %3958 = vmatpush3.msra.mxu0 %v469_v0  ;;  %1288 = vmatpush2.msra.mxu1 %v1238_v2  ;;  %v1241_v0 = vld [vmem:[#allocation4 + $0x410] sm:$0xff]  ;;  %v1239_v2 = vld [vmem:[#allocation4 + $0x400] sm:$0xff] }
  0xe4   : > { %3959 = vmatprep.subr.mxu0 %v468_v4  ;;  %706 = vmatprep.mubr.f32.mxu0 %v5059_v59 }
  0xe5   : > { %996 = vmatprep.mubr.f32.mxu1 %v4960_v41  ;;  %3960 = vmatpush3.msra.mxu0 %v468_v4 }
  0xe6   : > { %1289 = vmatprep.subr.mxu1 %v4556_v21  ;;  %707 = vmatmul.mubr.f32.gmra.mxu0 %v4930_v24 }
  0xe7   : > { %997 = vmatmul.mubr.f32.gmra.mxu1 %v4833_v32  ;;  %3961 = vmatprep.subr.mxu0 %v467_v27 }
  0xe8   : > { %1290 = vmatpush2.msra.mxu1 %v1237_v11  ;;  %3962 = vmatpush3.msra.mxu0 %v467_v27 }
  0xe9   : > { %1291 = vmatprep.subr.mxu1 %v4556_v21  ;;  %3963 = vmatprep.subr.mxu0 %v466_v12 }
  0xea   : > { %1292 = vmatpush2.msra.mxu1 %v1236_v43  ;;  %1001 = vmatprep.mubr.f32.mxu1 %v4984_v1 }
  0xeb   : > { %3964 = vmatpush3.msra.mxu0 %v466_v12  ;;  %3965 = vmatprep.mubr.f32.mxu0 %v4782_v57 }
  0xec   : > { %1002 = vmatmul.mubr.f32.gmra.mxu1 %v4865_v53  ;;  %3966 = vmatmul.mubr.f32.vlgmr.msra.gmra.mxu0 %v4786_v58 }
  0xed   : > { %1293 = vmatprep.subr.mxu1 %v4556_v21  ;;  %1006 = vmatprep.mubr.f32.mxu1 %v4994_v9 }
  0xee   : > { %1294 = vmatpush2.msra.mxu1 %v1235_v45  ;;  %3968 = vmatprep.mubr.f32.mxu0 %v4782_v57  ;;  %v1253_v57 = vld [vmem:[#allocation4 + $0x470] sm:$0xff] }
  0xef   : > { %1295 = vmatprep.subr.mxu1 %v4556_v21  ;;  %3995 = vmatprep.subr.mxu0 %v1254_v13 }
  0xf0   : > { %1296 = vmatpush2.msra.mxu1 %v1234_v50  ;;  %3969 = vmatmul.mubr.f32.gmra.mxu0 %v4786_v58  ;;  %v1231_v58 = vld [vmem:[#allocation4 + $0x3c0] sm:$0xff] }
  0xf1   : > { %1007 = vmatmul.mubr.f32.gmra.mxu1 %v4867_v54  ;;  %1297 = vmatprep.subr.mxu1 %v4556_v21 }
  0xf2   : > { %1298 = vmatpush2.msra.mxu1 %v1233_v46  ;;  %1011 = vmatprep.mubr.f32.mxu1 %v4984_v1 }
  0xf3   : > { %3971 = vmatprep.mubr.f32.mxu0 %v4824_v28  ;;  %1299 = vmatprep.subr.mxu1 %v4556_v21 }
  0xf4   : > { %3972 = vmatmul.mubr.f32.gmra.mxu0 %v4829_v30  ;;  %1300 = vmatpush2.msra.mxu1 %v1232_v14 }
  0xf5   : > { %1012 = vmatmul.mubr.f32.gmra.mxu1 %v4865_v53  ;;  %3996 = vmatpush3.msra.mxu0 %v1254_v13 }
  0xf6   : > { %1301 = vmatprep.subr.mxu1 %v4556_v21  ;;  %3997 = vmatprep.subr.mxu0 %v1253_v57 }
  0xf7   : > { %1016 = vmatprep.mubr.f32.mxu1 %v4994_v9  ;;  %3974 = vmatprep.mubr.f32.mxu0 %v4824_v28 }
  0xf8   : > { %1302 = vmatpush2.msra.mxu1 %v1231_v58  ;;  %3998 = vmatpush3.msra.mxu0 %v1253_v57 }
  0xf9   : > { %1017 = vmatmul.mubr.f32.gmra.mxu1 %v4867_v54  ;;  %3975 = vmatmul.mubr.f32.gmra.mxu0 %v4829_v30 }
  0xfa   : > { %1303 = vmatprep.subr.mxu1 %v4556_v21  ;;  %3999 = vmatprep.subr.mxu0 %v1252_v17 }
  0xfb   : > { %1304 = vmatpush2.msra.mxu1 %v1230_v19  ;;  %4000 = vmatpush3.msra.mxu0 %v1252_v17 }
  0xfc   : > { %4001 = vmatprep.subr.mxu0 %v1251_v20  ;;  %1021 = vmatprep.mubr.f32.mxu1 %v5019_v22 }
  0xfd   : > { %3977 = vmatprep.mubr.f32.mxu0 %v4856_v49  ;;  %1305 = vmatprep.subr.mxu1 %v4556_v21 }
  0xfe   : > { %4002 = vmatpush3.msra.mxu0 %v1251_v20  ;;  %1022 = vmatmul.mubr.f32.gmra.mxu1 %v4899_v6 }
  0xff   : > { %3978 = vmatmul.mubr.f32.gmra.mxu0 %v4871_v55  ;;  %1306 = vmatpush2.msra.mxu1 %v1229_v26 }
 0x100   : > { %4003 = vmatprep.subr.mxu0 %v1250_v29  ;;  %1307 = vmatprep.subr.mxu1 %v4556_v21 }
 0x101   : > { %4004 = vmatpush3.msra.mxu0 %v1250_v29  ;;  %1308 = vmatpush2.msra.mxu1 %v1228_v33 }
 0x102   : > { %4005 = vmatprep.subr.mxu0 %v1249_v34  ;;  %1026 = vmatprep.mubr.f32.mxu1 %v5025_v10 }
 0x103   : > { %3980 = vmatprep.mubr.f32.mxu0 %v4856_v49  ;;  %4006 = vmatpush3.msra.mxu0 %v1249_v34 }
 0x104   : > { %1027 = vmatmul.mubr.f32.gmra.mxu1 %v4901_v7  ;;  %3981 = vmatmul.mubr.f32.gmra.mxu0 %v4871_v55 }
 0x105   : > { %1309 = vmatprep.subr.mxu1 %v4556_v21  ;;  %4007 = vmatprep.subr.mxu0 %v1248_v36 }
 0x106   : > { %1310 = vmatpush2.msra.mxu1 %v1227_v38  ;;  %4008 = vmatpush3.msra.mxu0 %v1248_v36 }
 0x107   : > { %1311 = vmatprep.subr.mxu1 %v4556_v21  ;;  %4009 = vmatprep.subr.mxu0 %v1247_v39 }
 0x108   : > { %1031 = vmatprep.mubr.f32.mxu1 %v5019_v22  ;;  %3983 = vmatprep.mubr.f32.mxu0 %v4892_v3 }
 0x109   : > { %1312 = vmatpush2.msra.mxu1 %v1226_v37  ;;  %4010 = vmatpush3.msra.mxu0 %v1247_v39 }
 0x10a   : > { %1032 = vmatmul.mubr.f32.gmra.mxu1 %v4899_v6  ;;  %3984 = vmatmul.mubr.f32.gmra.mxu0 %v4905_v8 }
 0x10b   : > { %4011 = vmatprep.subr.mxu0 %v1246_v44  ;;  %1313 = vmatprep.subr.mxu1 %v4556_v21 }
 0x10c   : > { %4012 = vmatpush3.msra.mxu0 %v1246_v44  ;;  %1314 = vmatpush2.msra.mxu1 %v1225_v47 }
 0x10d   : > { %4013 = vmatprep.subr.mxu0 %v1245_v48  ;;  %1036 = vmatprep.mubr.f32.mxu1 %v5025_v10 }
 0x10e   : > { %3986 = vmatprep.mubr.f32.mxu0 %v4892_v3  ;;  %1315 = vmatprep.subr.mxu1 %v4556_v21 }
 0x10f   : > { %4014 = vmatpush3.msra.mxu0 %v1245_v48  ;;  %1037 = vmatmul.mubr.f32.gmra.mxu1 %v4901_v7 }
 0x110   : > { %3987 = vmatmul.mubr.f32.gmra.mxu0 %v4905_v8  ;;  %1316 = vmatpush2.msra.mxu1 %v1224_v51 }
 0x111   : > { %4015 = vmatprep.subr.mxu0 %v1244_v52  ;;  %1317 = vmatprep.subr.mxu1 %v4556_v21  ;;  %v1240_v21 = vld [vmem:[#allocation4 + $0x408] sm:$0xff] }
 0x112   : > { %4016 = vmatpush3.msra.mxu0 %v1244_v52  ;;  %3989 = vmatprep.mubr.f32.mxu0 %v4922_v18 }
 0x113   : > { %4017 = vmatprep.subr.mxu0 %v1243_v56  ;;  %1318 = vmatpush2.msra.mxu1 %v1223_v61 }
 0x114   : > { %1319 = vmatprep.mubr.f32.mxu1 %v4883_v63  ;;  %4018 = vmatpush3.msra.mxu0 %v1243_v56 }
 0x115   : > { %3990 = vmatmul.mubr.f32.gmra.mxu0 %v4934_v25  ;;  %1320 = vmatmul.mubr.f32.vlgmr.msra.gmra.mxu1 %v4808_v15 }
 0x116   : > { %4019 = vmatprep.subr.mxu0 %v1242_v62  ;;  %3992 = vmatprep.mubr.f32.mxu0 %v4922_v18 }
 0x117   : > { %4020 = vmatpush3.msra.mxu0 %v1242_v62  ;;  %1324 = vmatprep.mubr.f32.mxu1 %v4897_v5 }
 0x118   : > { %4021 = vmatprep.subr.mxu0 %v1241_v0 }
 0x119   : > { %4022 = vmatpush3.msra.mxu0 %v1241_v0  ;;  %1325 = vmatmul.mubr.f32.gmra.mxu1 %v4810_v16 }
 0x11a   : > { %3993 = vmatmul.mubr.f32.gmra.mxu0 %v4934_v25  ;;  %4023 = vmatprep.subr.mxu0 %v1240_v21 }
 0x11b   : > { %4024 = vmatpush3.msra.mxu0 %v1240_v21  ;;  %1329 = vmatprep.mubr.f32.mxu1 %v4883_v63 }
 0x11c   : > { %4025 = vmatprep.subr.mxu0 %v1239_v2  ;;  %4027 = vmatprep.mubr.f32.mxu0 %v4824_v28 }
 0x11d   : > { %4026 = vmatpush3.msra.mxu0 %v1239_v2  ;;  %1330 = vmatmul.mubr.f32.gmra.mxu1 %v4808_v15 }
 0x11e   : > { %4028 = vmatmul.mubr.f32.vlgmr.msra.gmra.mxu0 %v4829_v30  ;;  %1334 = vmatprep.mubr.f32.mxu1 %v4897_v5 }
 0x11f   : > { %4030 = vmatprep.mubr.f32.mxu0 %v4824_v28 }
 0x121   : > { %1335 = vmatmul.mubr.f32.gmra.mxu1 %v4810_v16 }
 0x122   : > { %4031 = vmatmul.mubr.f32.gmra.mxu0 %v4829_v30  ;;  %1339 = vmatprep.mubr.f32.mxu1 %v4946_v35 }
 0x123   : > { %4033 = vmatprep.mubr.f32.mxu0 %v4856_v49 }
 0x125   : > { %1340 = vmatmul.mubr.f32.gmra.mxu1 %v4831_v31 }
 0x126   : > { %4034 = vmatmul.mubr.f32.gmra.mxu0 %v4871_v55  ;;  %1344 = vmatprep.mubr.f32.mxu1 %v4960_v41 }
 0x127   : > { %4036 = vmatprep.mubr.f32.mxu0 %v4856_v49 }
 0x129   : > { %1345 = vmatmul.mubr.f32.gmra.mxu1 %v4833_v32 }
 0x12a   : > { %4037 = vmatmul.mubr.f32.gmra.mxu0 %v4871_v55  ;;  %1349 = vmatprep.mubr.f32.mxu1 %v4946_v35 }
 0x12b   : > { %4039 = vmatprep.mubr.f32.mxu0 %v4892_v3 }
 0x12d   : > { %1350 = vmatmul.mubr.f32.gmra.mxu1 %v4831_v31 }
 0x12e   : > { %1354 = vmatprep.mubr.f32.mxu1 %v4960_v41  ;;  %4040 = vmatmul.mubr.f32.gmra.mxu0 %v4905_v8 }
 0x12f   : > { %4042 = vmatprep.mubr.f32.mxu0 %v4892_v3  ;;  %v3905_v15 = vpop.f32.mrf.mxu1 }
 0x131   : > { %1355 = vmatmul.mubr.f32.gmra.mxu1 %v4833_v32  ;;  %v778_v16 = vpop.f32.mrf.mxu1 }
 0x132   : > { %1359 = vmatprep.mubr.f32.mxu1 %v4984_v1  ;;  %4043 = vmatmul.mubr.f32.gmra.mxu0 %v4905_v8 }
 0x133   : > { %4045 = vmatprep.mubr.f32.mxu0 %v4922_v18 }
 0x135   : > { %1360 = vmatmul.mubr.f32.gmra.mxu1 %v4865_v53 }
 0x136   : > { %1364 = vmatprep.mubr.f32.mxu1 %v4994_v9  ;;  %4046 = vmatmul.mubr.f32.gmra.mxu0 %v4934_v25 }
 0x137   : > { %4048 = vmatprep.mubr.f32.mxu0 %v4922_v18 }
 0x139   : > { %1365 = vmatmul.mubr.f32.gmra.mxu1 %v4867_v54 }
 0x13a   : > { %1369 = vmatprep.mubr.f32.mxu1 %v4984_v1  ;;  %4049 = vmatmul.mubr.f32.gmra.mxu0 %v4934_v25 }
 0x13b   : > { %4051 = vmatprep.mubr.f32.mxu0 %v4955_v40 }
 0x13d   : > { %1370 = vmatmul.mubr.f32.gmra.mxu1 %v4865_v53 }
 0x13e   : > { %1374 = vmatprep.mubr.f32.mxu1 %v4994_v9  ;;  %4052 = vmatmul.mubr.f32.gmra.mxu0 %v4964_v42 }
 0x13f   : > { %4054 = vmatprep.mubr.f32.mxu0 %v4955_v40 }
 0x141   : > { %1375 = vmatmul.mubr.f32.gmra.mxu1 %v4867_v54 }
 0x142   : > { %1379 = vmatprep.mubr.f32.mxu1 %v5019_v22  ;;  %4055 = vmatmul.mubr.f32.gmra.mxu0 %v4964_v42 }
 0x145   : > { %1380 = vmatmul.mubr.f32.gmra.mxu1 %v4899_v6 }
 0x146   : > { %1384 = vmatprep.mubr.f32.mxu1 %v5025_v10 }
 0x149   : > { %1385 = vmatmul.mubr.f32.gmra.mxu1 %v4901_v7 }
 0x14a   : > { %1389 = vmatprep.mubr.f32.mxu1 %v5019_v22 }
 0x14b   : > { %v3908_v28 = vpop.f32.mrf.mxu1 }
 0x14d   : > { %1390 = vmatmul.mubr.f32.gmra.mxu1 %v4899_v6  ;;  %v788_v30 = vpop.f32.mrf.mxu1 }
 0x14e   : > { %1394 = vmatprep.mubr.f32.mxu1 %v5025_v10 }
 0x150   : > { %v3911_v31 = vpop.f32.mrf.mxu1 }
 0x151   : > { %1395 = vmatmul.mubr.f32.gmra.mxu1 %v4901_v7  ;;  %v613_v32 = vpop.f32.mrf.mxu0 }
 0x152   : > { %1399 = vmatprep.mubr.f32.mxu1 %v5050_v60  ;;  %v779_v49 = vadd.f32 %v778_v16, %v613_v32  ;;  %v798_v53 = vpop.f32.mrf.mxu1 }
 0x153   : > { %v615_v54 = vpop.f32.mrf.mxu0 }
 0x154   : > { %v3914_v55 = vpop.f32.mrf.mxu1 }
 0x155   : > { %1400 = vmatmul.mubr.f32.gmra.mxu1 %v4928_v23  ;;  %v618_v63 = vpop.f32.mrf.mxu0 }
 0x156   : > { %1404 = vmatprep.mubr.f32.mxu1 %v5059_v59  ;;  %v784_v3 = vadd.f32 %v3905_v15, %v618_v63  ;;  %v808_v5 = vpop.f32.mrf.mxu1 }
 0x157   : > { %v620_v6 = vpop.f32.mrf.mxu0 }
 0x158   : > { %v3917_v8 = vpop.f32.mrf.mxu1 }
 0x159   : > { %1405 = vmatmul.mubr.f32.gmra.mxu1 %v4930_v24  ;;  %v623_v18 = vpop.f32.mrf.mxu0 }
 0x15a   : > { %1409 = vmatprep.mubr.f32.mxu1 %v5050_v60  ;;  %v789_v7 = vadd.f32 %v788_v30, %v623_v18  ;;  %v818_v25 = vpop.f32.mrf.mxu1 }
 0x15b   : > { %v625_v35 = vpop.f32.mrf.mxu0 }
 0x15c   : > { %v3920_v40 = vpop.f32.mrf.mxu1 }
 0x15d   : > { %1410 = vmatmul.mubr.f32.gmra.mxu1 %v4928_v23  ;;  %v628_v41 = vpop.f32.mrf.mxu0 }
 0x15e   : > { %1414 = vmatprep.mubr.f32.mxu1 %v5059_v59  ;;  %v794_v42 = vadd.f32 %v3908_v28, %v628_v41  ;;  %v828_v1 = vpop.f32.mrf.mxu1 }
 0x15f   : > { %v630_v9 = vpop.f32.mrf.mxu0 }
 0x160   : > { %v3923_v22 = vpop.f32.mrf.mxu1 }
 0x161   : > { %1415 = vmatmul.mubr.f32.gmra.mxu1 %v4930_v24  ;;  %v633_v10 = vpop.f32.mrf.mxu0 }
 0x162   : > { %v799_v4 = vadd.f32 %v798_v53, %v633_v10  ;;  %v838_v27 = vpop.f32.mrf.mxu1 }
 0x163   : > { %v635_v11 = vpop.f32.mrf.mxu0 }
 0x164   : > { %v3926_v60 = vpop.f32.mrf.mxu1 }
 0x165   : > { %v638_v12 = vpop.f32.mrf.mxu0 }
 0x166   : > { %v804_v43 = vadd.f32 %v3911_v31, %v638_v12  ;;  %v848_v45 = vpop.f32.mrf.mxu1 }
 0x167   : > { %v640_v13 = vpop.f32.mrf.mxu0 }
 0x168   : > { %v5177_v50 = vpop.f32.mrf.mxu1 }
 0x169   : > { %v643_v23 = vpop.f32.mrf.mxu0 }
 0x16a   : > { %v809_v46 = vadd.f32 %v808_v5, %v643_v23  ;;  %v858_v59 = vpop.f32.mrf.mxu1 }
 0x16b   : > { %v645_v14 = vpop.f32.mrf.mxu0 }
 0x16c   : > { %v5179_v57 = vpop.f32.mrf.mxu1 }
 0x16d   : > { %v648_v58 = vpop.f32.mrf.mxu0 }
 0x16e   : > { %v814_v17 = vadd.f32 %v3914_v55, %v648_v58  ;;  %v5181_v19 = vpop.f32.mrf.mxu1 }
 0x16f   : > { %v650_v24 = vpop.f32.mrf.mxu0 }
 0x172   : > { %v653_v20 = vpop.f32.mrf.mxu0  ;;  %v943_v26 = vpop.f32.mrf.mxu1 }
 0x173   : > { %v819_v29 = vadd.f32 %v818_v25, %v653_v20  ;;  %v5183_v33 = vadd.f32 %v943_v26, %v779_v49 }
 0x174   : > { %v655_v34 = vpop.f32.mrf.mxu0  ;;  %v945_v36 = vpop.f32.mrf.mxu1 }
 0x176   : > { %v658_v38 = vpop.f32.mrf.mxu0 }
 0x177   : > { %v824_v39 = vadd.f32 %v3917_v8, %v658_v38  ;;  %v948_v37 = vpop.f32.mrf.mxu1 }
 0x178   : > { %v5185_v44 = vadd.f32 %v948_v37, %v784_v3  ;;  %v660_v47 = vpop.f32.mrf.mxu0 }
 0x179   : > { %v950_v48 = vpop.f32.mrf.mxu1 }
 0x17b   : > { %v663_v51 = vpop.f32.mrf.mxu0  ;;  %v953_v52 = vpop.f32.mrf.mxu1 }
 0x17c   : > { %v829_v56 = vadd.f32 %v828_v1, %v663_v51  ;;  %v5187_v61 = vadd.f32 %v953_v52, %v789_v7 }
 0x17d   : > { %v665_v62 = vpop.f32.mrf.mxu0  ;;  %v955_v0 = vpop.f32.mrf.mxu1 }
 0x17f   : > { %v668_v21 = vpop.f32.mrf.mxu0 }
 0x180   : > { %v834_v2 = vadd.f32 %v3920_v40, %v668_v21  ;;  %v958_v15 = vpop.f32.mrf.mxu1 }
 0x181   : > { %v5189_v16 = vadd.f32 %v958_v15, %v794_v42  ;;  %v670_v28 = vpop.f32.mrf.mxu0 }
 0x182   : > { %v960_v30 = vpop.f32.mrf.mxu1 }
 0x183   : > { %v673_v31 = vpop.f32.mrf.mxu0 }
 0x184   : > { %v839_v32 = vadd.f32 %v838_v27, %v673_v31  ;;  %v963_v49 = vpop.f32.mrf.mxu1 }
 0x185   : > { %v5191_v53 = vadd.f32 %v963_v49, %v799_v4  ;;  %v675_v54 = vpop.f32.mrf.mxu0 }
 0x186   : > { %v965_v55 = vpop.f32.mrf.mxu1 }
 0x188   : > { %v678_v63 = vpop.f32.mrf.mxu0  ;;  %v968_v3 = vpop.f32.mrf.mxu1 }
 0x189   : > { %v844_v5 = vadd.f32 %v3923_v22, %v678_v63  ;;  %v5193_v6 = vadd.f32 %v968_v3, %v804_v43 }
 0x18a   : > { %v680_v8 = vpop.f32.mrf.mxu0  ;;  %v970_v18 = vpop.f32.mrf.mxu1 }
 0x18c   : > { %v683_v7 = vpop.f32.mrf.mxu0 }
 0x18d   : > { %v849_v25 = vadd.f32 %v848_v45, %v683_v7  ;;  %v973_v35 = vpop.f32.mrf.mxu1 }
 0x18e   : > { %v5195_v40 = vadd.f32 %v973_v35, %v809_v46  ;;  %v685_v41 = vpop.f32.mrf.mxu0 }
 0x18f   : > { %v975_v42 = vpop.f32.mrf.mxu1 }
 0x191   : > { %v688_v1 = vpop.f32.mrf.mxu0  ;;  %v978_v9 = vpop.f32.mrf.mxu1 }
 0x192   : > { %v854_v10 = vadd.f32 %v3926_v60, %v688_v1  ;;  %v5197_v4 = vadd.f32 %v978_v9, %v814_v17 }
 0x193   : > { %v690_v27 = vpop.f32.mrf.mxu0  ;;  %v980_v11 = vpop.f32.mrf.mxu1 }
 0x196   : > { %v693_v12 = vpop.f32.mrf.mxu0  ;;  %v983_v22 = vpop.f32.mrf.mxu1 }
 0x197   : > { %v859_v43 = vadd.f32 %v858_v59, %v693_v12  ;;  %v5199_v13 = vadd.f32 %v983_v22, %v819_v29 }
 0x198   : > { %v695_v23 = vpop.f32.mrf.mxu0  ;;  %v985_v14 = vpop.f32.mrf.mxu1 }
 0x19b   : > { %v698_v45 = vpop.f32.mrf.mxu0 }
 0x19c   : > { %v864_v46 = vadd.f32 %v5177_v50, %v698_v45  ;;  %v988_v58 = vpop.f32.mrf.mxu1 }
 0x19d   : > { %v5202_v24 = vadd.f32 %v988_v58, %v824_v39  ;;  %v700_v20 = vpop.f32.mrf.mxu0 }
 0x19e   : > { %v990_v26 = vpop.f32.mrf.mxu1 }
 0x1a1   : > { %v703_v60 = vpop.f32.mrf.mxu0  ;;  %v993_v17 = vpop.f32.mrf.mxu1 }
 0x1a2   : > { %v869_v34 = vadd.f32 %v5181_v19, %v703_v60  ;;  %v5205_v36 = vadd.f32 %v993_v17, %v829_v56 }
 0x1a3   : > { %v705_v38 = vpop.f32.mrf.mxu0  ;;  %v995_v59 = vpop.f32.mrf.mxu1 }
 0x1a6   : > { %v708_v29 = vpop.f32.mrf.mxu0 }
 0x1a7   : > { %v874_v37 = vadd.f32 %v5179_v57, %v708_v29  ;;  %v998_v47 = vpop.f32.mrf.mxu1 }
 0x1a8   : > { %v5208_v48 = vadd.f32 %v998_v47, %v834_v2  ;;  %v710_v50 = vpop.f32.mrf.mxu0 }
 0x1a9   : > { %v1000_v51 = vpop.f32.mrf.mxu1 }
 0x1ac   : > { %v1003_v39 = vpop.f32.mrf.mxu1  ;;  %v3967_v52 = vpop.f32.mrf.mxu0 }
 0x1ad   : > { %v5210_v62 = vadd.f32 %v1003_v39, %v839_v32 }
 0x1ae   : > { %v1005_v0 = vpop.f32.mrf.mxu1  ;;  %v1108_v21 = vpop.f32.mrf.mxu0 }
 0x1af   : > { %v1114_v0 = vadd.f32 %v3967_v52, %v5185_v44 }
 0x1b0   : > { %v3970_v15 = vpop.f32.mrf.mxu0 }
 0x1b1   : > { %v1008_v19 = vpop.f32.mrf.mxu1 }
 0x1b2   : > { %v5212_v56 = vadd.f32 %v1008_v19, %v844_v5  ;;  %v1118_v28 = vpop.f32.mrf.mxu0 }
 0x1b3   : > { %v1010_v30 = vpop.f32.mrf.mxu1  ;;  %v1119_v52 = vadd.f32 %v1118_v28, %v5187_v61 }
 0x1b4   : > { %v5214_v31 = vpop.f32.mrf.mxu0 }
 0x1b5   : > { %v1013_v57 = vpop.f32.mrf.mxu1 }
 0x1b6   : > { %v5216_v49 = vadd.f32 %v1013_v57, %v849_v25  ;;  %v5218_v2 = vpop.f32.mrf.mxu0 }
 0x1b7   : > { %v1015_v54 = vpop.f32.mrf.mxu1 }
 0x1b8   : > { %v5256_v54 = vld [vmem:[%s6036_s3] ss:$0 sm:$0xff] }
 0x1b9   : > { %v1018_v55 = vpop.f32.mrf.mxu1  ;;  %v5220_v63 = vpop.f32.mrf.mxu0 }
 0x1ba   : > { %v5222_v32 = vadd.f32 %v1018_v55, %v854_v10  ;;  %v1109_v55 = vadd.f32 %v1108_v21, %v5183_v33 }
 0x1bb   : > { %v1020_v3 = vpop.f32.mrf.mxu1  ;;  %v5224_v8 = vpop.f32.mrf.mxu0 }
 0x1be   : > { %v1023_v5 = vpop.f32.mrf.mxu1 }
 0x1bf   : > { %v5226_v18 = vadd.f32 %v1023_v5, %v859_v43  ;;  %v5228_v7 = vpop.f32.mrf.mxu0 }
 0x1c0   : > { %v1025_v35 = vpop.f32.mrf.mxu1 }
 0x1c1   : > { %v5230_v41 = vpop.f32.mrf.mxu0 }
 0x1c4   : > { %v1028_v25 = vpop.f32.mrf.mxu1  ;;  %v5232_v42 = vpop.f32.mrf.mxu0 }
 0x1c5   : > { %v1029_v1 = vadd.f32 %v1028_v25, %v864_v46 }
 0x1c6   : > { %v1030_v9 = vpop.f32.mrf.mxu1  ;;  %v5234_v27 = vpop.f32.mrf.mxu0 }
 0x1ca   : > { %v1033_v10 = vpop.f32.mrf.mxu1  ;;  %v5236_v11 = vpop.f32.mrf.mxu0 }
 0x1cb   : > { %v1034_v12 = vadd.f32 %v1033_v10, %v869_v34 }
 0x1cc   : > { %v1035_v22 = vpop.f32.mrf.mxu1  ;;  %v5238_v23 = vpop.f32.mrf.mxu0 }
 0x1cf   : > { %v1038_v43 = vpop.f32.mrf.mxu1 }
 0x1d0   : > { %v1039_v14 = vadd.f32 %v1038_v43, %v874_v37  ;;  %v5240_v45 = vpop.f32.mrf.mxu0 }
 0x1d1   : > { %v1040_v58 = vpop.f32.mrf.mxu1 }
 0x1d2   : > { %v5242_v20 = vpop.f32.mrf.mxu0 }
 0x1d5   : > { %v3991_v26 = vpop.f32.mrf.mxu0  ;;  %v1321_v60 = vpop.f32.mrf.mxu1 }
 0x1d6   : > { %v5244_v46 = vadd.f32 %v3991_v26, %v1029_v1  ;;  %v1124_v1 = vadd.f32 %v3970_v15, %v5189_v16 }
 0x1d7   : > { %v5246_v17 = vpop.f32.mrf.mxu0  ;;  %v1323_v38 = vpop.f32.mrf.mxu1 }
 0x1d9   : > { %v1326_v59 = vpop.f32.mrf.mxu1 }
 0x1da   : > { %v3994_v29 = vpop.f32.mrf.mxu0 }
 0x1db   : > { %v5248_v34 = vadd.f32 %v3994_v29, %v1039_v14  ;;  %v1328_v47 = vpop.f32.mrf.mxu1  ;;  %v1129_v29 = vadd.f32 %v5218_v2, %v5191_v53 }
 0x1dc   : > { %v1198_v50 = vpop.f32.mrf.mxu0 }
 0x1dd   : > { %v5250_v51 = vadd.f32 %v1198_v50, %v1034_v12  ;;  %v1331_v37 = vpop.f32.mrf.mxu1 }
 0x1de   : > { %v4029_v39 = vpop.f32.mrf.mxu0 }
 0x1df   : > { %v1492_v19 = vadd.f32 %v4029_v39, %v1326_v59  ;;  %v1333_v30 = vpop.f32.mrf.mxu1 }
 0x1e0   : > { %v1486_v57 = vpop.f32.mrf.mxu0 }
 0x1e1   : > { %v1586_v3 = vadd.f32 %v1492_v19, %v1114_v0  ;;  %v1487_v5 = vadd.f32 %v1486_v57, %v1321_v60  ;;  %v1336_v35 = vpop.f32.mrf.mxu1  ;;  %v1134_v0 = vadd.f32 %v5214_v31, %v5193_v6 }
 0x1e2   : > { %v4032_v25 = vpop.f32.mrf.mxu0 }
 0x1e3   : > { %v1585_v9 = vadd.f32 %v1487_v5, %v1109_v55  ;;  %v1502_v10 = vadd.f32 %v4032_v25, %v1336_v35  ;;  %v1338_v12 = vpop.f32.mrf.mxu1  ;;  %v1613_v44 = vadd.f32 %v5256_v54, %v1586_v3 }
 0x1e4   : > { %v1496_v22 = vpop.f32.mrf.mxu0 }
 0x1e5   : > { %v1612_v43 = vadd.f32 %v5256_v54, %v1585_v9  ;;  %v1588_v14 = vadd.f32 %v1502_v10, %v1124_v1  ;;  %v1497_v58 = vadd.f32 %v1496_v22, %v1331_v37  ;;  %v1341_v26 = vpop.f32.mrf.mxu1  ;;  %v1633_v33 = vmul.f32 0.2, %v1613_v44 }
 0x1e6   : > { %v4035_v21 = vpop.f32.mrf.mxu0  ;;  %v1139_v10 = vadd.f32 %v5224_v8, %v5195_v40 }
 0x1e7   : > { %v1587_v60 = vadd.f32 %v1497_v58, %v1119_v52  ;;  %v1343_v38 = vpop.f32.mrf.mxu1  ;;  %v5263_v59 = vmax.f32 %v1613_v44, %v1633_v33  ;;  %v1615_v16 = vadd.f32 %v5256_v54, %v1588_v14  ;;  %v1632_v15 = vmul.f32 0.2, %v1612_v43 }
 0x1e8   : > { %v1506_v47 = vpop.f32.mrf.mxu0 }
 0x1e9   : > { %v1614_v61 = vadd.f32 %v5256_v54, %v1587_v60  ;;  %v1507_v28 = vadd.f32 %v1506_v47, %v1341_v26  ;;  %v1346_v50 = vpop.f32.mrf.mxu1  ;;  %v1673_v37 = vmul.f32 %v5263_v59, %v5263_v59  ;;  %v1635_v39 = vmul.f32 0.2, %v1615_v16 }
 0x1ea   : > { %v1512_v19 = vadd.f32 %v4035_v21, %v1346_v50  ;;  %v4038_v30 = vpop.f32.mrf.mxu0  ;;  %v5273_v57 = vmax.f32 %v1612_v43, %v1632_v15  ;;  %v1144_v60 = vadd.f32 %v5220_v63, %v5197_v4  ;;  %v1149_v4 = vadd.f32 %v5230_v41, %v5199_v13 }
 0x1eb   : > { %v1589_v55 = vadd.f32 %v1507_v28, %v1129_v29  ;;  %1694 = vadd.xlane.f32.xlu0 %v1673_v37  ;;  %v1348_v3 = vpop.f32.mrf.mxu1  ;;  %v5275_v53 = vmax.f32 %v1615_v16, %v1635_v39  ;;  %v1634_v2 = vmul.f32 0.2, %v1614_v61 }
 0x1ec   : > { %v1590_v5 = vadd.f32 %v1512_v19, %v1134_v0  ;;  %v1516_v35 = vpop.f32.mrf.mxu0  ;;  %v1672_v6 = vmul.f32 %v5273_v57, %v5273_v57 }
 0x1ed   : > { %v1616_v25 = vadd.f32 %v5256_v54, %v1589_v55  ;;  %v1351_v1 = vpop.f32.mrf.mxu1  ;;  %v1675_v9 = vmul.f32 %v5275_v53, %v5275_v53  ;;  %v5282_v31 = vmax.f32 %v1614_v61, %v1634_v2 }
 0x1ee   : > { %v1617_v12 = vadd.f32 %v5256_v54, %v1590_v5  ;;  %v1517_v44 = vadd.f32 %v1516_v35, %v1351_v1  ;;  %v4041_v22 = vpop.f32.mrf.mxu0  ;;  %v1154_v5 = vadd.f32 %v5228_v7, %v5202_v24 }
 0x1ef   : > { %1698 = vadd.xlane.f32.xlu1 %v1675_v9  ;;  %1692 = vadd.xlane.f32.xlu0 %v1672_v6  ;;  %v1353_v52 = vpop.f32.mrf.mxu1  ;;  %v1636_v43 = vmul.f32 0.2, %v1616_v25  ;;  %v1674_v33 = vmul.f32 %v5282_v31, %v5282_v31 }
 0x1f0   : > { %v1591_v14 = vadd.f32 %v1517_v44, %v1139_v10  ;;  %v1637_v58 = vmul.f32 0.2, %v1617_v12  ;;  %v1526_v29 = vpop.f32.mrf.mxu0  ;;  %v1159_v44 = vadd.f32 %v5234_v27, %v5205_v36 }
 0x1f1   : > { %v1356_v26 = vpop.f32.mrf.mxu1  ;;  %v5289_v21 = vmax.f32 %v1616_v25, %v1636_v43 }
 0x1f2   : > { %v1618_v40 = vadd.f32 %v5256_v54, %v1591_v14  ;;  %v1522_v8 = vadd.f32 %v4038_v30, %v1356_v26  ;;  %v5294_v38 = vmax.f32 %v1617_v12, %v1637_v58  ;;  %v4044_v19 = vpop.f32.mrf.mxu0 }
 0x1f3   : > { %1696 = vadd.xlane.f32.xlu1 %v1674_v33  ;;  %v1358_v16 = vpop.f32.mrf.mxu1  ;;  %v1676_v15 = vmul.f32 %v5289_v21, %v5289_v21 }
 0x1f4   : > { %v1592_v47 = vadd.f32 %v1522_v8, %v1144_v60  ;;  %v1677_v61 = vmul.f32 %v5294_v38, %v5294_v38  ;;  %v1638_v28 = vmul.f32 0.2, %v1618_v40  ;;  %v1536_v1 = vpop.f32.mrf.mxu0  ;;  %v1164_v60 = vadd.f32 %v5232_v42, %v5208_v48 }
 0x1f5   : > { %1700 = vadd.xlane.f32.xlu0 %v1676_v15  ;;  %v1361_v50 = vpop.f32.mrf.mxu1 }
 0x1f6   : > { %v1619_v63 = vadd.f32 %v5256_v54, %v1592_v47  ;;  %v1527_v37 = vadd.f32 %v1526_v29, %v1361_v50  ;;  %v5303_v39 = vmax.f32 %v1618_v40, %v1638_v28  ;;  %v4047_v43 = vpop.f32.mrf.mxu0  ;;  %v1169_v28 = vadd.f32 %v5238_v23, %v5210_v62 }
 0x1f7   : > { %1702 = vadd.xlane.f32.xlu1 %v1677_v61  ;;  %v1363_v0 = vpop.f32.mrf.mxu1 }
 0x1f8   : > { %v1593_v30 = vadd.f32 %v1527_v37, %v1149_v4  ;;  %v1678_v55 = vmul.f32 %v5303_v39, %v5303_v39  ;;  %v1639_v3 = vmul.f32 0.2, %v1619_v63  ;;  %v1546_v16 = vpop.f32.mrf.mxu0 }
 0x1f9   : > { %v1366_v2 = vpop.f32.mrf.mxu1 }
 0x1fa   : > { %v1620_v35 = vadd.f32 %v5256_v54, %v1593_v30  ;;  %v1532_v13 = vadd.f32 %v4041_v22, %v1366_v2  ;;  %1704 = vadd.xlane.f32.xlu0 %v1678_v55  ;;  %v5310_v41 = vmax.f32 %v1619_v63, %v1639_v3  ;;  %v4050_v63 = vpop.f32.mrf.mxu0  ;;  %v1174_v55 = vadd.f32 %v5236_v11, %v5212_v56 }
 0x1fb   : > { %v1368_v25 = vpop.f32.mrf.mxu1 }
 0x1fc   : > { %v1594_v9 = vadd.f32 %v1532_v13, %v1154_v5  ;;  %v1679_v6 = vmul.f32 %v5310_v41, %v5310_v41  ;;  %v1640_v10 = vmul.f32 0.2, %v1620_v35  ;;  %v1556_v5 = vpop.f32.mrf.mxu0 }
 0x1fd   : > { %v1371_v12 = vpop.f32.mrf.mxu1 }
 0x1fe   : > { %v1621_v52 = vadd.f32 %v5256_v54, %v1594_v9  ;;  %v1537_v24 = vadd.f32 %v1536_v1, %v1371_v12  ;;  %1706 = vadd.xlane.f32.xlu1 %v1679_v6  ;;  %v5317_v7 = vmax.f32 %v1620_v35, %v1640_v10  ;;  %v1179_v9 = vadd.f32 %v5242_v20, %v5216_v49  ;;  %v4053_v12 = vpop.f32.mrf.mxu0 }
 0x1ff   : > { %v1373_v22 = vpop.f32.mrf.mxu1 }
 0x200   : > { %v1595_v14 = vadd.f32 %v1537_v24, %v1159_v44  ;;  %v1680_v58 = vmul.f32 %v5317_v7, %v5317_v7  ;;  %v1641_v26 = vmul.f32 0.2, %v1621_v52 }
 0x201   : > { %v1376_v33 = vpop.f32.mrf.mxu1 }
 0x202   : > { %v1622_v40 = vadd.f32 %v5256_v54, %v1595_v14  ;;  %v1542_v36 = vadd.f32 %v4044_v19, %v1376_v33  ;;  %1708 = vadd.xlane.f32.xlu0 %v1680_v58  ;;  %v5324_v27 = vmax.f32 %v1621_v52, %v1641_v26  ;;  %v1566_v26 = vpop.f32.mrf.mxu0 }
 0x203   : > { %v1378_v8 = vpop.f32.mrf.mxu1 }
 0x204   : > { %v1596_v15 = vadd.f32 %v1542_v36, %v1164_v60  ;;  %v1681_v29 = vmul.f32 %v5324_v27, %v5324_v27  ;;  %v1642_v47 = vmul.f32 0.2, %v1622_v40  ;;  %v1189_v8 = vadd.f32 %v5246_v17, %v5226_v18 }
 0x205   : > { %v1381_v61 = vpop.f32.mrf.mxu1 }
 0x206   : > { %v1623_v50 = vadd.f32 %v5256_v54, %v1596_v15  ;;  %v1547_v48 = vadd.f32 %v1546_v16, %v1381_v61  ;;  %1710 = vadd.xlane.f32.xlu1 %v1681_v29  ;;  %v5331_v42 = vmax.f32 %v1622_v40, %v1642_v47  ;;  %v4056_v29 = vpop.f32.mrf.mxu0 }
 0x207   : > { %v1383_v4 = vpop.f32.mrf.mxu1 }
 0x208   : > { %v1597_v37 = vadd.f32 %v1547_v48, %v1169_v28  ;;  %v1682_v0 = vmul.f32 %v5331_v42, %v5331_v42  ;;  %v1643_v19 = vmul.f32 0.2, %v1623_v50  ;;  %v1576_v17 = vpop.f32.mrf.mxu0 }
 0x209   : > { %v1386_v30 = vpop.f32.mrf.mxu1 }
 0x20a   : > { %v1624_v3 = vadd.f32 %v5256_v54, %v1597_v37  ;;  %v1552_v62 = vadd.f32 %v4047_v43, %v1386_v30  ;;  %1712 = vadd.xlane.f32.xlu0 %v1682_v0  ;;  %v5338_v23 = vmax.f32 %v1623_v50, %v1643_v19  ;;  %v1184_v43 = vadd.f32 %v5240_v45, %v5222_v32 }
 0x20b   : > { %v1388_v2 = vpop.f32.mrf.mxu1 }
 0x20c   : > { %v1598_v35 = vadd.f32 %v1552_v62, %v1174_v55  ;;  %v1683_v13 = vmul.f32 %v5338_v23, %v5338_v23  ;;  %v1644_v25 = vmul.f32 0.2, %v1624_v3 }
 0x20d   : > { %v1391_v1 = vpop.f32.mrf.mxu1 }
 0x20e   : > { %v1625_v6 = vadd.f32 %v5256_v54, %v1598_v35  ;;  %v1557_v56 = vadd.f32 %v1556_v5, %v1391_v1  ;;  %1714 = vadd.xlane.f32.xlu1 %v1683_v13  ;;  %v5345_v11 = vmax.f32 %v1624_v3, %v1644_v25 }
 0x20f   : > { %v1393_v10 = vpop.f32.mrf.mxu1 }
 0x210   : > { %v1599_v44 = vadd.f32 %v1557_v56, %v1179_v9  ;;  %v1684_v52 = vmul.f32 %v5345_v11, %v5345_v11  ;;  %v1645_v24 = vmul.f32 0.2, %v1625_v6 }
 0x211   : > { %v1396_v22 = vpop.f32.mrf.mxu1 }
 0x212   : > { %v1626_v14 = vadd.f32 %v5256_v54, %v1599_v44  ;;  %v1562_v49 = vadd.f32 %v4050_v63, %v1396_v22  ;;  %1716 = vadd.xlane.f32.xlu0 %v1684_v52  ;;  %v5352_v20 = vmax.f32 %v1625_v6, %v1645_v24 }
 0x213   : > { %v1398_v58 = vpop.f32.mrf.mxu1 }
 0x214   : > { %v1600_v33 = vadd.f32 %v1562_v49, %v1184_v43  ;;  %v1685_v60 = vmul.f32 %v5352_v20, %v5352_v20  ;;  %v1646_v40 = vmul.f32 0.2, %v1626_v14 }
 0x215   : > { %v1401_v36 = vpop.f32.mrf.mxu1 }
 0x216   : > { %v1627_v16 = vadd.f32 %v5256_v54, %v1600_v33  ;;  %v1567_v32 = vadd.f32 %v1566_v26, %v1401_v36  ;;  %1718 = vadd.xlane.f32.xlu1 %v1685_v60  ;;  %v5359_v45 = vmax.f32 %v1626_v14, %v1646_v40 }
 0x217   : > { %v1403_v15 = vpop.f32.mrf.mxu1 }
 0x218   : > { %v1601_v47 = vadd.f32 %v1567_v32, %v1189_v8  ;;  %v1686_v61 = vmul.f32 %v5359_v45, %v5359_v45  ;;  %v1647_v28 = vmul.f32 0.2, %v1627_v16 }
 0x219   : > { %v1406_v50 = vpop.f32.mrf.mxu1 }
 0x21a   : > { %v1628_v48 = vadd.f32 %v5256_v54, %v1601_v47  ;;  %v1572_v4 = vadd.f32 %v4053_v12, %v1406_v50  ;;  %1720 = vadd.xlane.f32.xlu0 %v1686_v61  ;;  %v5364_v63 = vmax.f32 %v1627_v16, %v1647_v28 }
 0x21b   : > { %v1408_v18 = vpop.f32.mrf.mxu1 }
 0x21c   : > { %v1602_v37 = vadd.f32 %v1572_v4, %v5244_v46  ;;  %v1687_v0 = vmul.f32 %v5364_v63, %v5364_v63  ;;  %v1648_v19 = vmul.f32 0.2, %v1628_v48 }
 0x21d   : > { %v1411_v30 = vpop.f32.mrf.mxu1 }
 0x21e   : > { %v1629_v55 = vadd.f32 %v5256_v54, %v1602_v37  ;;  %v1577_v3 = vadd.f32 %v1576_v17, %v1411_v30  ;;  %1722 = vadd.xlane.f32.xlu1 %v1687_v0  ;;  %v5370_v62 = vmax.f32 %v1628_v48, %v1648_v19 }
 0x21f   : > { %v1413_v2 = vpop.f32.mrf.mxu1 }
 0x220   : > { %v1603_v5 = vadd.f32 %v1577_v3, %v5250_v51  ;;  %v1688_v35 = vmul.f32 %v5370_v62, %v5370_v62  ;;  %v1649_v13 = vmul.f32 0.2, %v1629_v55 }
 0x221   : > { %v1416_v25 = vpop.f32.mrf.mxu1 }
 0x222   : > { %v1630_v46 = vadd.f32 %v5256_v54, %v1603_v5  ;;  %v1582_v1 = vadd.f32 %v4056_v29, %v1416_v25  ;;  %1724 = vadd.xlane.f32.xlu0 %v1688_v35  ;;  %v5376_v9 = vmax.f32 %v1629_v55, %v1649_v13 }
 0x223   : > { %v1418_v6 = vpop.f32.mrf.mxu1 }
 0x224   : > { %v1604_v56 = vadd.f32 %v1582_v1, %v5248_v34  ;;  %v1689_v10 = vmul.f32 %v5376_v9, %v5376_v9  ;;  %v1650_v12 = vmul.f32 0.2, %v1630_v46 }
 0x226   : > { %v1631_v51 = vadd.f32 %v5256_v54, %v1604_v56  ;;  %1726 = vadd.xlane.f32.xlu1 %v1689_v10  ;;  %v5382_v44 = vmax.f32 %v1630_v46, %v1650_v12 }
 0x228   : > { %v1690_v52 = vmul.f32 %v5382_v44, %v5382_v44  ;;  %v1651_v24 = vmul.f32 0.2, %v1631_v51 }
 0x22a   : > { %1728 = vadd.xlane.f32.xlu0 %v1690_v52  ;;  %v5386_v22 = vmax.f32 %v1631_v51, %v1651_v24 }
 0x22c   : > { %v1691_v43 = vmul.f32 %v5386_v22, %v5386_v22 }
 0x22e   : > { %1730 = vadd.xlane.f32.xlu1 %v1691_v43 }
 0x274   : > { %v1695_v34 = vpop.xlane.xlu0 %1694 }
 0x275   : > { %v1733_v14 = vmul.f32 0.125, %v1695_v34 }
 0x277   : > { %v1753_v49 = vadd.f32 1e-08, %v1733_v14 }
 0x278   : > { %v1699_v58 = vpop.xlane.xlu1 %1698  ;;  %v1693_v26 = vpop.xlane.xlu0 %1692 }
 0x279   : > { %4324 = vrsqrt.f32 %v1753_v49  ;;  %v1735_v54 = vmul.f32 0.125, %v1699_v58  ;;  %v1732_v33 = vmul.f32 0.125, %v1693_v26 }
 0x27b   : > { %v1755_v60 = vadd.f32 1e-08, %v1735_v54  ;;  %v1752_v40 = vadd.f32 1e-08, %v1732_v33 }
 0x27c   : > { %v1697_v36 = vpop.xlane.xlu1 %1696 }
 0x27d   : > { %4326 = vrsqrt.f32 %v1755_v60  ;;  %v1734_v8 = vmul.f32 0.125, %v1697_v36 }
 0x27e   : > { %4328 = vrsqrt.f32 %v1752_v40  ;;  %v1701_v16 = vpop.xlane.xlu0 %1700 }
 0x27f   : > { %v1754_v32 = vadd.f32 1e-08, %v1734_v8  ;;  %v1736_v15 = vmul.f32 0.125, %v1701_v16 }
 0x280   : > { %v1703_v29 = vpop.xlane.xlu1 %1702 }
 0x281   : > { %4330 = vrsqrt.f32 %v1754_v32  ;;  %v1756_v47 = vadd.f32 1e-08, %v1736_v15  ;;  %v1737_v61 = vmul.f32 0.125, %v1703_v29 }
 0x283   : > { %4332 = vrsqrt.f32 %v1756_v47  ;;  %v1757_v28 = vadd.f32 1e-08, %v1737_v61  ;;  %v1705_v50 = vpop.xlane.xlu0 %1704 }
 0x284   : > { %v1738_v48 = vmul.f32 0.125, %v1705_v50 }
 0x285   : > { %4334 = vrsqrt.f32 %v1757_v28 }
 0x286   : > { %v4325_v4 = vpop.eup %4324  ;;  %v1758_v18 = vadd.f32 1e-08, %v1738_v48 }
 0x287   : > { %v1793_v17 = vmul.f32 %v4325_v4, %v5263_v59  ;;  %v1707_v37 = vpop.xlane.xlu1 %1706 }
 0x288   : > { %4336 = vrsqrt.f32 %v1758_v18  ;;  %v1739_v0 = vmul.f32 0.125, %v1707_v37 }
 0x289   : > { %1833 = vst [vmem:[#allocation3 + $0x9] sm:$0xff] %v1793_v17 }
 0x28a   : > { %v4327_v19 = vpop.eup %4326  ;;  %v1759_v30 = vadd.f32 1e-08, %v1739_v0 }
 0x28b   : > { %v4329_v55 = vpop.eup %4328  ;;  %v1795_v3 = vmul.f32 %v4327_v19, %v5275_v53  ;;  %v1709_v2 = vpop.xlane.xlu0 %1708 }
 0x28c   : > { %v1792_v5 = vmul.f32 %v4329_v55, %v5273_v57  ;;  %4338 = vrsqrt.f32 %v1759_v30  ;;  %v1740_v35 = vmul.f32 0.125, %v1709_v2 }
 0x28d   : > { %1835 = vst [vmem:[#allocation3 + $0x21] sm:$0xff] %v1795_v3 }
 0x28e   : > { %v4331_v13 = vpop.eup %4330  ;;  %1832 = vst [vmem:[#allocation3 + $0x1] sm:$0xff] %v1792_v5  ;;  %v1760_v25 = vadd.f32 1e-08, %v1740_v35 }
 0x28f   : > { %v1794_v59 = vmul.f32 %v4331_v13, %v5282_v31  ;;  %v1711_v46 = vpop.xlane.xlu1 %1710 }
 0x290   : > { %v4333_v1 = vpop.eup %4332  ;;  %4340 = vrsqrt.f32 %v1760_v25  ;;  %v1741_v6 = vmul.f32 0.125, %v1711_v46 }
 0x291   : > { %1834 = vst [vmem:[#allocation3 + $0x19] sm:$0xff] %v1794_v59  ;;  %v1796_v56 = vmul.f32 %v4333_v1, %v5289_v21 }
 0x292   : > { %v4335_v10 = vpop.eup %4334  ;;  %v1761_v53 = vadd.f32 1e-08, %v1741_v6 }
 0x293   : > { %1836 = vst [vmem:[#allocation3 + $0x31] sm:$0xff] %v1796_v56  ;;  %v1797_v57 = vmul.f32 %v4335_v10, %v5294_v38  ;;  %v1713_v12 = vpop.xlane.xlu0 %1712 }
 0x294   : > { %4342 = vrsqrt.f32 %v1761_v53  ;;  %v1742_v51 = vmul.f32 0.125, %v1713_v12 }
 0x295   : > { %v4337_v52 = vpop.eup %4336  ;;  %1837 = vst [vmem:[#allocation3 + $0x39] sm:$0xff] %v1797_v57 }
 0x296   : > { %v1798_v24 = vmul.f32 %v4337_v52, %v5303_v39  ;;  %v1762_v31 = vadd.f32 1e-08, %v1742_v51 }
 0x297   : > { %v1715_v43 = vpop.xlane.xlu1 %1714 }
 0x298   : > { %1838 = vst [vmem:[#allocation3 + $0x49] sm:$0xff] %v1798_v24  ;;  %4344 = vrsqrt.f32 %v1762_v31  ;;  %v1743_v34 = vmul.f32 0.125, %v1715_v43 }
 0x299   : > { %v4339_v14 = vpop.eup %4338 }
 0x29a   : > { %v1799_v21 = vmul.f32 %v4339_v14, %v5310_v41  ;;  %v1763_v49 = vadd.f32 1e-08, %v1743_v34 }
 0x29b   : > { %v1717_v58 = vpop.xlane.xlu0 %1716 }
 0x29c   : > { %1839 = vst [vmem:[#allocation3 + $0x51] sm:$0xff] %v1799_v21  ;;  %4346 = vrsqrt.f32 %v1763_v49  ;;  %v1744_v38 = vmul.f32 0.125, %v1717_v58 }
 0x29d   : > { %v4341_v26 = vpop.eup %4340 }
 0x29e   : > { %v1800_v54 = vmul.f32 %v4341_v26, %v5317_v7  ;;  %v1764_v33 = vadd.f32 1e-08, %v1744_v38 }
 0x29f   : > { %v1719_v60 = vpop.xlane.xlu1 %1718 }
 0x2a0   : > { %1840 = vst [vmem:[#allocation3 + $0x61] sm:$0xff] %v1800_v54  ;;  %4348 = vrsqrt.f32 %v1764_v33  ;;  %v1745_v39 = vmul.f32 0.125, %v1719_v60 }
 0x2a1   : > { %v4343_v40 = vpop.eup %4342 }
 0x2a2   : > { %v1801_v36 = vmul.f32 %v4343_v40, %v5324_v27  ;;  %v1765_v8 = vadd.f32 1e-08, %v1745_v39 }
 0x2a3   : > { %v1721_v16 = vpop.xlane.xlu0 %1720 }
 0x2a4   : > { %1841 = vst [vmem:[#allocation3 + $0x69] sm:$0xff] %v1801_v36  ;;  %4350 = vrsqrt.f32 %v1765_v8  ;;  %v1746_v41 = vmul.f32 0.125, %v1721_v16 }
 0x2a5   : > { %v4345_v32 = vpop.eup %4344 }
 0x2a6   : > { %v1802_v15 = vmul.f32 %v4345_v32, %v5331_v42  ;;  %v1766_v29 = vadd.f32 1e-08, %v1746_v41 }
 0x2a7   : > { %v1723_v47 = vpop.xlane.xlu1 %1722 }
 0x2a8   : > { %1842 = vst [vmem:[#allocation3 + $0x79] sm:$0xff] %v1802_v15  ;;  %4352 = vrsqrt.f32 %v1766_v29  ;;  %v1747_v7 = vmul.f32 0.125, %v1723_v47 }
 0x2a9   : > { %v4347_v61 = vpop.eup %4346 }
 0x2aa   : > { %v1803_v28 = vmul.f32 %v4347_v61, %v5338_v23  ;;  %v1767_v50 = vadd.f32 1e-08, %v1747_v7 }
 0x2ab   : > { %v1725_v48 = vpop.xlane.xlu0 %1724 }
 0x2ac   : > { %1843 = vst [vmem:[#allocation3 + $0x81] sm:$0xff] %v1803_v28  ;;  %4354 = vrsqrt.f32 %v1767_v50  ;;  %v1748_v27 = vmul.f32 0.125, %v1725_v48 }
 0x2ad   : > { %v4349_v4 = vpop.eup %4348 }
 0x2ae   : > { %v1804_v18 = vmul.f32 %v4349_v4, %v5345_v11  ;;  %v1768_v17 = vadd.f32 1e-08, %v1748_v27 }
 0x2af   : > { %v1727_v37 = vpop.xlane.xlu1 %1726 }
 0x2b0   : > { %1844 = vst [vmem:[#allocation3 + $0x91] sm:$0xff] %v1804_v18  ;;  %4356 = vrsqrt.f32 %v1768_v17  ;;  %v1749_v42 = vmul.f32 0.125, %v1727_v37 }
 0x2b1   : > { %v4351_v0 = vpop.eup %4350 }
 0x2b2   : > { %v1805_v19 = vmul.f32 %v4351_v0, %v5352_v20  ;;  %v1769_v30 = vadd.f32 1e-08, %v1749_v42 }
 0x2b3   : > { %v1729_v55 = vpop.xlane.xlu0 %1728 }
 0x2b4   : > { %1845 = vst [vmem:[#allocation3 + $0x99] sm:$0xff] %v1805_v19  ;;  %4358 = vrsqrt.f32 %v1769_v30  ;;  %v1750_v23 = vmul.f32 0.125, %v1729_v55 }
 0x2b5   : > { %v4353_v3 = vpop.eup %4352 }
 0x2b6   : > { %v1806_v2 = vmul.f32 %v4353_v3, %v5359_v45  ;;  %v1770_v5 = vadd.f32 1e-08, %v1750_v23 }
 0x2b7   : > { %v1731_v35 = vpop.xlane.xlu1 %1730 }
 0x2b8   : > { %1846 = vst [vmem:[#allocation3 + $0xa9] sm:$0xff] %v1806_v2  ;;  %4360 = vrsqrt.f32 %v1770_v5  ;;  %v1751_v11 = vmul.f32 0.125, %v1731_v35 }
 0x2b9   : > { %v4355_v13 = vpop.eup %4354 }
 0x2ba   : > { %v1807_v25 = vmul.f32 %v4355_v13, %v5364_v63  ;;  %v1771_v59 = vadd.f32 1e-08, %v1751_v11 }
 0x2bc   : > { %1847 = vst [vmem:[#allocation3 + $0xb1] sm:$0xff] %v1807_v25  ;;  %4362 = vrsqrt.f32 %v1771_v59 }
 0x2bd   : > { %v4357_v20 = vpop.eup %4356 }
 0x2be   : > { %v1808_v46 = vmul.f32 %v4357_v20, %v5370_v62 }
 0x2c0   : > { %1848 = vst [vmem:[#allocation3 + $0xc1] sm:$0xff] %v1808_v46 }
 0x2c1   : > { %v4359_v1 = vpop.eup %4358 }
 0x2c2   : > { %v1809_v6 = vmul.f32 %v4359_v1, %v5376_v9 }
 0x2c4   : > { %1849 = vst [vmem:[#allocation3 + $0xc9] sm:$0xff] %v1809_v6 }
 0x2c5   : > { %v4361_v45 = vpop.eup %4360 }
 0x2c6   : > { %v1810_v56 = vmul.f32 %v4361_v45, %v5382_v44 }
 0x2c8   : > { %1850 = vst [vmem:[#allocation3 + $0xd9] sm:$0xff] %v1810_v56  ;;  %1855 = sbr.rel (%p3418_p10) target bundleno = 720 (0x2d0), region = 86 }
 0x2c9   : > { %v4363_v10 = vpop.eup %4362 }
 0x2ca   : > { %v1811_v53 = vmul.f32 %v4363_v10, %v5386_v22 }
 0x2cc   : > { %1851 = vst [vmem:[#allocation3 + $0xe1] sm:$0xff] %v1811_v53 }
 0x2cd   : > { %v4557_v63 = vmov 0.0  }
 0x2ce   : > { %1856 = vst [vmem:[#allocation3] sm:$0xff] %v4557_v63  ;;  %1857 = vst [vmem:[#allocation3 + $0x8] sm:$0xff] %v4557_v63 }
 0x2cf   : > { %1858 = vst [vmem:[#allocation3 + $0x10] sm:$0x3] %v4557_v63 }
 0x2d0 PF: > { %p3419_p12 = scmp.ne.s32.totalorder %s4534_s21, 1 }
 0x2d2   : > { %1862 = sbr.rel (%p3419_p12) target bundleno = 730 (0x2da), region = 90 }
 0x2d7   : > { %v4558_v62 = vmov 0.0  }
 0x2d8   : > { %1864 = vst [vmem:[#allocation3 + $0xd8] sm:$0xff] %v4558_v62  ;;  %1865 = vst [vmem:[#allocation3 + $0xe0] sm:$0xff] %v4558_v62 }
 0x2d9   : > { %1866 = vst [vmem:[#allocation3 + $0xe8] sm:$0x3] %v4558_v62 }
 0x2da PF: > { %v2129_v9 = vld [vmem:[#allocation7 + $0x278] sm:$0xff]  ;;  %v2128_v22 = vld [vmem:[#allocation7 + $0x270] sm:$0xff]  ;;  %v2127_v51 = vld [vmem:[#allocation7 + $0x268] sm:$0xff]  ;;  %s3422_s29 = sshll.u32 %s4534_s21, 4  ;;  %s3423_s11 = sshll.u32 %s4538_s22, 5 }
 0x2db   : > { %v2113_v44 = vld [vmem:[#allocation7 + $0x1f8] sm:$0xff]  ;;  %3535 = vmatprep.subr.mxu0 %v2129_v9  ;;  %v2112_v12 = vld [vmem:[#allocation7 + $0x1f0] sm:$0xff]  ;;  %v2111_v24 = vld [vmem:[#allocation7 + $0x1e8] sm:$0xff]  ;;  %s3293_s26 = sadd.s32 %s3423_s11, %s3422_s29  ;;  %s3296_s21 = sshll.u32 %s4710_s16, 4  ;;  %s5975_s21 = int_to_ptr.vmem [resolvable:$true] %s3296_s21 }
 0x2dc   : > { %v2145_v57 = vld [vmem:[#allocation7 + $0x2f8] sm:$0xff]  ;;  %3536 = vmatpush3.msra.mxu0 %v2113_v44  ;;  %v2144_v52 = vld [vmem:[#allocation7 + $0x2f0] sm:$0xff]  ;;  %v2143_v31 = vld [vmem:[#allocation7 + $0x2e8] sm:$0xff]  ;;  %s3424_s27 = sshll.u32 %s3293_s26, 7  ;;  %s5982_s9 = scalar_lea.sflag [#allocation6], %s218_s15 }
 0x2dd   : > { %4057 = vmatprep.subr.mxu1 %v2145_v57  ;;  %3537 = vmatprep.subr.mxu0 %v2128_v22  ;;  %v2126_v43 = vld [vmem:[#allocation7 + $0x260] sm:$0xff]  ;;  %v2125_v21 = vld [vmem:[#allocation7 + $0x258] sm:$0xff]  ;;  %v2124_v38 = vld [vmem:[#allocation7 + $0x250] sm:$0xff]  ;;  %s5973_s6 = scalar_lea.hbm %s6038_s5, %s3424_s27  ;;  %s4448_s12 = scalar_lea.vmem %s5975_s21, 2048 }
 0x2de   : > { %4058 = vmatpush3.msra.mxu1 %v2145_v57  ;;  %3538 = vmatpush3.msra.mxu0 %v2112_v12  ;;  %v2110_v34 = vld [vmem:[#allocation7 + $0x1e0] sm:$0xff]  ;;  %v2109_v49 = vld [vmem:[#allocation7 + $0x1d8] sm:$0xff]  ;;  %v2108_v26 = vld [vmem:[#allocation7 + $0x1d0] sm:$0xff]  ;;  %p4449_p0 = scmp.ne.s32.totalorder %s5975_s21, %s4448_s12  ;;  %s4559_s10 = smov [#allocation9]  }
 0x2df   : > { %4059 = vmatprep.subr.mxu1 %v2144_v52  ;;  %3539 = vmatprep.subr.mxu0 %v2127_v51  ;;  %v2142_v14 = vld [vmem:[#allocation7 + $0x2e0] sm:$0xff]  ;;  %v2141_v58 = vld [vmem:[#allocation7 + $0x2d8] sm:$0xff]  ;;  %v2140_v54 = vld [vmem:[#allocation7 + $0x2d0] sm:$0xff]  ;;  %s4452_s14 = sshll.u32 %s4559_s10, 4  ;;  %s4453_s14 = int_to_ptr.vmem [resolvable:$false] %s4452_s14 }
 0x2e0   : > { %4060 = vmatpush3.msra.mxu1 %v2144_v52  ;;  %3540 = vmatpush3.msra.mxu0 %v2111_v24  ;;  %v2123_v33 = vld [vmem:[#allocation7 + $0x248] sm:$0xff]  ;;  %v2122_v40 = vld [vmem:[#allocation7 + $0x240] sm:$0xff]  ;;  %v2121_v16 = vld [vmem:[#allocation7 + $0x238] sm:$0xff]  ;;  %p4450_p1 = pnand %p4449_p0, %p4644_p3  ;;  %s4454_s17 = scalar_lea.vmem %s4453_s14, 4096 }
 0x2e1   : > { %4061 = vmatprep.subr.mxu1 %v2143_v31  ;;  %3541 = vmatprep.subr.mxu0 %v2126_v43  ;;  %v2107_v60 = vld [vmem:[#allocation7 + $0x1c8] sm:$0xff]  ;;  %v2106_v36 = vld [vmem:[#allocation7 + $0x1c0] sm:$0xff]  ;;  %v2105_v41 = vld [vmem:[#allocation7 + $0x1b8] sm:$0xff]  ;;  %p4455_p13 = scmp.lt.s32.totalorder %s5975_s21, %s4453_s14  ;;  %p4456_p2 = scmp.lt.s32.totalorder %s4454_s17, %s4448_s12 }
 0x2e2   : > { %4062 = vmatpush3.msra.mxu1 %v2143_v31  ;;  %3542 = vmatpush3.msra.mxu0 %v2110_v34  ;;  %v2139_v39 = vld [vmem:[#allocation7 + $0x2c8] sm:$0xff]  ;;  %v2138_v8 = vld [vmem:[#allocation7 + $0x2c0] sm:$0xff]  ;;  %v2137_v32 = vld [vmem:[#allocation7 + $0x2b8] sm:$0xff]  ;;  %p4451_p11 = pneg %p4450_p1 }
 0x2e3   : > { %4063 = vmatprep.subr.mxu1 %v2142_v14  ;;  %3543 = vmatprep.subr.mxu0 %v2125_v21  ;;  %v2120_v15 = vld [vmem:[#allocation7 + $0x230] sm:$0xff]  ;;  %v2119_v7 = vld [vmem:[#allocation7 + $0x228] sm:$0xff]  ;;  %v2118_v50 = vld [vmem:[#allocation7 + $0x220] sm:$0xff]  ;;  %p4457_p4 = por %p4456_p2, %p4455_p13 }
 0x2e4   : > { %4064 = vmatpush3.msra.mxu1 %v2142_v14  ;;  %3544 = vmatpush3.msra.mxu0 %v2109_v49  ;;  %v2104_v29 = vld [vmem:[#allocation7 + $0x1b0] sm:$0xff]  ;;  %v2103_v61 = vld [vmem:[#allocation7 + $0x1a8] sm:$0xff]  ;;  %v2102_v48 = vld [vmem:[#allocation7 + $0x1a0] sm:$0xff] }
 0x2e5   : > { %4065 = vmatprep.subr.mxu1 %v2141_v58  ;;  %3545 = vmatprep.subr.mxu0 %v2124_v38  ;;  %v2136_v47 = vld [vmem:[#allocation7 + $0x2b0] sm:$0xff]  ;;  %v2135_v28 = vld [vmem:[#allocation7 + $0x2a8] sm:$0xff]  ;;  %v2134_v27 = vld [vmem:[#allocation7 + $0x2a0] sm:$0xff]  ;;  %p4458_p5 = pnand %p4457_p4, %p4451_p11 }
 0x2e6   : > { %4066 = vmatpush3.msra.mxu1 %v2141_v58  ;;  %3546 = vmatpush3.msra.mxu0 %v2108_v26  ;;  %v5412_v4 = vld [vmem:[#allocation3 + $0x18] sm:$0xff]  ;;  %v5414_v18 = vld [vmem:[#allocation3 + $0x20] sm:$0xff]  ;;  %v2117_v17 = vld [vmem:[#allocation7 + $0x218] sm:$0xff] }
 0x2e7   : > { %4067 = vmatprep.subr.mxu1 %v2140_v54  ;;  %3547 = vmatprep.subr.mxu0 %v2123_v33  ;;  %v2101_v37 = vld [vmem:[#allocation7 + $0x198] sm:$0xff]  ;;  %v2116_v0 = vld [vmem:[#allocation7 + $0x210] sm:$0xff]  ;;  %v1926_v19 = vrot.slane %v5412_v4, 1  ;;  %v1927_v30 = vrot.slane %v5414_v18, 1  ;;  %v2115_v3 = vld [vmem:[#allocation7 + $0x208] sm:$0xff]  ;;  %v1982_v25 = vrot.slane %v5412_v4, 2 }
 0x2e8   : > { %4068 = vmatpush3.msra.mxu1 %v2140_v54  ;;  %3548 = vmatpush3.msra.mxu0 %v2107_v60  ;;  %v2133_v42 = vld [vmem:[#allocation7 + $0x298] sm:$0xff]  ;;  %v2100_v55 = vld [vmem:[#allocation7 + $0x190] sm:$0xff]  ;;  %v2099_v5 = vld [vmem:[#allocation7 + $0x188] sm:$0xff]  ;;  %v1983_v59 = vrot.slane %v5414_v18, 2 }
 0x2e9   : > { %4069 = vmatprep.subr.mxu1 %v2139_v39  ;;  %3549 = vmatprep.subr.mxu0 %v2122_v40  ;;  %v2132_v23 = vld [vmem:[#allocation7 + $0x290] sm:$0xff]  ;;  %v1872_v2 = vld [vmem:[#allocation3 + $0x28] sm:$0x3]  ;;  %v2131_v35 = vld [vmem:[#allocation7 + $0x288] sm:$0xff]  ;;  %v5419_v13 = vsel %vm362_vm1, %v1926_v19, %v1927_v30 }
 0x2ea   : > { %4070 = vmatpush3.msra.mxu1 %v2139_v39  ;;  %3550 = vmatpush3.msra.mxu0 %v2106_v36  ;;  %v2114_v11 = vld [vmem:[#allocation7 + $0x200] sm:$0xff]  ;;  %v5425_v46 = vld [vmem:[#allocation3 + $0x38] sm:$0xff]  ;;  %v1985_v6 = vrot.slane %v1872_v2, 2  ;;  %v1929_v45 = vrot.slane %v1872_v2, 1  ;;  %v1875_v10 = vld [vmem:[#allocation3 + $0x40] sm:$0x3]  ;;  %v5431_v9 = vsel %vm398_vm0, %v1982_v25, %v1983_v59 }
 0x2eb   : > { %4071 = vmatprep.subr.mxu1 %v2138_v8  ;;  %3551 = vmatprep.subr.mxu0 %v2121_v16  ;;  %v5423_v20 = vld [vmem:[#allocation3 + $0x30] sm:$0xff]  ;;  %v2064_v53 = vld [vmem:[#allocation7 + $0xf8] sm:$0xff]  ;;  %v1932_v62 = vrot.slane %v5425_v46, 1  ;;  %v1988_v57 = vrot.slane %v5425_v46, 2  ;;  %v1990_v52 = vrot.slane %v1875_v10, 2  ;;  %v2063_v24 = vld [vmem:[#allocation7 + $0xf0] sm:$0xff] }
 0x2ec   : > { %4072 = vmatpush3.msra.mxu1 %v2138_v8  ;;  %3552 = vmatpush3.msra.mxu0 %v2105_v41  ;;  %v2098_v1 = vld [vmem:[#allocation7 + $0x180] sm:$0xff]  ;;  %v1931_v63 = vrot.slane %v5423_v20, 1  ;;  %v2048_v44 = vld [vmem:[#allocation7 + $0x78] sm:$0xff]  ;;  %v1987_v22 = vrot.slane %v5423_v20, 2  ;;  %v5437_v12 = vsel %vm398_vm0, %v1983_v59, %v1985_v6  ;;  %v5440_v51 = vsel %vm362_vm1, %v1927_v30, %v1929_v45  ;;  %v5442_v31 = vld [vmem:[#allocation3 + $0x58] sm:$0x3] }
 0x2ed   : > { %4073 = vmatprep.subr.mxu1 %v2137_v32  ;;  %3553 = vmatprep.subr.mxu0 %v2120_v15  ;;  %v2130_v56 = vld [vmem:[#allocation7 + $0x280] sm:$0xff]  ;;  %v2047_v43 = vld [vmem:[#allocation7 + $0x70] sm:$0xff]  ;;  %v1934_v14 = vrot.slane %v1875_v10, 1  ;;  %v5448_v21 = vld [vmem:[#allocation3 + $0x48] sm:$0xff]  ;;  %v5461_v60 = vsel %vm398_vm0, %v1988_v57, %v1990_v52  ;;  %v1995_v39 = vrot.slane %v5442_v31, 2 }
 0x2ee   : > { %4074 = vmatpush3.msra.mxu1 %v2137_v32  ;;  %3554 = vmatpush3.msra.mxu0 %v2104_v29  ;;  %v5446_v34 = vsel %vm362_vm1, %v1931_v63, %v1932_v62  ;;  %v5450_v49 = vld [vmem:[#allocation3 + $0x50] sm:$0xff]  ;;  %v2062_v58 = vld [vmem:[#allocation7 + $0xe8] sm:$0xff]  ;;  %v5455_v38 = vsel %vm398_vm0, %v1987_v22, %v1988_v57  ;;  %v1992_v26 = vrot.slane %v5448_v21, 2  ;;  %v1936_v41 = vrot.slane %v5448_v21, 1  ;;  %v5473_v15 = vld [vmem:[#allocation3 + $0x60] sm:$0xff] }
 0x2ef   : > { %4075 = vmatprep.subr.mxu1 %v2136_v47  ;;  %3555 = vmatprep.subr.mxu0 %v2119_v7  ;;  %v1993_v54 = vrot.slane %v5450_v49, 2  ;;  %v2046_v33 = vld [vmem:[#allocation7 + $0x68] sm:$0xff]  ;;  %v2061_v40 = vld [vmem:[#allocation7 + $0xe0] sm:$0xff]  ;;  %v5469_v8 = vsel %vm362_vm1, %v1932_v62, %v1934_v14  ;;  %v1937_v32 = vrot.slane %v5450_v49, 1  ;;  %v5475_v29 = vld [vmem:[#allocation3 + $0x68] sm:$0xff] }
 0x2f0   : > { %4076 = vmatpush3.msra.mxu1 %v2136_v47  ;;  %3556 = vmatpush3.msra.mxu0 %v2103_v61  ;;  %v5465_v36 = vld [vmem:[#allocation3 + $0x70] sm:$0x3]  ;;  %v2060_v47 = vld [vmem:[#allocation7 + $0xd8] sm:$0xff]  ;;  %v1997_v61 = vrot.slane %v5473_v15, 2  ;;  %v2058_v19 = vld [vmem:[#allocation7 + $0xc8] sm:$0xff] }
 0x2f1   : > { %4077 = vmatprep.subr.mxu1 %v2135_v28  ;;  %3557 = vmatprep.subr.mxu0 %v2118_v50  ;;  %v2045_v16 = vld [vmem:[#allocation7 + $0x60] sm:$0xff]  ;;  %v5479_v7 = vsel %vm398_vm0, %v1992_v26, %v1993_v54  ;;  %v2044_v50 = vld [vmem:[#allocation7 + $0x58] sm:$0xff]  ;;  %v5509_v25 = vld [vmem:[#allocation3 + $0x78] sm:$0xff] }
 0x2f2   : > { %4078 = vmatpush3.msra.mxu1 %v2135_v28  ;;  %3558 = vmatpush3.msra.mxu0 %v2102_v48  ;;  %v1998_v28 = vrot.slane %v5475_v29, 2  ;;  %v5485_v48 = vsel %vm398_vm0, %v1993_v54, %v1995_v39  ;;  %v2080_v2 = vld [vmem:[#allocation7 + $0x178] sm:$0xff]  ;;  %v5511_v59 = vld [vmem:[#allocation3 + $0x80] sm:$0xff]  ;;  %v2041_v6 = vld [vmem:[#allocation7 + $0x40] sm:$0xff]  ;;  %v2002_v45 = vrot.slane %v5509_v25, 2  ;;  %v1946_v14 = vrot.slane %v5509_v25, 1 }
 0x2f3   : > { %4079 = vmatprep.subr.mxu1 %v2134_v27  ;;  %3559 = vmatprep.subr.mxu0 %v2117_v17  ;;  %v2059_v17 = vld [vmem:[#allocation7 + $0xd0] sm:$0xff]  ;;  %v2078_v22 = vld [vmem:[#allocation7 + $0x168] sm:$0xff]  ;;  %v2040_v52 = vld [vmem:[#allocation7 + $0x38] sm:$0xff] }
 0x2f4   : > { %4080 = vmatpush3.msra.mxu1 %v2134_v27  ;;  %3560 = vmatpush3.msra.mxu0 %v2101_v37  ;;  %v2000_v27 = vrot.slane %v5465_v36, 2  ;;  %v5490_v37 = vsel %vm362_vm1, %v1936_v41, %v1937_v32  ;;  %v5496_v30 = vsel %vm398_vm0, %v1997_v61, %v1998_v28  ;;  %v2079_v10 = vld [vmem:[#allocation7 + $0x170] sm:$0xff]  ;;  %v2077_v26 = vld [vmem:[#allocation7 + $0x160] sm:$0xff]  ;;  %v2076_v41 = vld [vmem:[#allocation7 + $0x158] sm:$0xff] }
 0x2f5   : > { %4081 = vmatprep.subr.mxu1 %v2133_v42  ;;  %3561 = vmatprep.subr.mxu0 %v2116_v0  ;;  %v2043_v0 = vld [vmem:[#allocation7 + $0x50] sm:$0xff]  ;;  %v5539_v54 = vld [vmem:[#allocation3 + $0x90] sm:$0xff] }
 0x2f6   : > { %4082 = vmatpush3.msra.mxu1 %v2133_v42  ;;  %3562 = vmatpush3.msra.mxu0 %v2100_v55  ;;  %v1939_v42 = vrot.slane %v5442_v31, 1  ;;  %v2042_v55 = vld [vmem:[#allocation7 + $0x48] sm:$0xff]  ;;  %v2039_v39 = vld [vmem:[#allocation7 + $0x30] sm:$0xff] }
 0x2f7   : > { %4083 = vmatprep.subr.mxu1 %v2132_v23  ;;  %3563 = vmatprep.subr.mxu0 %v2115_v3  ;;  %v2057_v3 = vld [vmem:[#allocation7 + $0xc0] sm:$0xff] }
 0x2f8   : > { %4084 = vmatpush3.msra.mxu1 %v2132_v23  ;;  %3564 = vmatpush3.msra.mxu0 %v2099_v5  ;;  %v5500_v23 = vsel %vm398_vm0, %v1998_v28, %v2000_v27  ;;  %v5504_v5 = vsel %vm362_vm1, %v1937_v32, %v1939_v42  ;;  %v2054_v32 = vld [vmem:[#allocation7 + $0xa8] sm:$0xff]  ;;  %v2075_v28 = vld [vmem:[#allocation7 + $0x150] sm:$0xff] }
 0x2f9   : > { %4085 = vmatprep.subr.mxu1 %v2131_v35  ;;  %3565 = vmatprep.subr.mxu0 %v2114_v11  ;;  %v1942_v11 = vrot.slane %v5475_v29, 1  ;;  %v2038_v42 = vld [vmem:[#allocation7 + $0x28] sm:$0xff] }
 0x2fa   : > { %2210 = vmatprep.mubr.f32.mxu0 %v5419_v13  ;;  %3566 = vmatpush3.msra.mxu0 %v2098_v1  ;;  %v5513_v1 = vld [vmem:[#allocation3 + $0x88] sm:$0x3] }
 0x2fb   : > { %4086 = vmatpush3.msra.mxu1 %v2131_v35  ;;  %2211 = vmatmul.mubr.f32.vlgmr.msra.gmra.mxu0 %v5412_v4  ;;  %v1941_v35 = vrot.slane %v5473_v15, 1  ;;  %v2005_v63 = vrot.slane %v5513_v1, 2  ;;  %v1949_v61 = vrot.slane %v5513_v1, 1  ;;  %v5568_v1 = vld [vmem:[#allocation3 + $0xb0] sm:$0xff] }
 0x2fc   : > { %4087 = vmatprep.subr.mxu1 %v2130_v56  ;;  %3647 = vmatprep.subr.mxu0 %v2064_v53  ;;  %v2056_v53 = vld [vmem:[#allocation7 + $0xb8] sm:$0xff] }
 0x2fd   : > { %4088 = vmatpush3.msra.mxu1 %v2130_v56  ;;  %4089 = vmatprep.mubr.f32.mxu1 %v5431_v9  ;;  %v2003_v56 = vrot.slane %v5511_v59, 2  ;;  %v5522_v62 = vsel %vm362_vm1, %v1941_v35, %v1942_v11  ;;  %v2053_v35 = vld [vmem:[#allocation7 + $0xa0] sm:$0xff] }
 0x2fe   : > { %3648 = vmatpush3.msra.mxu0 %v2048_v44  ;;  %4090 = vmatmul.mubr.f32.vlgmr.msra.gmra.mxu1 %v5437_v12  ;;  %v1944_v44 = vrot.slane %v5465_v36, 1 }
 0x2ff   : > { %2215 = vmatprep.mubr.f32.mxu0 %v5440_v51  ;;  %3649 = vmatprep.subr.mxu0 %v2063_v24  ;;  %v5526_v57 = vsel %vm398_vm0, %v2002_v45, %v2003_v56  ;;  %v2055_v24 = vld [vmem:[#allocation7 + $0xb0] sm:$0xff]  ;;  %v5531_v31 = vsel %vm398_vm0, %v2003_v56, %v2005_v63  ;;  %v2013_v56 = vrot.slane %v5568_v1, 2 }
 0x300   : > { %2216 = vmatmul.mubr.f32.gmra.mxu0 %v5414_v18  ;;  %4092 = vmatprep.mubr.f32.mxu1 %v5455_v38 }
 0x301   : > { %3650 = vmatpush3.msra.mxu0 %v2047_v43  ;;  %2220 = vmatprep.mubr.f32.mxu0 %v5446_v34  ;;  %v5534_v43 = vsel %vm362_vm1, %v1942_v11, %v1944_v44  ;;  %v5566_v11 = vld [vmem:[#allocation3 + $0xa8] sm:$0xff] }
 0x302   : > { %3651 = vmatprep.subr.mxu0 %v2062_v58  ;;  %4093 = vmatmul.mubr.f32.gmra.mxu1 %v5461_v60  ;;  %v1947_v58 = vrot.slane %v5511_v59, 1  ;;  %v2012_v45 = vrot.slane %v5566_v11, 2 }
 0x303   : > { %3652 = vmatpush3.msra.mxu0 %v2046_v33  ;;  %4095 = vmatprep.mubr.f32.mxu1 %v5479_v7  ;;  %v5541_v33 = vld [vmem:[#allocation3 + $0x98] sm:$0xff] }
 0x304   : > { %2221 = vmatmul.mubr.f32.gmra.mxu0 %v5423_v20  ;;  %3653 = vmatprep.subr.mxu0 %v2061_v40  ;;  %v2007_v40 = vrot.slane %v5539_v54, 2  ;;  %v2008_v36 = vrot.slane %v5541_v33, 2 }
 0x305   : > { %2225 = vmatprep.mubr.f32.mxu0 %v5469_v8  ;;  %3654 = vmatpush3.msra.mxu0 %v2045_v16  ;;  %v1887_v16 = vld [vmem:[#allocation3 + $0xa0] sm:$0x3] }
 0x306   : > { %3655 = vmatprep.subr.mxu0 %v2060_v47  ;;  %4096 = vmatmul.mubr.f32.gmra.mxu1 %v5485_v48  ;;  %v5549_v47 = vsel %vm362_vm1, %v1946_v14, %v1947_v58  ;;  %v5553_v27 = vsel %vm398_vm0, %v2007_v40, %v2008_v36  ;;  %v1954_v44 = vrot.slane %v1887_v16, 1 }
 0x307   : > { %3656 = vmatpush3.msra.mxu0 %v2044_v50  ;;  %4098 = vmatprep.mubr.f32.mxu1 %v5496_v30  ;;  %v2010_v50 = vrot.slane %v1887_v16, 2  ;;  %v1957_v16 = vrot.slane %v5568_v1, 1 }
 0x308   : > { %2226 = vmatmul.mubr.f32.gmra.mxu0 %v5425_v46  ;;  %3657 = vmatprep.subr.mxu0 %v2059_v17  ;;  %v2074_v17 = vld [vmem:[#allocation7 + $0x148] sm:$0xff] }
 0x309   : > { %2230 = vmatprep.mubr.f32.mxu0 %v5490_v37  ;;  %3658 = vmatpush3.msra.mxu0 %v2043_v0  ;;  %v5558_v0 = vsel %vm362_vm1, %v1947_v58, %v1949_v61  ;;  %v2070_v58 = vld [vmem:[#allocation7 + $0x128] sm:$0xff]  ;;  %v5593_v61 = vld [vmem:[#allocation3 + $0xd0] sm:$0x3] }
 0x30a   : > { %3659 = vmatprep.subr.mxu0 %v2058_v19  ;;  %4099 = vmatmul.mubr.f32.gmra.mxu1 %v5500_v23  ;;  %v1951_v19 = vrot.slane %v5539_v54, 1 }
 0x30b   : > { %3660 = vmatpush3.msra.mxu0 %v2042_v55  ;;  %4113 = vmatprep.subr.mxu1 %v2080_v2  ;;  %v1952_v55 = vrot.slane %v5541_v33, 1 }
 0x30c   : > { %2231 = vmatmul.mubr.f32.gmra.mxu0 %v5448_v21  ;;  %3661 = vmatprep.subr.mxu0 %v2057_v3  ;;  %v5564_v3 = vsel %vm398_vm0, %v2008_v36, %v2010_v50  ;;  %v1956_v36 = vrot.slane %v5566_v11, 1  ;;  %v2069_v50 = vld [vmem:[#allocation7 + $0x120] sm:$0xff] }
 0x30d   : > { %2235 = vmatprep.mubr.f32.mxu0 %v5504_v5  ;;  %3662 = vmatpush3.msra.mxu0 %v2041_v6  ;;  %v2037_v6 = vld [vmem:[#allocation7 + $0x20] sm:$0xff]  ;;  %v5576_v63 = vsel %vm362_vm1, %v1951_v19, %v1952_v55  ;;  %v5588_v40 = vsel %vm362_vm1, %v1952_v55, %v1954_v44  ;;  %v5613_v44 = vld [vmem:[#allocation3 + $0x8] sm:$0xff] }
 0x30e   : > { %4114 = vmatpush3.msra.mxu1 %v2080_v2  ;;  %3663 = vmatprep.subr.mxu0 %v2056_v53  ;;  %v2073_v2 = vld [vmem:[#allocation7 + $0x140] sm:$0xff]  ;;  %v1890_v53 = vld [vmem:[#allocation3 + $0xb8] sm:$0x3]  ;;  %v5603_v19 = vsel %vm362_vm1, %v1956_v36, %v1957_v16 }
 0x30f   : > { %4115 = vmatprep.subr.mxu1 %v2079_v10  ;;  %4101 = vmatprep.mubr.f32.mxu1 %v5526_v57  ;;  %v2015_v14 = vrot.slane %v1890_v53, 2  ;;  %v1959_v55 = vrot.slane %v1890_v53, 1  ;;  %v5616_v53 = vld [vmem:[#allocation3 + $0x10] sm:$0x3]  ;;  %v2050_v36 = vld [vmem:[#allocation7 + $0x88] sm:$0xff] }
 0x310   : > { %2236 = vmatmul.mubr.f32.gmra.mxu0 %v5450_v49  ;;  %4116 = vmatpush3.msra.mxu1 %v2079_v10  ;;  %v2072_v10 = vld [vmem:[#allocation7 + $0x138] sm:$0xff] }
 0x311   : > { %2240 = vmatprep.mubr.f32.mxu0 %v5522_v62  ;;  %4117 = vmatprep.subr.mxu1 %v2078_v22 }
 0x312   : > { %3664 = vmatpush3.msra.mxu0 %v2040_v52  ;;  %4118 = vmatpush3.msra.mxu1 %v2078_v22  ;;  %v2071_v22 = vld [vmem:[#allocation7 + $0x130] sm:$0xff]  ;;  %v2052_v52 = vld [vmem:[#allocation7 + $0x98] sm:$0xff] }
 0x313   : > { %3665 = vmatprep.subr.mxu0 %v2055_v24  ;;  %4102 = vmatmul.mubr.f32.gmra.mxu1 %v5531_v31  ;;  %v5580_v24 = vsel %vm398_vm0, %v2012_v45, %v2013_v56  ;;  %v2067_v45 = vld [vmem:[#allocation7 + $0x110] sm:$0xff] }
 0x314   : > { %2241 = vmatmul.mubr.f32.gmra.mxu0 %v5473_v15  ;;  %4119 = vmatprep.subr.mxu1 %v2077_v26 }
 0x315   : > { %2245 = vmatprep.mubr.f32.mxu0 %v5534_v43  ;;  %4120 = vmatpush3.msra.mxu1 %v2077_v26  ;;  %v5583_v26 = vld [vmem:[#allocation3 + $0xc0] sm:$0xff] }
 0x316   : > { %3666 = vmatpush3.msra.mxu0 %v2039_v39  ;;  %4121 = vmatprep.subr.mxu1 %v2076_v41  ;;  %v5585_v39 = vld [vmem:[#allocation3 + $0xc8] sm:$0xff] }
 0x317   : > { %3667 = vmatprep.subr.mxu0 %v2054_v32  ;;  %4122 = vmatpush3.msra.mxu1 %v2076_v41  ;;  %v2036_v41 = vld [vmem:[#allocation7 + $0x18] sm:$0xff]  ;;  %v2051_v32 = vld [vmem:[#allocation7 + $0x90] sm:$0xff] }
 0x318   : > { %2246 = vmatmul.mubr.f32.gmra.mxu0 %v5475_v29  ;;  %4123 = vmatprep.subr.mxu1 %v2075_v28 }
 0x319   : > { %2250 = vmatprep.mubr.f32.mxu0 %v5549_v47  ;;  %4124 = vmatpush3.msra.mxu1 %v2075_v28  ;;  %v5597_v28 = vsel %vm398_vm0, %v2013_v56, %v2015_v14  ;;  %v2085_v14 = vrot.slane %v5585_v39, 1 }
 0x31a   : > { %4104 = vmatprep.mubr.f32.mxu1 %v5553_v27  ;;  %4125 = vmatprep.subr.mxu1 %v2074_v17 }
 0x31b   : > { %3668 = vmatpush3.msra.mxu0 %v2038_v42  ;;  %4126 = vmatpush3.msra.mxu1 %v2074_v17  ;;  %v2091_v17 = vrot.slane %v5583_v26, 2  ;;  %v2092_v42 = vrot.slane %v5585_v39, 2 }
 0x31c   : > { %2251 = vmatmul.mubr.f32.gmra.mxu0 %v5509_v25  ;;  %4105 = vmatmul.mubr.f32.gmra.mxu1 %v5564_v3 }
 0x31d   : > { %2255 = vmatprep.mubr.f32.mxu0 %v5558_v0  ;;  %4127 = vmatprep.subr.mxu1 %v2073_v2  ;;  %v5609_v56 = vsel %vm398_vm0, %v2091_v17, %v2092_v42  ;;  %v1980_v17 = vrot.slane %v5616_v53, 2 }
 0x31e   : > { %3669 = vmatprep.subr.mxu0 %v2053_v35  ;;  %4128 = vmatpush3.msra.mxu1 %v2073_v2  ;;  %v2068_v2 = vld [vmem:[#allocation7 + $0x118] sm:$0xff]  ;;  %v2094_v35 = vrot.slane %v5593_v61, 2  ;;  %6047 = vst [vmem:[#allocation17_spill] sm:$0xff] %v5609_v56 }
 0x31f   : > { %3670 = vmatpush3.msra.mxu0 %v2037_v6  ;;  %4129 = vmatprep.subr.mxu1 %v2072_v10  ;;  %v2035_v6 = vld [vmem:[#allocation7 + $0x10] sm:$0xff] }
 0x320   : > { %2256 = vmatmul.mubr.f32.gmra.mxu0 %v5511_v59  ;;  %4130 = vmatpush3.msra.mxu1 %v2072_v10  ;;  %v5611_v10 = vld [vmem:[#allocation3] sm:$0xff] }
 0x321   : > { %2260 = vmatprep.mubr.f32.mxu0 %v5576_v63  ;;  %4131 = vmatprep.subr.mxu1 %v2071_v22 }
 0x322   : > { %3671 = vmatprep.subr.mxu0 %v2052_v52  ;;  %4132 = vmatpush3.msra.mxu1 %v2071_v22  ;;  %v5619_v22 = vsel %vm362_vm1, %v1957_v16, %v1959_v55  ;;  %v2084_v52 = vrot.slane %v5583_v26, 1  ;;  %v2034_v16 = vld [vmem:[#allocation7 + $0x8] sm:$0xff] }
 0x323   : > { %4107 = vmatprep.mubr.f32.mxu1 %v5580_v24  ;;  %4133 = vmatprep.subr.mxu1 %v2070_v58 }
 0x324   : > { %2261 = vmatmul.mubr.f32.gmra.mxu0 %v5539_v54  ;;  %4134 = vmatpush3.msra.mxu1 %v2070_v58  ;;  %v5624_v58 = vsel %vm398_vm0, %v2092_v42, %v2094_v35  ;;  %v2065_v42 = vld [vmem:[#allocation7 + $0x100] sm:$0xff]  ;;  %v5634_v55 = vsel %vm362_vm1, %v2084_v52, %v2085_v14  ;;  %v2758_v52 = vld [vmem:[#allocation7 + $0x378] sm:$0xff] }
 0x325   : > { %2265 = vmatprep.mubr.f32.mxu0 %v5588_v40  ;;  %3672 = vmatpush3.msra.mxu0 %v2036_v41  ;;  %v2066_v41 = vld [vmem:[#allocation7 + $0x108] sm:$0xff] }
 0x326   : > { %3673 = vmatprep.subr.mxu0 %v2051_v32  ;;  %4108 = vmatmul.mubr.f32.gmra.mxu1 %v5597_v28  ;;  %v1977_v32 = vrot.slane %v5611_v10, 2 }
 0x327   : > { %4135 = vmatprep.subr.mxu1 %v2069_v50  ;;  %3674 = vmatpush3.msra.mxu0 %v2035_v6  ;;  %v2049_v6 = vld [vmem:[#allocation7 + $0x80] sm:$0xff] }
 0x328   : > { %2266 = vmatmul.mubr.f32.gmra.mxu0 %v5541_v33  ;;  %4136 = vmatpush3.msra.mxu1 %v2069_v50  ;;  %v1978_v50 = vrot.slane %v5613_v44, 2 }
 0x329   : > { %2270 = vmatprep.mubr.f32.mxu0 %v5603_v19  ;;  %4137 = vmatprep.subr.mxu1 %v2068_v2 }
 0x32a   : > { %4138 = vmatpush3.msra.mxu1 %v2068_v2  ;;  %4110 = vmatprep.mubr.f32.mxu1 %v5609_v56  ;;  %v2087_v2 = vrot.slane %v5593_v61, 1  ;;  %v1979_v35 = vsel %vm398_vm0, %v1977_v32, %v1978_v50  ;;  %v2774_v56 = vld [vmem:[#allocation7 + $0x3f8] sm:$0xff]  ;;  %v2033_v61 = vld [vmem:[#allocation7] sm:$0xff]  ;;  %v1922_v32 = vrot.slane %v5613_v44, 1 }
 0x32b   : > { %4139 = vmatprep.subr.mxu1 %v2067_v45  ;;  %4111 = vmatmul.mubr.f32.gmra.mxu1 %v5624_v58 }
 0x32c   : > { %2271 = vmatmul.mubr.f32.gmra.mxu0 %v5566_v11  ;;  %4140 = vmatpush3.msra.mxu1 %v2067_v45  ;;  %v1981_v45 = vsel %vm398_vm0, %v1978_v50, %v1980_v17  ;;  %v2757_v50 = vld [vmem:[#allocation7 + $0x370] sm:$0xff]  ;;  %v2790_v17 = vld [vmem:[#allocation7 + $0x478] sm:$0xff] }
 0x32d   : > { %2275 = vmatprep.mubr.f32.mxu0 %v5619_v22  ;;  %3675 = vmatprep.subr.mxu0 %v2050_v36  ;;  %v5642_v36 = vsel %vm362_vm1, %v2085_v14, %v2087_v2  ;;  %v1924_v2 = vrot.slane %v5616_v53, 1  ;;  %v2789_v53 = vld [vmem:[#allocation7 + $0x470] sm:$0xff] }
 0x32e   : > { %4141 = vmatprep.subr.mxu1 %v2066_v41  ;;  %3676 = vmatpush3.msra.mxu0 %v2034_v16  ;;  %v2773_v16 = vld [vmem:[#allocation7 + $0x3f0] sm:$0xff] }
 0x32f   : > { %4142 = vmatpush3.msra.mxu1 %v2066_v41  ;;  %4145 = vmatprep.mubr.f32.mxu1 %v1979_v35  ;;  %v1921_v41 = vrot.slane %v5611_v10, 1  ;;  %v2771_v35 = vld [vmem:[#allocation7 + $0x3e0] sm:$0xff] }
 0x330   : > { %2276 = vmatmul.mubr.f32.gmra.mxu0 %v5568_v1  ;;  %4143 = vmatprep.subr.mxu1 %v2065_v42 }
 0x331   : > { %2280 = vmatprep.mubr.f32.mxu0 %v5634_v55  ;;  %4144 = vmatpush3.msra.mxu1 %v2065_v42  ;;  %v1923_v14 = vsel %vm362_vm1, %v1921_v41, %v1922_v32  ;;  %v2772_v42 = vld [vmem:[#allocation7 + $0x3e8] sm:$0xff] }
 0x332   : > { %3677 = vmatprep.subr.mxu0 %v2049_v6  ;;  %4146 = vmatmul.mubr.f32.vlgmr.msra.gmra.mxu1 %v1981_v45  ;;  %v2755_v6 = vld [vmem:[#allocation7 + $0x360] sm:$0xff]  ;;  %v1925_v45 = vsel %vm362_vm1, %v1922_v32, %v1924_v2  ;;  %v2768_v41 = vld [vmem:[#allocation7 + $0x3c8] sm:$0xff] }
 0x333   : > { %3759 = vmatprep.subr.mxu1 %v2774_v56  ;;  %3678 = vmatpush3.msra.mxu0 %v2033_v61  ;;  %v2756_v56 = vld [vmem:[#allocation7 + $0x368] sm:$0xff]  ;;  %v2769_v61 = vld [vmem:[#allocation7 + $0x3d0] sm:$0xff] }
 0x334   : > { %2281 = vmatmul.mubr.f32.gmra.mxu0 %v5583_v26  ;;  %3760 = vmatpush3.msra.mxu1 %v2758_v52  ;;  %v2754_v52 = vld [vmem:[#allocation7 + $0x358] sm:$0xff]  ;;  %v2752_v32 = vld [vmem:[#allocation7 + $0x348] sm:$0xff] }
 0x335   : > { %2285 = vmatprep.mubr.f32.mxu0 %v5642_v36  ;;  %3761 = vmatprep.subr.mxu1 %v2773_v16  ;;  %v2767_v16 = vld [vmem:[#allocation7 + $0x3c0] sm:$0xff]  ;;  %v2748_v2 = vld [vmem:[#allocation7 + $0x328] sm:$0xff] }
 0x336   : > { %4148 = vmatprep.mubr.f32.mxu1 %v5431_v9  ;;  %3762 = vmatpush3.msra.mxu1 %v2757_v50  ;;  %v2770_v9 = vld [vmem:[#allocation7 + $0x3d8] sm:$0xff]  ;;  %v2751_v50 = vld [vmem:[#allocation7 + $0x340] sm:$0xff] }
 0x337   : > { %4169 = vmatprep.subr.mxu0 %v2790_v17  ;;  %4149 = vmatmul.mubr.f32.gmra.mxu1 %v5437_v12  ;;  %v2753_v12 = vld [vmem:[#allocation7 + $0x350] sm:$0xff] }
 0x338   : > { %2286 = vmatmul.mubr.f32.gmra.mxu0 %v5585_v39  ;;  %3763 = vmatprep.subr.mxu1 %v2772_v42  ;;  %v2786_v42 = vld [vmem:[#allocation7 + $0x458] sm:$0xff] }
 0x339   : > { %2500 = vmatprep.mubr.f32.mxu0 %v1923_v14  ;;  %3764 = vmatpush3.msra.mxu1 %v2756_v56  ;;  %v2765_v14 = vld [vmem:[#allocation7 + $0x3b0] sm:$0xff]  ;;  %v2747_v56 = vld [vmem:[#allocation7 + $0x320] sm:$0xff] }
 0x33a   : > { %4151 = vmatprep.mubr.f32.mxu1 %v5455_v38  ;;  %3765 = vmatprep.subr.mxu1 %v2771_v35  ;;  %v2762_v35 = vld [vmem:[#allocation7 + $0x398] sm:$0xff] }
 0x33b   : > { %3766 = vmatpush3.msra.mxu1 %v2755_v6  ;;  %v2785_v6 = vld [vmem:[#allocation7 + $0x450] sm:$0xff] }
 0x33c   : > { %2501 = vmatmul.mubr.f32.vlgmr.msra.gmra.mxu0 %v5611_v10  ;;  %4152 = vmatmul.mubr.f32.gmra.mxu1 %v5461_v60  ;;  %v2788_v10 = vld [vmem:[#allocation7 + $0x468] sm:$0xff] }
 0x33d   : > { %4170 = vmatpush3.msra.mxu0 %v2790_v17  ;;  %2505 = vmatprep.mubr.f32.mxu0 %v1925_v45  ;;  %v2750_v17 = vld [vmem:[#allocation7 + $0x338] sm:$0xff] }
 0x33e   : > { %3767 = vmatprep.subr.mxu1 %v2770_v9  ;;  %4171 = vmatprep.subr.mxu0 %v2789_v53  ;;  %v2746_v45 = vld [vmem:[#allocation7 + $0x318] sm:$0xff]  ;;  %v2761_v9 = vld [vmem:[#allocation7 + $0x390] sm:$0xff] }
 0x33f   : > { %3768 = vmatpush3.msra.mxu1 %v2754_v52  ;;  %4172 = vmatpush3.msra.mxu0 %v2789_v53  ;;  %v2745_v53 = vld [vmem:[#allocation7 + $0x310] sm:$0xff]  ;;  %v2760_v52 = vld [vmem:[#allocation7 + $0x388] sm:$0xff] }
 0x340   : > { %2506 = vmatmul.mubr.f32.gmra.mxu0 %v5613_v44  ;;  %3769 = vmatprep.subr.mxu1 %v2769_v61  ;;  %v2766_v44 = vld [vmem:[#allocation7 + $0x3b8] sm:$0xff]  ;;  %v2784_v61 = vld [vmem:[#allocation7 + $0x448] sm:$0xff] }
 0x341   : > { %2510 = vmatprep.mubr.f32.mxu0 %v5419_v13  ;;  %4154 = vmatprep.mubr.f32.mxu1 %v5479_v7  ;;  %v2787_v13 = vld [vmem:[#allocation7 + $0x460] sm:$0xff] }
 0x342   : > { %3770 = vmatpush3.msra.mxu1 %v2753_v12  ;;  %4173 = vmatprep.subr.mxu0 %v2788_v10  ;;  %v2744_v12 = vld [vmem:[#allocation7 + $0x308] sm:$0xff] }
 0x343   : > { %4155 = vmatmul.mubr.f32.gmra.mxu1 %v5485_v48  ;;  %3771 = vmatprep.subr.mxu1 %v2768_v41  ;;  %v2759_v41 = vld [vmem:[#allocation7 + $0x380] sm:$0xff] }
 0x344   : > { %2511 = vmatmul.mubr.f32.gmra.mxu0 %v5412_v4  ;;  %3772 = vmatpush3.msra.mxu1 %v2752_v32  ;;  %v2749_v4 = vld [vmem:[#allocation7 + $0x330] sm:$0xff]  ;;  %v2783_v32 = vld [vmem:[#allocation7 + $0x440] sm:$0xff] }
 0x345   : > { %4174 = vmatpush3.msra.mxu0 %v2788_v10  ;;  %3773 = vmatprep.subr.mxu1 %v2767_v16  ;;  %v2743_v10 = vld [vmem:[#allocation7 + $0x300] sm:$0xff]  ;;  %v2782_v16 = vld [vmem:[#allocation7 + $0x438] sm:$0xff] }
 0x346   : > { %2515 = vmatprep.mubr.f32.mxu0 %v5440_v51  ;;  %4157 = vmatprep.mubr.f32.mxu1 %v5496_v30  ;;  %v2764_v51 = vld [vmem:[#allocation7 + $0x3a8] sm:$0xff] }
 0x347   : > { %3774 = vmatpush3.msra.mxu1 %v2751_v50  ;;  %4175 = vmatprep.subr.mxu0 %v2787_v13  ;;  %v2781_v50 = vld [vmem:[#allocation7 + $0x430] sm:$0xff] }
 0x348   : > { %2516 = vmatmul.mubr.f32.gmra.mxu0 %v5414_v18  ;;  %4158 = vmatmul.mubr.f32.gmra.mxu1 %v5500_v23  ;;  %v2763_v18 = vld [vmem:[#allocation7 + $0x3a0] sm:$0xff] }
 0x349   : > { %3775 = vmatprep.subr.mxu1 %v2766_v44  ;;  %4176 = vmatpush3.msra.mxu0 %v2787_v13 }
 0x34a   : > { %3776 = vmatpush3.msra.mxu1 %v2750_v17  ;;  %2520 = vmatprep.mubr.f32.mxu0 %v5446_v34 }
 0x34b   : > { %3777 = vmatprep.subr.mxu1 %v2765_v14  ;;  %4160 = vmatprep.mubr.f32.mxu1 %v5526_v57 }
 0x34c   : > { %3778 = vmatpush3.msra.mxu1 %v2749_v4  ;;  %2521 = vmatmul.mubr.f32.gmra.mxu0 %v5423_v20 }
 0x34d   : > { %4161 = vmatmul.mubr.f32.gmra.mxu1 %v5531_v31  ;;  %3779 = vmatprep.subr.mxu1 %v2764_v51 }
 0x34e   : > { %4177 = vmatprep.subr.mxu0 %v2786_v42  ;;  %3780 = vmatpush3.msra.mxu1 %v2748_v2 }
 0x34f   : > { %4178 = vmatpush3.msra.mxu0 %v2786_v42  ;;  %3781 = vmatprep.subr.mxu1 %v2763_v18 }
 0x350   : > { %2525 = vmatprep.mubr.f32.mxu0 %v5469_v8  ;;  %4163 = vmatprep.mubr.f32.mxu1 %v5553_v27 }
 0x351   : > { %3782 = vmatpush3.msra.mxu1 %v2747_v56  ;;  %2526 = vmatmul.mubr.f32.gmra.mxu0 %v5425_v46 }
 0x352   : > { %4164 = vmatmul.mubr.f32.gmra.mxu1 %v5564_v3  ;;  %3783 = vmatprep.subr.mxu1 %v2762_v35 }
 0x353   : > { %4179 = vmatprep.subr.mxu0 %v2785_v6  ;;  %3784 = vmatpush3.msra.mxu1 %v2746_v45 }
 0x354   : > { %4180 = vmatpush3.msra.mxu0 %v2785_v6  ;;  %3785 = vmatprep.subr.mxu1 %v2761_v9 }
 0x355   : > { %2530 = vmatprep.mubr.f32.mxu0 %v5490_v37  ;;  %4166 = vmatprep.mubr.f32.mxu1 %v5580_v24 }
 0x356   : > { %3786 = vmatpush3.msra.mxu1 %v2745_v53  ;;  %2531 = vmatmul.mubr.f32.gmra.mxu0 %v5448_v21 }
 0x357   : > { %4167 = vmatmul.mubr.f32.gmra.mxu1 %v5597_v28  ;;  %3787 = vmatprep.subr.mxu1 %v2760_v52 }
 0x358   : > { %4181 = vmatprep.subr.mxu0 %v2784_v61  ;;  %3788 = vmatpush3.msra.mxu1 %v2744_v12 }
 0x359   : > { %4182 = vmatpush3.msra.mxu0 %v2784_v61  ;;  %3789 = vmatprep.subr.mxu1 %v2759_v41 }
 0x35a   : > { %2535 = vmatprep.mubr.f32.mxu0 %v5504_v5  ;;  %3790 = vmatpush3.msra.mxu1 %v2743_v10 }
 0x35b   : > { %2855 = vmatprep.mubr.f32.mxu1 %v5446_v34  ;;  %2536 = vmatmul.mubr.f32.gmra.mxu0 %v5450_v49  ;;  %v2779_v34 = vld [vmem:[#allocation7 + $0x420] sm:$0xff] }
 0x35c   : > { %2856 = vmatmul.mubr.f32.vlgmr.msra.gmra.mxu1 %v5423_v20  ;;  %4183 = vmatprep.subr.mxu0 %v2783_v32  ;;  %v2780_v20 = vld [vmem:[#allocation7 + $0x428] sm:$0xff] }
 0x35d   : > { %2540 = vmatprep.mubr.f32.mxu0 %v5522_v62  ;;  %4184 = vmatpush3.msra.mxu0 %v2783_v32 }
 0x35e   : > { %2860 = vmatprep.mubr.f32.mxu1 %v5469_v8  ;;  %4185 = vmatprep.subr.mxu0 %v2782_v16  ;;  %v2775_v8 = vld [vmem:[#allocation7 + $0x400] sm:$0xff] }
 0x35f   : > { %2541 = vmatmul.mubr.f32.gmra.mxu0 %v5473_v15 }
 0x360   : > { %2861 = vmatmul.mubr.f32.gmra.mxu1 %v5425_v46  ;;  %4186 = vmatpush3.msra.mxu0 %v2782_v16  ;;  %v2778_v46 = vld [vmem:[#allocation7 + $0x418] sm:$0xff] }
 0x361   : > { %2545 = vmatprep.mubr.f32.mxu0 %v5534_v43  ;;  %2865 = vmatprep.mubr.f32.mxu1 %v5490_v37 }
 0x362   : > { %4187 = vmatprep.subr.mxu0 %v2781_v50 }
 0x363   : > { %4188 = vmatpush3.msra.mxu0 %v2781_v50 }
 0x364   : > { %2546 = vmatmul.mubr.f32.gmra.mxu0 %v5475_v29  ;;  %2866 = vmatmul.mubr.f32.gmra.mxu1 %v5448_v21  ;;  %v2777_v21 = vld [vmem:[#allocation7 + $0x410] sm:$0xff] }
 0x365   : > { %2550 = vmatprep.mubr.f32.mxu0 %v5549_v47  ;;  %2870 = vmatprep.mubr.f32.mxu1 %v5504_v5 }
 0x366   : > { %4189 = vmatprep.subr.mxu0 %v2780_v20 }
 0x367   : > { %4190 = vmatpush3.msra.mxu0 %v2780_v20 }
 0x368   : > { %2551 = vmatmul.mubr.f32.gmra.mxu0 %v5509_v25  ;;  %2871 = vmatmul.mubr.f32.gmra.mxu1 %v5450_v49  ;;  %v2776_v49 = vld [vmem:[#allocation7 + $0x408] sm:$0xff] }
 0x369   : > { %2555 = vmatprep.mubr.f32.mxu0 %v5558_v0  ;;  %2875 = vmatprep.mubr.f32.mxu1 %v5522_v62 }
 0x36a   : > { %4191 = vmatprep.subr.mxu0 %v2779_v34 }
 0x36b   : > { %4192 = vmatpush3.msra.mxu0 %v2779_v34 }
 0x36c   : > { %2556 = vmatmul.mubr.f32.gmra.mxu0 %v5511_v59  ;;  %2876 = vmatmul.mubr.f32.gmra.mxu1 %v5473_v15  ;;  %v1894_v15 = vld [vmem:[#allocation3 + $0xd8] sm:$0xff] }
 0x36d   : > { %2560 = vmatprep.mubr.f32.mxu0 %v5576_v63  ;;  %2880 = vmatprep.mubr.f32.mxu1 %v5534_v43 }
 0x36e   : > { %4193 = vmatprep.subr.mxu0 %v2778_v46 }
 0x36f   : > { %4194 = vmatpush3.msra.mxu0 %v2778_v46 }
 0x370   : > { %2561 = vmatmul.mubr.f32.gmra.mxu0 %v5539_v54  ;;  %2881 = vmatmul.mubr.f32.gmra.mxu1 %v5475_v29  ;;  %v1895_v29 = vld [vmem:[#allocation3 + $0xe0] sm:$0xff] }
 0x371   : > { %2565 = vmatprep.mubr.f32.mxu0 %v5588_v40  ;;  %2885 = vmatprep.mubr.f32.mxu1 %v5549_v47  ;;  %v2737_v5 = vrot.slane %v1895_v29, 2 }
 0x372   : > { %4195 = vmatprep.subr.mxu0 %v2777_v21 }
 0x373   : > { %4196 = vmatpush3.msra.mxu0 %v2777_v21 }
 0x374   : > { %2566 = vmatmul.mubr.f32.gmra.mxu0 %v5541_v33  ;;  %2886 = vmatmul.mubr.f32.gmra.mxu1 %v5509_v25  ;;  %v6048_v25 = vld [vmem:[#allocation17_spill] sm:$0xff] }
 0x375   : > { %2570 = vmatprep.mubr.f32.mxu0 %v5603_v19  ;;  %2890 = vmatprep.mubr.f32.mxu1 %v5558_v0 }
 0x376   : > { %4197 = vmatprep.subr.mxu0 %v2776_v49 }
 0x377   : > { %4198 = vmatpush3.msra.mxu0 %v2776_v49 }
 0x378   : > { %2571 = vmatmul.mubr.f32.gmra.mxu0 %v5566_v11  ;;  %2891 = vmatmul.mubr.f32.gmra.mxu1 %v5511_v59 }
 0x379   : > { %2575 = vmatprep.mubr.f32.mxu0 %v5619_v22  ;;  %2895 = vmatprep.mubr.f32.mxu1 %v5576_v63 }
 0x37a   : > { %4199 = vmatprep.subr.mxu0 %v2775_v8 }
 0x37b   : > { %4200 = vmatpush3.msra.mxu0 %v2775_v8 }
 0x37c   : > { %2576 = vmatmul.mubr.f32.gmra.mxu0 %v5568_v1  ;;  %2896 = vmatmul.mubr.f32.gmra.mxu1 %v5539_v54 }
 0x37d   : > { %2900 = vmatprep.mubr.f32.mxu1 %v5588_v40  ;;  %4201 = vmatprep.mubr.f32.mxu0 %v5455_v38  ;;  %v2729_v38 = vrot.slane %v1894_v15, 1 }
 0x380   : > { %2901 = vmatmul.mubr.f32.gmra.mxu1 %v5541_v33  ;;  %4202 = vmatmul.mubr.f32.vlgmr.msra.gmra.mxu0 %v5461_v60  ;;  %v2730_v60 = vrot.slane %v1895_v29, 1 }
 0x381   : > { %2905 = vmatprep.mubr.f32.mxu1 %v5603_v19  ;;  %4204 = vmatprep.mubr.f32.mxu0 %v5479_v7  ;;  %v1896_v7 = vld [vmem:[#allocation3 + $0xe8] sm:$0x3] }
 0x382   : > { %v2732_v37 = vrot.slane %v1896_v7, 1  ;;  %v2739_v59 = vrot.slane %v1896_v7, 2 }
 0x384   : > { %2906 = vmatmul.mubr.f32.gmra.mxu1 %v5566_v11  ;;  %4205 = vmatmul.mubr.f32.gmra.mxu0 %v5485_v48  ;;  %v2731_v48 = vsel %vm362_vm1, %v2729_v38, %v2730_v60 }
 0x385   : > { %2910 = vmatprep.mubr.f32.mxu1 %v5619_v22  ;;  %4207 = vmatprep.mubr.f32.mxu0 %v5496_v30  ;;  %v2733_v30 = vsel %vm362_vm1, %v2730_v60, %v2732_v37 }
 0x388   : > { %2911 = vmatmul.mubr.f32.gmra.mxu1 %v5568_v1  ;;  %4208 = vmatmul.mubr.f32.gmra.mxu0 %v5500_v23  ;;  %v2736_v23 = vrot.slane %v1894_v15, 2 }
 0x389   : > { %2915 = vmatprep.mubr.f32.mxu1 %v5634_v55  ;;  %4210 = vmatprep.mubr.f32.mxu0 %v5526_v57  ;;  %v2740_v57 = vsel %vm398_vm0, %v2737_v5, %v2739_v59 }
 0x38a   : > { %v2738_v62 = vsel %vm398_vm0, %v2736_v23, %v2737_v5 }
 0x38c   : > { %2916 = vmatmul.mubr.f32.gmra.mxu1 %v5583_v26  ;;  %4211 = vmatmul.mubr.f32.gmra.mxu0 %v5531_v31 }
 0x38d   : > { %2920 = vmatprep.mubr.f32.mxu1 %v5642_v36  ;;  %4213 = vmatprep.mubr.f32.mxu0 %v5553_v27 }
 0x390   : > { %2921 = vmatmul.mubr.f32.gmra.mxu1 %v5585_v39  ;;  %4214 = vmatmul.mubr.f32.gmra.mxu0 %v5564_v3 }
 0x391   : > { %2925 = vmatprep.mubr.f32.mxu1 %v2731_v48  ;;  %4216 = vmatprep.mubr.f32.mxu0 %v5580_v24 }
 0x394   : > { %2926 = vmatmul.mubr.f32.gmra.mxu1 %v1894_v15  ;;  %4217 = vmatmul.mubr.f32.gmra.mxu0 %v5597_v28 }
 0x395   : > { %2930 = vmatprep.mubr.f32.mxu1 %v2733_v30  ;;  %4219 = vmatprep.mubr.f32.mxu0 %v6048_v25 }
 0x398   : > { %2931 = vmatmul.mubr.f32.gmra.mxu1 %v1895_v29  ;;  %4220 = vmatmul.mubr.f32.gmra.mxu0 %v5624_v58 }
 0x399   : > { %4222 = vmatprep.mubr.f32.mxu0 %v2738_v62 }
 0x39c   : > { %4223 = vmatmul.mubr.f32.gmra.mxu0 %v2740_v57 }
 0x3bb   : > { %v3567_v31 = vpop.f32.mrf.mxu0 }
 0x3bd   : > { %v3568_v43 = vpop.f32.mrf.mxu0 }
 0x3be   : > { %v3569_v54 = vadd.f32 %v3568_v43, %v3567_v31  ;;  %v4091_v33 = vpop.f32.mrf.mxu1 }
 0x3c0   : > { %v3570_v47 = vpop.f32.mrf.mxu0  ;;  %v2357_v27 = vpop.f32.mrf.mxu1 }
 0x3c1   : > { %v5742_v0 = vadd.f32 %v3569_v54, %v2357_v27 }
 0x3c2   : > { %v3571_v3 = vpop.f32.mrf.mxu0  ;;  %v4094_v1 = vpop.f32.mrf.mxu1 }
 0x3c3   : > { %v3572_v11 = vadd.f32 %v3571_v3, %v3570_v47 }
 0x3c4   : > { %v3573_v63 = vpop.f32.mrf.mxu0  ;;  %v2367_v39 = vpop.f32.mrf.mxu1 }
 0x3c5   : > { %v5744_v24 = vadd.f32 %v4091_v33, %v3572_v11 }
 0x3c6   : > { %v3574_v26 = vpop.f32.mrf.mxu0  ;;  %v4097_v58 = vpop.f32.mrf.mxu1 }
 0x3c7   : > { %v3575_v40 = vadd.f32 %v3574_v26, %v3573_v63 }
 0x3c8   : > { %v3576_v28 = vpop.f32.mrf.mxu0  ;;  %v2377_v17 = vpop.f32.mrf.mxu1 }
 0x3c9   : > { %v5746_v19 = vadd.f32 %v3575_v40, %v2367_v39 }
 0x3ca   : > { %v3577_v22 = vpop.f32.mrf.mxu0  ;;  %v4100_v2 = vpop.f32.mrf.mxu1 }
 0x3cb   : > { %v3578_v55 = vadd.f32 %v3577_v22, %v3576_v28 }
 0x3cc   : > { %v3579_v36 = vpop.f32.mrf.mxu0  ;;  %v2387_v45 = vpop.f32.mrf.mxu1 }
 0x3cd   : > { %v5748_v44 = vadd.f32 %v4094_v1, %v3578_v55 }
 0x3ce   : > { %v3580_v13 = vpop.f32.mrf.mxu0 }
 0x3cf   : > { %v3581_v14 = vadd.f32 %v3580_v13, %v3579_v36 }
 0x3d0   : > { %v3582_v4 = vpop.f32.mrf.mxu0 }
 0x3d1   : > { %v5750_v51 = vadd.f32 %v3581_v14, %v2377_v17 }
 0x3d2   : > { %v3583_v42 = vpop.f32.mrf.mxu0 }
 0x3d3   : > { %v3584_v18 = vadd.f32 %v3583_v42, %v3582_v4  ;;  %v4103_v12 = vpop.f32.mrf.mxu1 }
 0x3d4   : > { %v3585_v56 = vpop.f32.mrf.mxu0 }
 0x3d5   : > { %v5752_v35 = vadd.f32 %v4097_v58, %v3584_v18  ;;  %v2397_v50 = vpop.f32.mrf.mxu1 }
 0x3d6   : > { %v3586_v6 = vpop.f32.mrf.mxu0 }
 0x3d7   : > { %v3587_v9 = vadd.f32 %v3586_v6, %v3585_v56 }
 0x3d8   : > { %v3588_v53 = vpop.f32.mrf.mxu0 }
 0x3d9   : > { %v5754_v52 = vadd.f32 %v3587_v9, %v2387_v45 }
 0x3da   : > { %v3589_v61 = vpop.f32.mrf.mxu0 }
 0x3db   : > { %v3590_v41 = vadd.f32 %v3589_v61, %v3588_v53 }
 0x3dc   : > { %v3591_v10 = vpop.f32.mrf.mxu0  ;;  %v4106_v21 = vpop.f32.mrf.mxu1 }
 0x3dd   : > { %v5756_v32 = vadd.f32 %v4100_v2, %v3590_v41 }
 0x3de   : > { %v3592_v16 = vpop.f32.mrf.mxu0  ;;  %v2407_v38 = vpop.f32.mrf.mxu1 }
 0x3df   : > { %v3593_v20 = vadd.f32 %v3592_v16, %v3591_v10 }
 0x3e0   : > { %v3594_v34 = vpop.f32.mrf.mxu0 }
 0x3e1   : > { %v5758_v46 = vadd.f32 %v3593_v20, %v2397_v50 }
 0x3e2   : > { %v3595_v49 = vpop.f32.mrf.mxu0 }
 0x3e3   : > { %v3596_v8 = vadd.f32 %v3595_v49, %v3594_v34 }
 0x3e4   : > { %v3597_v15 = vpop.f32.mrf.mxu0 }
 0x3e5   : > { %v5760_v29 = vadd.f32 %v4103_v12, %v3596_v8 }
 0x3e6   : > { %v3598_v60 = vpop.f32.mrf.mxu0  ;;  %v4109_v48 = vpop.f32.mrf.mxu1 }
 0x3e7   : > { %v3599_v7 = vadd.f32 %v3598_v60, %v3597_v15 }
 0x3e8   : > { %v3600_v37 = vpop.f32.mrf.mxu0  ;;  %v2417_v25 = vpop.f32.mrf.mxu1 }
 0x3e9   : > { %v5762_v30 = vadd.f32 %v3599_v7, %v2407_v38 }
 0x3ea   : > { %v3601_v23 = vpop.f32.mrf.mxu0 }
 0x3eb   : > { %v3602_v5 = vadd.f32 %v3601_v23, %v3600_v37  ;;  %v4112_v57 = vpop.f32.mrf.mxu1 }
 0x3ec   : > { %v3603_v59 = vpop.f32.mrf.mxu0 }
 0x3ed   : > { %v5764_v62 = vadd.f32 %v4106_v21, %v3602_v5  ;;  %v2427_v54 = vpop.f32.mrf.mxu1 }
 0x3ee   : > { %v3604_v31 = vpop.f32.mrf.mxu0 }
 0x3ef   : > { %v3605_v43 = vadd.f32 %v3604_v31, %v3603_v59 }
 0x3f0   : > { %v3606_v33 = vpop.f32.mrf.mxu0 }
 0x3f1   : > { %v5766_v47 = vadd.f32 %v3605_v43, %v2417_v25 }
 0x3f2   : > { %v3607_v27 = vpop.f32.mrf.mxu0  ;;  %v4147_v11 = vpop.f32.mrf.mxu1 }
 0x3f3   : > { %v3608_v3 = vadd.f32 %v3607_v27, %v3606_v33 }
 0x3f4   : > { %v3609_v1 = vpop.f32.mrf.mxu0  ;;  %v2647_v26 = vpop.f32.mrf.mxu1 }
 0x3f5   : > { %v5768_v63 = vadd.f32 %v4109_v48, %v3608_v3 }
 0x3f6   : > { %v3610_v39 = vpop.f32.mrf.mxu0 }
 0x3f7   : > { %v3611_v40 = vadd.f32 %v3610_v39, %v3609_v1  ;;  %v4150_v22 = vpop.f32.mrf.mxu1 }
 0x3f8   : > { %v3612_v28 = vpop.f32.mrf.mxu0 }
 0x3f9   : > { %v5770_v58 = vadd.f32 %v3611_v40, %v2427_v54  ;;  %v2657_v36 = vpop.f32.mrf.mxu1 }
 0x3fa   : > { %v3613_v55 = vpop.f32.mrf.mxu0 }
 0x3fb   : > { %v3614_v13 = vadd.f32 %v3613_v55, %v3612_v28 }
 0x3fc   : > { %v3679_v17 = vpop.f32.mrf.mxu0  ;;  %v4153_v42 = vpop.f32.mrf.mxu1 }
 0x3fd   : > { %v5772_v14 = vadd.f32 %v4112_v57, %v3614_v13 }
 0x3fe   : > { %v3680_v4 = vpop.f32.mrf.mxu0  ;;  %v2667_v56 = vpop.f32.mrf.mxu1 }
 0x3ff   : > { %v3681_v2 = vadd.f32 %v3680_v4, %v3679_v17 }
 0x400   : > { %v3682_v18 = vpop.f32.mrf.mxu0 }
 0x401   : > { %v2503_v6 = vadd.f32 %v3681_v2, %v5742_v0 }
 0x402   : > { %v3683_v45 = vpop.f32.mrf.mxu0 }
 0x403   : > { %v3684_v9 = vadd.f32 %v3683_v45, %v3682_v18  ;;  %v4156_v53 = vpop.f32.mrf.mxu1  ;;  %v5775_v61 = vadd.f32 %v2647_v26, %v2503_v6 }
 0x404   : > { %v3685_v12 = vpop.f32.mrf.mxu0 }
 0x405   : > { %v2508_v41 = vadd.f32 %v3684_v9, %v5744_v24  ;;  %v2677_v10 = vpop.f32.mrf.mxu1 }
 0x406   : > { %v3686_v16 = vpop.f32.mrf.mxu0 }
 0x407   : > { %v3687_v50 = vadd.f32 %v3686_v16, %v3685_v12  ;;  %v5778_v20 = vadd.f32 %v4147_v11, %v2508_v41 }
 0x408   : > { %v3688_v34 = vpop.f32.mrf.mxu0  ;;  %v4159_v21 = vpop.f32.mrf.mxu1 }
 0x409   : > { %v2513_v49 = vadd.f32 %v3687_v50, %v5746_v19 }
 0x40a   : > { %v3689_v8 = vpop.f32.mrf.mxu0  ;;  %v2687_v15 = vpop.f32.mrf.mxu1 }
 0x40b   : > { %v3690_v0 = vadd.f32 %v3689_v8, %v3688_v34  ;;  %v5781_v38 = vadd.f32 %v2657_v36, %v2513_v49 }
 0x40c   : > { %v3691_v7 = vpop.f32.mrf.mxu0 }
 0x40d   : > { %v2518_v60 = vadd.f32 %v3690_v0, %v5748_v44  ;;  %v4162_v48 = vpop.f32.mrf.mxu1 }
 0x40e   : > { %v3692_v37 = vpop.f32.mrf.mxu0 }
 0x40f   : > { %v2697_v24 = vpop.f32.mrf.mxu1  ;;  %v5784_v23 = vadd.f32 %v4150_v22, %v2518_v60  ;;  %v3693_v5 = vadd.f32 %v3692_v37, %v3691_v7 }
 0x411   : > { %v2523_v25 = vadd.f32 %v3693_v5, %v5750_v51  ;;  %v3694_v59 = vpop.f32.mrf.mxu0 }
 0x412   : > { %v5787_v57 = vpop.f32.mrf.mxu1 }
 0x413   : > { %v3695_v19 = vpop.f32.mrf.mxu0  ;;  %v5789_v43 = vadd.f32 %v2667_v56, %v2523_v25 }
 0x414   : > { %v2707_v31 = vpop.f32.mrf.mxu1  ;;  %v3696_v54 = vadd.f32 %v3695_v19, %v3694_v59 }
 0x416   : > { %v2528_v33 = vadd.f32 %v3696_v54, %v5752_v35  ;;  %v3697_v44 = vpop.f32.mrf.mxu0 }
 0x417   : > { %v5792_v27 = vpop.f32.mrf.mxu1 }
 0x418   : > { %v3698_v3 = vpop.f32.mrf.mxu0  ;;  %v5796_v1 = vadd.f32 %v4153_v42, %v2528_v33 }
 0x419   : > { %v5794_v11 = vpop.f32.mrf.mxu1  ;;  %v3699_v26 = vadd.f32 %v3698_v3, %v3697_v44 }
 0x41b   : > { %v2533_v51 = vadd.f32 %v3699_v26, %v5754_v52  ;;  %v3700_v39 = vpop.f32.mrf.mxu0 }
 0x41c   : > { %v5799_v40 = vpop.f32.mrf.mxu1 }
 0x41d   : > { %v3701_v28 = vpop.f32.mrf.mxu0  ;;  %v5801_v55 = vadd.f32 %v2677_v10, %v2533_v51 }
 0x41e   : > { %v3792_v22 = vpop.f32.mrf.mxu1  ;;  %v3702_v36 = vadd.f32 %v3701_v28, %v3700_v39 }
 0x41f   : > { %v3703_v35 = vpop.f32.mrf.mxu0 }
 0x420   : > { %v3794_v13 = vpop.f32.mrf.mxu1  ;;  %v2538_v17 = vadd.f32 %v3702_v36, %v5756_v32 }
 0x421   : > { %v3704_v4 = vpop.f32.mrf.mxu0 }
 0x422   : > { %v3795_v2 = vpop.f32.mrf.mxu1  ;;  %v3705_v18 = vadd.f32 %v3704_v4, %v3703_v35  ;;  %v5804_v42 = vadd.f32 %v4156_v53, %v2538_v17 }
 0x424   : > { %v3706_v56 = vpop.f32.mrf.mxu0  ;;  %v5806_v6 = vpop.f32.mrf.mxu1  ;;  %v2543_v52 = vadd.f32 %v3705_v18, %v5758_v46 }
 0x426   : > { %v3707_v45 = vpop.f32.mrf.mxu0  ;;  %v3798_v9 = vpop.f32.mrf.mxu1  ;;  %v5809_v41 = vadd.f32 %v2687_v15, %v2543_v52 }
 0x427   : > { %v3708_v12 = vadd.f32 %v3707_v45, %v3706_v56  ;;  %v3796_v45 = vadd.f32 %v3795_v2, %v3794_v13 }
 0x428   : > { %v3709_v10 = vpop.f32.mrf.mxu0  ;;  %v3800_v16 = vpop.f32.mrf.mxu1 }
 0x429   : > { %v2548_v50 = vadd.f32 %v3708_v12, %v5760_v29 }
 0x42a   : > { %v3710_v32 = vpop.f32.mrf.mxu0  ;;  %v3801_v34 = vpop.f32.mrf.mxu1 }
 0x42b   : > { %v3711_v49 = vadd.f32 %v3710_v32, %v3709_v10  ;;  %v5812_v8 = vadd.f32 %v4159_v21, %v2548_v50 }
 0x42c   : > { %v3712_v53 = vpop.f32.mrf.mxu0  ;;  %v3803_v0 = vpop.f32.mrf.mxu1 }
 0x42d   : > { %v2553_v60 = vadd.f32 %v3711_v49, %v5762_v30 }
 0x42e   : > { %v3713_v7 = vpop.f32.mrf.mxu0  ;;  %v3804_v46 = vpop.f32.mrf.mxu1 }
 0x42f   : > { %v3714_v37 = vadd.f32 %v3713_v7, %v3712_v53  ;;  %v5815_v5 = vadd.f32 %v2697_v24, %v2553_v60  ;;  %v3802_v60 = vadd.f32 %v3801_v34, %v3800_v16 }
 0x430   : > { %v3715_v15 = vpop.f32.mrf.mxu0  ;;  %v3806_v25 = vpop.f32.mrf.mxu1 }
 0x431   : > { %v2558_v59 = vadd.f32 %v3714_v37, %v5764_v62 }
 0x432   : > { %v3716_v19 = vpop.f32.mrf.mxu0  ;;  %v3807_v29 = vpop.f32.mrf.mxu1 }
 0x433   : > { %v3717_v54 = vadd.f32 %v3716_v19, %v3715_v15  ;;  %v5818_v33 = vadd.f32 %v4162_v48, %v2558_v59 }
 0x434   : > { %v3718_v21 = vpop.f32.mrf.mxu0  ;;  %v3809_v44 = vpop.f32.mrf.mxu1 }
 0x435   : > { %v2563_v3 = vadd.f32 %v3717_v54, %v5766_v47  ;;  %v3808_v54 = vadd.f32 %v3807_v29, %v3806_v25 }
 0x436   : > { %v3719_v26 = vpop.f32.mrf.mxu0  ;;  %v3810_v30 = vpop.f32.mrf.mxu1 }
 0x437   : > { %v3720_v51 = vadd.f32 %v3719_v26, %v3718_v21  ;;  %v5821_v39 = vadd.f32 %v2707_v31, %v2563_v3  ;;  %v3805_v21 = vadd.f32 %v3804_v46, %v3803_v0  ;;  %v3811_v0 = vadd.f32 %v3810_v30, %v3809_v44 }
 0x438   : > { %v3721_v24 = vpop.f32.mrf.mxu0  ;;  %v3812_v28 = vpop.f32.mrf.mxu1 }
 0x439   : > { %v2568_v36 = vadd.f32 %v3720_v51, %v5768_v63  ;;  %v3793_v63 = vadd.f32 %v3792_v22, %v5799_v40  ;;  %v3799_v40 = vadd.f32 %v3798_v9, %v5806_v6 }
 0x43a   : > { %v3722_v35 = vpop.f32.mrf.mxu0  ;;  %v3813_v62 = vpop.f32.mrf.mxu1 }
 0x43b   : > { %v3723_v17 = vadd.f32 %v3722_v35, %v3721_v24  ;;  %v5825_v4 = vadd.f32 %v5787_v57, %v2568_v36  ;;  %v3814_v25 = vadd.f32 %v3813_v62, %v3812_v28 }
 0x43c   : > { %v3724_v48 = vpop.f32.mrf.mxu0  ;;  %v3815_v18 = vpop.f32.mrf.mxu1 }
 0x43d   : > { %v2573_v56 = vadd.f32 %v3723_v17, %v5770_v58  ;;  %v5836_v58 = vld [vmem:[%s6037_s4] ss:$0 sm:$0xff] }
 0x43e   : > { %v3725_v47 = vpop.f32.mrf.mxu0  ;;  %v3816_v52 = vpop.f32.mrf.mxu1 }
 0x43f   : > { %v3726_v12 = vadd.f32 %v3725_v47, %v3724_v48  ;;  %v5829_v31 = vadd.f32 %v5794_v11, %v2573_v56  ;;  %v3817_v62 = vadd.f32 %v3816_v52, %v3815_v18 }
 0x440   : > { %v3818_v10 = vpop.f32.mrf.mxu1  ;;  %v4203_v50 = vpop.f32.mrf.mxu0 }
 0x441   : > { %v2578_v32 = vadd.f32 %v3726_v12, %v5772_v14  ;;  %v3008_v49 = vadd.f32 %v4203_v50, %v3796_v45 }
 0x442   : > { %v3819_v57 = vpop.f32.mrf.mxu1  ;;  %v3002_v53 = vpop.f32.mrf.mxu0 }
 0x443   : > { %v3082_v13 = vadd.f32 %v3008_v49, %v5778_v20  ;;  %v3003_v2 = vadd.f32 %v3793_v63, %v3002_v53  ;;  %v5840_v11 = vadd.f32 %v5792_v27, %v2578_v32  ;;  %v3820_v44 = vadd.f32 %v3819_v57, %v3818_v10 }
 0x444   : > { %v3821_v7 = vpop.f32.mrf.mxu1  ;;  %v4206_v37 = vpop.f32.mrf.mxu0 }
 0x445   : > { %v3081_v14 = vadd.f32 %v3003_v2, %v5775_v61  ;;  %v3018_v22 = vadd.f32 %v4206_v37, %v3802_v60  ;;  %v3105_v15 = vadd.f32 %v5836_v58, %v3082_v13 }
 0x446   : > { %v3822_v59 = vpop.f32.mrf.mxu1  ;;  %v3012_v19 = vpop.f32.mrf.mxu0 }
 0x447   : > { %v3104_v16 = vadd.f32 %v5836_v58, %v3081_v14  ;;  %v3084_v20 = vadd.f32 %v3018_v22, %v5784_v23  ;;  %v3013_v34 = vadd.f32 %v3799_v40, %v3012_v19  ;;  %v3121_v26 = vmul.f32 0.2, %v3105_v15 }
 0x448   : > { %v3824_v27 = vpop.f32.mrf.mxu1  ;;  %v4209_v3 = vpop.f32.mrf.mxu0  ;;  %v3823_v14 = vadd.f32 %v3822_v59, %v3821_v7 }
 0x449   : > { %v3083_v51 = vadd.f32 %v3013_v34, %v5781_v38  ;;  %v3028_v6 = vadd.f32 %v4209_v3, %v3808_v54  ;;  %v3107_v61 = vadd.f32 %v5836_v58, %v3084_v20  ;;  %v3120_v9 = vmul.f32 0.2, %v3104_v16 }
 0x44a   : > { %v3825_v24 = vpop.f32.mrf.mxu1  ;;  %v3022_v36 = vpop.f32.mrf.mxu0  ;;  %v5849_v35 = vmax.f32 %v3105_v15, %v3121_v26 }
 0x44b   : > { %v3106_v29 = vadd.f32 %v5836_v58, %v3083_v51  ;;  %v3086_v23 = vadd.f32 %v3028_v6, %v5796_v1  ;;  %v3023_v17 = vadd.f32 %v3805_v21, %v3022_v36  ;;  %v3123_v56 = vmul.f32 0.2, %v3107_v61 }
 0x44c   : > { %v3827_v46 = vpop.f32.mrf.mxu1  ;;  %v4212_v48 = vpop.f32.mrf.mxu0  ;;  %v3153_v38 = vmul.f32 %v5849_v35, %v5849_v35  ;;  %v5855_v47 = vmax.f32 %v3104_v16, %v3120_v9  ;;  %v3826_v15 = vadd.f32 %v3825_v24, %v3824_v27 }
 0x44d   : > { %v3109_v45 = vadd.f32 %v5836_v58, %v3086_v23  ;;  %v3085_v12 = vadd.f32 %v3023_v17, %v5789_v43  ;;  %v3038_v50 = vadd.f32 %v4212_v48, %v3814_v25  ;;  %v3122_v28 = vmul.f32 0.2, %v3106_v29 }
 0x44e   : > { %3170 = vadd.xlane.f32.xlu0 %v3153_v38  ;;  %v3828_v63 = vpop.f32.mrf.mxu1  ;;  %v3032_v1 = vpop.f32.mrf.mxu0  ;;  %v5859_v32 = vmax.f32 %v3107_v61, %v3123_v56  ;;  %v3152_v43 = vmul.f32 %v5855_v47, %v5855_v47 }
 0x44f   : > { %v3108_v30 = vadd.f32 %v5836_v58, %v3085_v12  ;;  %v3088_v49 = vadd.f32 %v3038_v50, %v5804_v42  ;;  %v3033_v53 = vadd.f32 %v3811_v0, %v3032_v1  ;;  %v5867_v18 = vmax.f32 %v3106_v29, %v3122_v28 }
 0x450   : > { %v3830_v60 = vpop.f32.mrf.mxu1  ;;  %v4215_v13 = vpop.f32.mrf.mxu0  ;;  %v3155_v2 = vmul.f32 %v5859_v32, %v5859_v32  ;;  %v3125_v52 = vmul.f32 0.2, %v3109_v45  ;;  %v3829_v6 = vadd.f32 %v3828_v63, %v3827_v46 }
 0x451   : > { %v3111_v37 = vadd.f32 %v5836_v58, %v3088_v49  ;;  %v3087_v10 = vadd.f32 %v3033_v53, %v5801_v55  ;;  %v3048_v57 = vadd.f32 %v4215_v13, %v3820_v44  ;;  %v3124_v40 = vmul.f32 0.2, %v3108_v30 }
 0x452   : > { %3174 = vadd.xlane.f32.xlu1 %v3155_v2  ;;  %3168 = vadd.xlane.f32.xlu0 %v3152_v43  ;;  %v3831_v42 = vpop.f32.mrf.mxu1  ;;  %v3042_v22 = vpop.f32.mrf.mxu0  ;;  %v3154_v21 = vmul.f32 %v5867_v18, %v5867_v18  ;;  %v5877_v55 = vmax.f32 %v3109_v45, %v3125_v52 }
 0x453   : > { %v3110_v19 = vadd.f32 %v5836_v58, %v3087_v10  ;;  %v3090_v54 = vadd.f32 %v3048_v57, %v5812_v8  ;;  %v3043_v16 = vadd.f32 %v3817_v62, %v3042_v22  ;;  %v5875_v3 = vmax.f32 %v3108_v30, %v3124_v40 }
 0x454   : > { %v3833_v20 = vpop.f32.mrf.mxu1  ;;  %v4218_v34 = vpop.f32.mrf.mxu0  ;;  %v3127_v7 = vmul.f32 0.2, %v3111_v37  ;;  %v3832_v24 = vadd.f32 %v3831_v42, %v3830_v60 }
 0x455   : > { %v3113_v59 = vadd.f32 %v5836_v58, %v3090_v54  ;;  %v3089_v26 = vadd.f32 %v3043_v16, %v5809_v41  ;;  %v3058_v27 = vadd.f32 %v4218_v34, %v3826_v15  ;;  %v3126_v51 = vmul.f32 0.2, %v3110_v19 }
 0x456   : > { %3172 = vadd.xlane.f32.xlu1 %v3154_v21  ;;  %v3834_v8 = vpop.f32.mrf.mxu1  ;;  %v3052_v61 = vpop.f32.mrf.mxu0  ;;  %v3156_v9 = vmul.f32 %v5875_v3, %v5875_v3  ;;  %v3157_v41 = vmul.f32 %v5877_v55, %v5877_v55  ;;  %v5889_v46 = vmax.f32 %v3111_v37, %v3127_v7 }
 0x457   : > { %v3112_v36 = vadd.f32 %v5836_v58, %v3089_v26  ;;  %v3092_v25 = vadd.f32 %v3058_v27, %v5818_v33  ;;  %v3053_v29 = vadd.f32 %v3823_v14, %v3052_v61  ;;  %v5887_v0 = vmax.f32 %v3110_v19, %v3126_v51 }
 0x458   : > { %3176 = vadd.xlane.f32.xlu0 %v3156_v9  ;;  %v3836_v23 = vpop.f32.mrf.mxu1  ;;  %v4221_v17 = vpop.f32.mrf.mxu0  ;;  %v3129_v48 = vmul.f32 0.2, %v3113_v59  ;;  %v3835_v50 = vadd.f32 %v3834_v8, %v3833_v20 }
 0x459   : > { %v3115_v38 = vadd.f32 %v5836_v58, %v3092_v25  ;;  %v3091_v56 = vadd.f32 %v3053_v29, %v5815_v5  ;;  %v3068_v45 = vadd.f32 %v4221_v17, %v3832_v24  ;;  %v3128_v12 = vmul.f32 0.2, %v3112_v36 }
 0x45a   : > { %3178 = vadd.xlane.f32.xlu1 %v3157_v41  ;;  %v3837_v33 = vpop.f32.mrf.mxu1  ;;  %v3062_v28 = vpop.f32.mrf.mxu0  ;;  %v3158_v62 = vmul.f32 %v5887_v0, %v5887_v0  ;;  %v3159_v5 = vmul.f32 %v5889_v46, %v5889_v46  ;;  %v5901_v60 = vmax.f32 %v3113_v59, %v3129_v48 }
 0x45b   : > { %v3114_v63 = vadd.f32 %v5836_v58, %v3091_v56  ;;  %v3094_v1 = vadd.f32 %v3068_v45, %v5825_v4  ;;  %v3838_v44 = vadd.f32 %v3837_v33, %v3836_v23  ;;  %v3063_v30 = vadd.f32 %v3829_v6, %v3062_v28 }
 0x45c   : > { %3180 = vadd.xlane.f32.xlu0 %v3158_v62  ;;  %v4224_v49 = vpop.f32.mrf.mxu0  ;;  %v5899_v53 = vmax.f32 %v3112_v36, %v3128_v12  ;;  %v3131_v13 = vmul.f32 0.2, %v3115_v38  ;;  %v3161_v22 = vmul.f32 %v5901_v60, %v5901_v60 }
 0x45d   : > { %v3117_v2 = vadd.f32 %v5836_v58, %v3094_v1  ;;  %v3093_v43 = vadd.f32 %v3063_v30, %v5821_v39  ;;  %v3078_v52 = vadd.f32 %v4224_v49, %v3838_v44  ;;  %v3130_v37 = vmul.f32 0.2, %v3114_v63 }
 0x45e   : > { %3182 = vadd.xlane.f32.xlu1 %v3159_v5  ;;  %v3072_v4 = vpop.f32.mrf.mxu0  ;;  %v3160_v10 = vmul.f32 %v5899_v53, %v5899_v53  ;;  %v5913_v15 = vmax.f32 %v3115_v38, %v3131_v13 }
 0x45f   : > { %v3116_v57 = vadd.f32 %v5836_v58, %v3093_v43  ;;  %v3096_v40 = vadd.f32 %v3078_v52, %v5840_v11  ;;  %v3073_v14 = vadd.f32 %v3835_v50, %v3072_v4  ;;  %v5909_v42 = vmax.f32 %v3114_v63, %v3130_v37 }
 0x460   : > { %3184 = vadd.xlane.f32.xlu0 %v3160_v10  ;;  %v3133_v39 = vmul.f32 0.2, %v3117_v2  ;;  %v3163_v21 = vmul.f32 %v5913_v15, %v5913_v15 }
 0x461   : > { %v3119_v19 = vadd.f32 %v5836_v58, %v3096_v40  ;;  %v3095_v54 = vadd.f32 %v3073_v14, %v5829_v31  ;;  %v3162_v16 = vmul.f32 %v5909_v42, %v5909_v42  ;;  %v3132_v20 = vmul.f32 0.2, %v3116_v57 }
 0x462   : > { %3186 = vadd.xlane.f32.xlu1 %v3161_v22  ;;  %v5924_v7 = vmax.f32 %v3117_v2, %v3133_v39 }
 0x463   : > { %v3118_v11 = vadd.f32 %v5836_v58, %v3095_v54  ;;  %v5920_v34 = vmax.f32 %v3116_v57, %v3132_v20  ;;  %v3135_v59 = vmul.f32 0.2, %v3119_v19 }
 0x464   : > { %3188 = vadd.xlane.f32.xlu0 %v3162_v16  ;;  %v3165_v58 = vmul.f32 %v5924_v7, %v5924_v7 }
 0x465   : > { %v3164_v26 = vmul.f32 %v5920_v34, %v5920_v34  ;;  %v3134_v31 = vmul.f32 0.2, %v3118_v11  ;;  %v5932_v51 = vmax.f32 %v3119_v19, %v3135_v59 }
 0x466   : > { %3190 = vadd.xlane.f32.xlu1 %v3163_v21 }
 0x467   : > { %v5928_v27 = vmax.f32 %v3118_v11, %v3134_v31  ;;  %v3167_v8 = vmul.f32 %v5932_v51, %v5932_v51 }
 0x468   : > { %3192 = vadd.xlane.f32.xlu0 %v3164_v26 }
 0x469   : > { %v3166_v6 = vmul.f32 %v5928_v27, %v5928_v27 }
 0x46a   : > { %3194 = vadd.xlane.f32.xlu1 %v3165_v58 }
 0x46c   : > { %3196 = vadd.xlane.f32.xlu0 %v3166_v6 }
 0x46e   : > { %3198 = vadd.xlane.f32.xlu1 %v3167_v8 }
 0x4d7   : > { %v3171_v61 = vpop.xlane.xlu0 %3170 }
 0x4d8   : > { %v3201_v9 = vmul.f32 0.125, %v3171_v61 }
 0x4da   : > { %v3217_v24 = vadd.f32 1e-08, %v3201_v9 }
 0x4db   : > { %v3175_v36 = vpop.xlane.xlu1 %3174  ;;  %v3169_v25 = vpop.xlane.xlu0 %3168 }
 0x4dc   : > { %4364 = vrsqrt.f32 %v3217_v24  ;;  %v3203_v29 = vmul.f32 0.125, %v3175_v36  ;;  %v3200_v23 = vmul.f32 0.125, %v3169_v25 }
 0x4de   : > { %v3219_v17 = vadd.f32 1e-08, %v3203_v29  ;;  %v3216_v41 = vadd.f32 1e-08, %v3200_v23 }
 0x4df   : > { %v3173_v48 = vpop.xlane.xlu1 %3172 }
 0x4e0   : > { %4366 = vrsqrt.f32 %v3219_v17  ;;  %v3202_v38 = vmul.f32 0.125, %v3173_v48 }
 0x4e1   : > { %4368 = vrsqrt.f32 %v3216_v41  ;;  %v3177_v56 = vpop.xlane.xlu0 %3176 }
 0x4e2   : > { %v3218_v45 = vadd.f32 1e-08, %v3202_v38  ;;  %v3204_v12 = vmul.f32 0.125, %v3177_v56 }
 0x4e3   : > { %v3179_v50 = vpop.xlane.xlu1 %3178 }
 0x4e4   : > { %4370 = vrsqrt.f32 %v3218_v45  ;;  %v3220_v33 = vadd.f32 1e-08, %v3204_v12  ;;  %v3205_v28 = vmul.f32 0.125, %v3179_v50 }
 0x4e5   : > { %v3181_v62 = vpop.xlane.xlu0 %3180 }
 0x4e6   : > { %4372 = vrsqrt.f32 %v3220_v33  ;;  %v3221_v63 = vadd.f32 1e-08, %v3205_v28  ;;  %v3206_v1 = vmul.f32 0.125, %v3181_v62 }
 0x4e7   : > { %v3183_v44 = vpop.xlane.xlu1 %3182 }
 0x4e8   : > { %4374 = vrsqrt.f32 %v3221_v63  ;;  %v3222_v30 = vadd.f32 1e-08, %v3206_v1  ;;  %v3207_v49 = vmul.f32 0.125, %v3183_v44 }
 0x4e9   : > { %v4365_v5 = vpop.eup %4364  ;;  %v3185_v13 = vpop.xlane.xlu0 %3184 }
 0x4ea   : > { %v3249_v2 = vmul.f32 %v4365_v5, %v5849_v35  ;;  %4376 = vrsqrt.f32 %v3222_v30  ;;  %v3223_v43 = vadd.f32 1e-08, %v3207_v49  ;;  %v3208_v52 = vmul.f32 0.125, %v3185_v13 }
 0x4eb   : > { %v3187_v37 = vpop.xlane.xlu1 %3186 }
 0x4ec   : > { %3265 = vst [vmem:[%s4710_s16 + $0x8] sm:$0xff] %v3249_v2  ;;  %4378 = vrsqrt.f32 %v3223_v43  ;;  %v3224_v4 = vadd.f32 1e-08, %v3208_v52  ;;  %v3209_v10 = vmul.f32 0.125, %v3187_v37 }
 0x4ed   : > { %v4367_v57 = vpop.eup %4366  ;;  %v3189_v40 = vpop.xlane.xlu0 %3188 }
 0x4ee   : > { %v4369_v14 = vpop.eup %4368  ;;  %v3251_v22 = vmul.f32 %v4367_v57, %v5859_v32  ;;  %4380 = vrsqrt.f32 %v3224_v4  ;;  %v3225_v39 = vadd.f32 1e-08, %v3209_v10  ;;  %v3210_v19 = vmul.f32 0.125, %v3189_v40 }
 0x4ef   : > { %v3248_v35 = vmul.f32 %v4369_v14, %v5855_v47  ;;  %v3191_v54 = vpop.xlane.xlu1 %3190 }
 0x4f0   : > { %3267 = vst [vmem:[%s4710_s16 + $0x18] sm:$0xff] %v3251_v22  ;;  %4382 = vrsqrt.f32 %v3225_v39  ;;  %v3226_v16 = vadd.f32 1e-08, %v3210_v19  ;;  %v3211_v20 = vmul.f32 0.125, %v3191_v54 }
 0x4f1   : > { %v4371_v11 = vpop.eup %4370  ;;  %3264 = vst [vmem:[%s4710_s16] sm:$0xff] %v3248_v35  ;;  %v3193_v21 = vpop.xlane.xlu0 %3192 }
 0x4f2   : > { %v3250_v59 = vmul.f32 %v4371_v11, %v5867_v18  ;;  %4384 = vrsqrt.f32 %v3226_v16  ;;  %v3227_v26 = vadd.f32 1e-08, %v3211_v20  ;;  %v3212_v32 = vmul.f32 0.125, %v3193_v21 }
 0x4f3   : > { %v4373_v31 = vpop.eup %4372  ;;  %v3195_v58 = vpop.xlane.xlu1 %3194 }
 0x4f4   : > { %3266 = vst [vmem:[%s4710_s16 + $0x10] sm:$0xff] %v3250_v59  ;;  %v3252_v47 = vmul.f32 %v4373_v31, %v5875_v3  ;;  %4386 = vrsqrt.f32 %v3227_v26  ;;  %v3228_v6 = vadd.f32 1e-08, %v3212_v32  ;;  %v3213_v8 = vmul.f32 0.125, %v3195_v58 }
 0x4f5   : > { %v4375_v61 = vpop.eup %4374  ;;  %v3197_v9 = vpop.xlane.xlu0 %3196 }
 0x4f6   : > { %3268 = vst [vmem:[%s4710_s16 + $0x20] sm:$0xff] %v3252_v47  ;;  %v3253_v24 = vmul.f32 %v4375_v61, %v5877_v55  ;;  %4388 = vrsqrt.f32 %v3228_v6  ;;  %v3229_v18 = vadd.f32 1e-08, %v3213_v8  ;;  %v3214_v36 = vmul.f32 0.125, %v3197_v9 }
 0x4f7   : > { %v4377_v25 = vpop.eup %4376  ;;  %v3199_v29 = vpop.xlane.xlu1 %3198 }
 0x4f8   : > { %3269 = vst [vmem:[%s4710_s16 + $0x28] sm:$0xff] %v3253_v24  ;;  %v3254_v23 = vmul.f32 %v4377_v25, %v5887_v0  ;;  %4390 = vrsqrt.f32 %v3229_v18  ;;  %v3230_v3 = vadd.f32 1e-08, %v3214_v36  ;;  %v3215_v17 = vmul.f32 0.125, %v3199_v29 }
 0x4f9   : > { %v4379_v41 = vpop.eup %4378 }
 0x4fa   : > { %3270 = vst [vmem:[%s4710_s16 + $0x30] sm:$0xff] %v3254_v23  ;;  %v3255_v55 = vmul.f32 %v4379_v41, %v5889_v46  ;;  %4392 = vrsqrt.f32 %v3230_v3  ;;  %v3231_v48 = vadd.f32 1e-08, %v3215_v17 }
 0x4fb   : > { %v4381_v38 = vpop.eup %4380 }
 0x4fc   : > { %3271 = vst [vmem:[%s4710_s16 + $0x38] sm:$0xff] %v3255_v55  ;;  %v3256_v56 = vmul.f32 %v4381_v38, %v5899_v53  ;;  %4394 = vrsqrt.f32 %v3231_v48 }
 0x4fd   : > { %v4383_v0 = vpop.eup %4382 }
 0x4fe   : > { %3272 = vst [vmem:[%s4710_s16 + $0x40] sm:$0xff] %v3256_v56  ;;  %v3257_v45 = vmul.f32 %v4383_v0, %v5901_v60 }
 0x4ff   : > { %v4385_v12 = vpop.eup %4384 }
 0x500   : > { %3273 = vst [vmem:[%s4710_s16 + $0x48] sm:$0xff] %v3257_v45  ;;  %v3258_v50 = vmul.f32 %v4385_v12, %v5909_v42 }
 0x501   : > { %v4387_v46 = vpop.eup %4386 }
 0x502   : > { %3274 = vst [vmem:[%s4710_s16 + $0x50] sm:$0xff] %v3258_v50  ;;  %v3259_v33 = vmul.f32 %v4387_v46, %v5913_v15 }
 0x503   : > { %v4389_v53 = vpop.eup %4388 }
 0x504   : > { %3275 = vst [vmem:[%s4710_s16 + $0x58] sm:$0xff] %v3259_v33  ;;  %v3260_v60 = vmul.f32 %v4389_v53, %v5920_v34 }
 0x505   : > { %v4391_v28 = vpop.eup %4390 }
 0x506   : > { %3276 = vst [vmem:[%s4710_s16 + $0x60] sm:$0xff] %v3260_v60  ;;  %v3261_v42 = vmul.f32 %v4391_v28, %v5924_v7 }
 0x507   : > { %v4393_v62 = vpop.eup %4392 }
 0x508   : > { %3277 = vst [vmem:[%s4710_s16 + $0x68] sm:$0xff] %v3261_v42  ;;  %v3262_v63 = vmul.f32 %v4393_v62, %v5928_v27 }
 0x509   : > { %v4395_v15 = vpop.eup %4394 }
 0x50a   : > { %3278 = vst [vmem:[%s4710_s16 + $0x70] sm:$0xff] %v3262_v63  ;;  %v3263_v34 = vmul.f32 %v4395_v15, %v5932_v51 }
 0x50c   : > { %3279 = vst [vmem:[%s4710_s16 + $0x78] sm:$0xff] %v3263_v34 }
 0x50d   : > { %4461 = shalt.err (!%p4458_p5)
}
 0x50e   : > { %s4462_s15 = scalar_lea.hbm %s5973_s6, 2048  ;;  %s4466_s11 = scalar_lea.hbm %s6038_s5, 8192 }
 0x50f   : > { %p4463_p6 = scmp.ne.s32.totalorder %s5973_s6, %s4462_s15  ;;  %p4467_p10 = scmp.lt.s32.totalorder %s5973_s6, %s6038_s5 }
 0x510   : > { %p4468_p12 = scmp.lt.s32.totalorder %s4466_s11, %s4462_s15 }
 0x511   : > { %p4464_p7 = pnand %p4463_p6, %p4644_p3 }
 0x512   : > { %p4469_p0 = por %p4468_p12, %p4467_p10 }
 0x513   : > { %p4465_p9 = pneg %p4464_p7 }
 0x515   : > { %p4470_p1 = pnand %p4469_p0, %p4465_p9 }
 0x517   : > { %4473 = shalt.err (!%p4470_p1)
}
 0x518   : > { %s4560_s22 = smov 128   ;;  %s4561_s30 = smov 8  }
 0x519   : > { %4233 = dma.vmem_to_hbm [thread:$0]  (%p4644_p3), %s5975_s21, 2048, %s5973_s6, %s5982_s9, %s4560_s22, %s4560_s22, %s4561_s30  }
 0x51a PF: > { %p4250_p11 = scmp.ge.s32.totalorder %s4550_s25, 2  ;;  %s3311_s12 = sand.u32 1, %s4522_s18  }
 0x51b   : > { %s3312_s10 = scalar_lea.sflag [#allocation6], %s3311_s12 }
 0x51c   : > { %p4243_p13 = pnand %p4250_p11, %p4653_p8 }
 0x51e   : > { %p4244_p2 = pneg %p4243_p13 }
 0x520   : > { %4517 = dma.done.wait (%p4244_p2), %s3312_s10, 2048  }
 0x521   : > { %4519 = vsyncadd (%p4244_p2), %s3312_s10, 4294965248  ;;  %s20_s25 = sadd.s32 1, %s4550_s25   ;;  %s6049_s7 = sld [smem:[#allocation16_spill]] }
 0x522   : > { %p17_p4 = scmp.ge.s32.totalorder %s20_s25, 6   ;;  %s6050_s18 = smov %s4526_s19 }
 0x523   : > { %s6051_s19 = smov %s4530_s20  ;;  %s6052_s20 = smov %s4671_s13 }
 0x524   : > { %s6053_s21 = smov %s4542_s23  ;;  %s6054_s22 = smov %s4546_s24 }
 0x525   : > { %s6055_s23 = smov %s6058_s28  ;;  %19 = sbr.rel (!%p17_p4) target bundleno = 7 (0x7), region = 139 }
 0x527   : > { %s6056_s24 = smov %s6049_s7 }
 0x52a   :  { %3317 = vsyncpa [#allocation5], 1 }
 0x52b   :  { %3319 = vsyncpa [#allocation5 + $0x1], 1 }
 0x52c   :  { %3320 = vsyncpa [#allocation8], 1 }
 0x52d   :  { %3321 = vsyncpa [#allocation6], 1 }
 0x52e   :  { %3323 = vsyncpa [#allocation6 + $0x1], 1 }

</bundles_post_ra>
